<compile_context>
chip_gen: v7x
topology: tpu7x:2x2x1
jax: 0.10.0
libtpu: 0.0.40
codegen_flags: <defaults>
</compile_context>

<pallas_src>
import functools

import jax
import jax.numpy as jnp
from jax.experimental import pallas as pl
from jax.experimental.pallas import tpu as pltpu

channel = 1
class_N = 10
img_height = 28
img_width = 28
BASE = 64


def _round_up(x, m):
    return (x + m - 1) // m * m


# ---------------------------------------------------------------------------
# Pallas kernel: fused  out = act(A @ W + b)   (one M-tile per grid step)
# ---------------------------------------------------------------------------
def _gemm_bias_act_kernel(a_ref, w_ref, b_ref, o_ref, *, act):
    # bf16 x bf16 -> f32 accumulation on the MXU.
    acc = jnp.dot(a_ref[...], w_ref[...], preferred_element_type=jnp.float32)
    acc = acc + b_ref[...]                      # (1, N) broadcasts over rows
    if act == "leaky_relu":
        acc = jnp.where(acc > 0, acc, 0.2 * acc)
    elif act == "sigmoid":
        acc = 1.0 / (1.0 + jnp.exp(-acc))
    o_ref[...] = acc.astype(o_ref.dtype)


def gemm_bias_act(a, w, b, act, *, out_dtype, tm=512):
    """a: (M, K), w: (K, N), b: (N,)  ->  (M, N) in `out_dtype`.

    A and W are cast to bf16 (f32 accumulation in-kernel).  The M axis is
    tiled with tile TM and marked "parallel" (double-buffered DMA, megacore).
    """
    a = a.astype(jnp.bfloat16)
    w = w.astype(jnp.bfloat16)
    M, K = a.shape
    K2, N = w.shape
    assert K == K2

    # Pad M so the grid tiles evenly and the sublane dim stays 8-aligned.
    Mp = _round_up(M, 8)
    if Mp <= tm:
        TM = Mp
    else:
        TM = tm
        Mp = _round_up(M, TM)
    if Mp != M:
        a = jnp.pad(a, ((0, Mp - M), (0, 0)))

    b2 = b.reshape(1, N).astype(jnp.float32)

    flops = 2 * Mp * K * N
    transcendentals = Mp * N if act == "sigmoid" else 0
    bytes_accessed = int(
        Mp * K * 2 + K * N * 2 + N * 4 + Mp * N * jnp.dtype(out_dtype).itemsize
    )

    out = pl.pallas_call(
        functools.partial(_gemm_bias_act_kernel, act=act),
        out_shape=jax.ShapeDtypeStruct((Mp, N), out_dtype),
        grid=(Mp // TM,),
        in_specs=[
            pl.BlockSpec((TM, K), lambda i: (i, 0)),   # A tile, pipelined over M
            pl.BlockSpec((K, N), lambda i: (0, 0)),    # W resident
            pl.BlockSpec((1, N), lambda i: (0, 0)),    # bias resident
        ],
        out_specs=pl.BlockSpec((TM, N), lambda i: (i, 0)),
        compiler_params=pltpu.CompilerParams(
            dimension_semantics=("parallel",),
            vmem_limit_bytes=32 * 1024 * 1024,
        ),
        cost_estimate=pl.CostEstimate(
            flops=flops,
            transcendentals=transcendentals,
            bytes_accessed=bytes_accessed,
        ),
    )(a, w, b2)

    return out[:M] if Mp != M else out


# ---------------------------------------------------------------------------
# Glue: NHWC im2col (strided slices + concat, no transposes) and conv wrapper
# ---------------------------------------------------------------------------
def _im2col_nhwc(x, kh, kw, stride, pad, k_pad_to):
    """x: (N, H, W, C) -> (N*OH*OW, k_pad_to) with column order (kh, kw, c)."""
    N, H, W, C = x.shape
    xp = jnp.pad(x, ((0, 0), (pad, pad), (pad, pad), (0, 0)))
    OH = (H + 2 * pad - kh) // stride + 1
    OW = (W + 2 * pad - kw) // stride + 1
    cols = []
    for i in range(kh):
        for j in range(kw):
            cols.append(xp[:, i:i + stride * OH:stride, j:j + stride * OW:stride, :])
    K = kh * kw * C
    if k_pad_to > K:                       # zero-pad K inside the concat (free)
        cols.append(jnp.zeros((N, OH, OW, k_pad_to - K), x.dtype))
    a = jnp.concatenate(cols, axis=-1).reshape(N * OH * OW, k_pad_to)
    return a, OH, OW


def conv2d_nhwc(x, w, b, stride, pad, act, *, tm=1024):
    """x: (N, H, W, Cin) NHWC.  w: (Cout, Cin, KH, KW) PyTorch layout.

    Returns NHWC output in bf16.
    """
    Cout, Cin, KH, KW = w.shape
    N = x.shape[0]
    K = Cin * KH * KW
    Kp = _round_up(K, 128)
    a, OH, OW = _im2col_nhwc(x, KH, KW, stride, pad, Kp)
    # Flatten weights to match the (kh, kw, c) column order of the im2col.
    wmat = jnp.transpose(w, (2, 3, 1, 0)).reshape(K, Cout)
    wmat = jnp.pad(wmat, ((0, Kp - K), (0, 0)))
    out = gemm_bias_act(a, wmat, b, act, out_dtype=jnp.bfloat16, tm=tm)
    return out.reshape(N, OH, OW, Cout)


# ---------------------------------------------------------------------------
# Discriminator
# ---------------------------------------------------------------------------
def init_params(key):
    ks = jax.random.split(key, 6)
    feat = (img_height // 4) * (img_width // 4) * BASE * 2   # 7*7*128 = 6272
    return {
        "w1": jax.random.normal(ks[0], (BASE, channel + class_N, 5, 5), jnp.float32) * 0.05,
        "b1": jax.random.normal(ks[1], (BASE,), jnp.float32) * 0.05,
        "w2": jax.random.normal(ks[2], (BASE * 2, BASE, 5, 5), jnp.float32) * 0.02,
        "b2": jax.random.normal(ks[3], (BASE * 2,), jnp.float32) * 0.02,
        "w5": jax.random.normal(ks[4], (1, feat), jnp.float32) * 0.01,   # torch Linear: (out, in)
        "b5": jax.random.normal(ks[5], (1,), jnp.float32) * 0.01,
    }


def discriminator_forward(params, x):
    # x: (N, 11, 28, 28) NCHW f32 (PyTorch interface). One transpose to NHWC,
    # then activations stay NHWC / bf16 end-to-end.
    x = jnp.transpose(x, (0, 2, 3, 1)).astype(jnp.bfloat16)

    h = conv2d_nhwc(x, params["w1"], params["b1"], stride=2, pad=2,
                    act="leaky_relu", tm=1024)                 # (N,14,14,64)
    h = conv2d_nhwc(h, params["w2"], params["b2"], stride=2, pad=2,
                    act="leaky_relu", tm=1024)                 # (N,7,7,128)

    n = h.shape[0]
    HH = img_height // 4
    WW = img_width // 4
    C2 = BASE * 2
    flat = h.reshape(n, HH * WW * C2)                          # NHWC flatten (h,w,c)

    # torch .view flattens NCHW (c,h,w); permute w5's columns once so the
    # NHWC-flattened activations multiply the right weights.
    w5_nhwc = (params["w5"].reshape(1, C2, HH, WW)
               .transpose(0, 2, 3, 1).reshape(1, HH * WW * C2))
    # Pad N from 1 -> 128 for a lane-dense store; extra columns sliced below.
    wmat = jnp.pad(w5_nhwc.T, ((0, 0), (0, 127)))              # (6272, 128)
    bvec = jnp.pad(params["b5"], (0, 127))                     # (128,)

    # K = 6272 is already a multiple of 128.
    out = gemm_bias_act(flat, wmat, bvec, "sigmoid",
                        out_dtype=jnp.float32, tm=512)         # (N, 128)
    return out[:, :1]


if __name__ == "__main__":
    key = jax.random.PRNGKey(0)
    pkey, xkey = jax.random.split(key)
    params = init_params(pkey)

    # MNIST-sized cGAN discriminator input: image (1 ch) + one-hot class maps (10 ch)
    x = jax.random.normal(xkey, (2, channel + class_N, img_height, img_width), jnp.float32)

    fwd = jax.jit(discriminator_forward)
    y = jax.block_until_ready(fwd(params, x))

    assert y.shape == (2, 1), y.shape
    assert y.dtype == jnp.float32
    assert bool(jnp.all(jnp.isfinite(y)))
    assert bool(jnp.all((y >= 0.0) & (y <= 1.0)))  # sigmoid output range
    print("KERNEL_OK")
</pallas_src>

<mosaic_0001>
module attributes {stable_mosaic.version = 11 : i64} {
  func.func @_gemm_bias_act_kernel(%arg0: i32, %arg1: memref<392x384xbf16, #tpu.memory_space<vmem>>, %arg2: memref<384x64xbf16, #tpu.memory_space<vmem>>, %arg3: memref<1x64xf32, #tpu.memory_space<vmem>>, %arg4: memref<392x64xbf16, #tpu.memory_space<vmem>>) attributes {dimension_semantics = [#tpu.dimension_semantics<parallel>], iteration_bounds = array<i64: 1>, scalar_prefetch = 0 : i64, scratch_operands = 0 : i64, tpu.core_type = #tpu.core_type<tc>, window_params = [{transform_indices = @transform_0, window_bounds = array<i64: 392, 384>}, {pipeline_mode = #tpu.pipeline_mode<synchronous>, transform_indices = @transform_1, window_bounds = array<i64: 384, 64>}, {pipeline_mode = #tpu.pipeline_mode<synchronous>, transform_indices = @transform_2, window_bounds = array<i64: 1, 64>}, {transform_indices = @transform_3, window_bounds = array<i64: 392, 64>}]} {
    %c0 = arith.constant 0 : index
    %c0_0 = arith.constant 0 : index
    %0 = vector.load %arg1[%c0, %c0_0] : memref<392x384xbf16, #tpu.memory_space<vmem>>, vector<392x384xbf16>
    %c0_1 = arith.constant 0 : index
    %c0_2 = arith.constant 0 : index
    %1 = vector.load %arg2[%c0_1, %c0_2] : memref<384x64xbf16, #tpu.memory_space<vmem>>, vector<384x64xbf16>
    %cst = arith.constant dense<0.000000e+00> : vector<392x64xf32>
    %2 = tpu.matmul %0, %1, %cst {dimension_numbers = #tpu.dot_dimension_numbers<[1], [0], [0], [1], [0, 0, 1, 1], [], []>} : vector<392x384xbf16>, vector<384x64xbf16>, vector<392x64xf32> -> vector<392x64xf32>
    %c0_3 = arith.constant 0 : index
    %c0_4 = arith.constant 0 : index
    %3 = vector.load %arg3[%c0_3, %c0_4] : memref<1x64xf32, #tpu.memory_space<vmem>>, vector<1x64xf32>
    %4 = vector.broadcast %3 : vector<1x64xf32> to vector<392x64xf32>
    %5 = arith.addf %2, %4 : vector<392x64xf32>
    %cst_5 = arith.constant 0.000000e+00 : f32
    %6 = vector.broadcast %cst_5 : f32 to vector<392x64xf32>
    %7 = arith.cmpf ogt, %5, %6 : vector<392x64xf32>
    %cst_6 = arith.constant 2.000000e-01 : f32
    %8 = vector.broadcast %cst_6 : f32 to vector<392x64xf32>
    %9 = arith.mulf %8, %5 : vector<392x64xf32>
    %10 = arith.select %7, %5, %9 : vector<392x64xi1>, vector<392x64xf32>
    %11 = arith.truncf %10 : vector<392x64xf32> to vector<392x64xbf16>
    %c0_7 = arith.constant 0 : index
    %c0_8 = arith.constant 0 : index
    %12 = vector.load %arg4[%c0_7, %c0_8] : memref<392x64xbf16, #tpu.memory_space<vmem>>, vector<392x64xbf16>
    tpu.vector_store %arg4[%c0_7, %c0_8], %11 {strides = array<i32>} : memref<392x64xbf16, #tpu.memory_space<vmem>>, vector<392x64xbf16>,
    return
  }
  func.func @transform_0(%arg0: i32) -> (i32, i32) {
    %c0_i32 = arith.constant 0 : i32
    %c0_i32_0 = arith.constant 0 : i32
    return %arg0, %c0_i32 : i32, i32
  }
  func.func @transform_1(%arg0: i32) -> (i32, i32) {
    %c0_i32 = arith.constant 0 : i32
    %c0_i32_0 = arith.constant 0 : i32
    %c0_i32_1 = arith.constant 0 : i32
    return %c0_i32, %c0_i32_0 : i32, i32
  }
  func.func @transform_2(%arg0: i32) -> (i32, i32) {
    %c0_i32 = arith.constant 0 : i32
    %c0_i32_0 = arith.constant 0 : i32
    %c0_i32_1 = arith.constant 0 : i32
    return %c0_i32, %c0_i32_0 : i32, i32
  }
  func.func @transform_3(%arg0: i32) -> (i32, i32) {
    %c0_i32 = arith.constant 0 : i32
    %c0_i32_0 = arith.constant 0 : i32
    return %arg0, %c0_i32 : i32, i32
  }
}

module attributes {stable_mosaic.version = 11 : i64} {
  func.func @_gemm_bias_act_kernel(%arg0: i32, %arg1: memref<104x1664xbf16, #tpu.memory_space<vmem>>, %arg2: memref<1664x128xbf16, #tpu.memory_space<vmem>>, %arg3: memref<1x128xf32, #tpu.memory_space<vmem>>, %arg4: memref<104x128xbf16, #tpu.memory_space<vmem>>) attributes {dimension_semantics = [#tpu.dimension_semantics<parallel>], iteration_bounds = array<i64: 1>, scalar_prefetch = 0 : i64, scratch_operands = 0 : i64, tpu.core_type = #tpu.core_type<tc>, window_params = [{transform_indices = @transform_0, window_bounds = array<i64: 104, 1664>}, {pipeline_mode = #tpu.pipeline_mode<synchronous>, transform_indices = @transform_1, window_bounds = array<i64: 1664, 128>}, {pipeline_mode = #tpu.pipeline_mode<synchronous>, transform_indices = @transform_2, window_bounds = array<i64: 1, 128>}, {transform_indices = @transform_3, window_bounds = array<i64: 104, 128>}]} {
    %c0 = arith.constant 0 : index
    %c0_0 = arith.constant 0 : index
    %0 = vector.load %arg1[%c0, %c0_0] : memref<104x1664xbf16, #tpu.memory_space<vmem>>, vector<104x1664xbf16>
    %c0_1 = arith.constant 0 : index
    %c0_2 = arith.constant 0 : index
    %1 = vector.load %arg2[%c0_1, %c0_2] : memref<1664x128xbf16, #tpu.memory_space<vmem>>, vector<1664x128xbf16>
    %cst = arith.constant dense<0.000000e+00> : vector<104x128xf32>
    %2 = tpu.matmul %0, %1, %cst {dimension_numbers = #tpu.dot_dimension_numbers<[1], [0], [0], [1], [0, 0, 1, 1], [], []>} : vector<104x1664xbf16>, vector<1664x128xbf16>, vector<104x128xf32> -> vector<104x128xf32>
    %c0_3 = arith.constant 0 : index
    %c0_4 = arith.constant 0 : index
    %3 = vector.load %arg3[%c0_3, %c0_4] : memref<1x128xf32, #tpu.memory_space<vmem>>, vector<1x128xf32>
    %4 = vector.broadcast %3 : vector<1x128xf32> to vector<104x128xf32>
    %5 = arith.addf %2, %4 : vector<104x128xf32>
    %cst_5 = arith.constant 0.000000e+00 : f32
    %6 = vector.broadcast %cst_5 : f32 to vector<104x128xf32>
    %7 = arith.cmpf ogt, %5, %6 : vector<104x128xf32>
    %cst_6 = arith.constant 2.000000e-01 : f32
    %8 = vector.broadcast %cst_6 : f32 to vector<104x128xf32>
    %9 = arith.mulf %8, %5 : vector<104x128xf32>
    %10 = arith.select %7, %5, %9 : vector<104x128xi1>, vector<104x128xf32>
    %11 = arith.truncf %10 : vector<104x128xf32> to vector<104x128xbf16>
    %c0_7 = arith.constant 0 : index
    %c0_8 = arith.constant 0 : index
    %12 = vector.load %arg4[%c0_7, %c0_8] : memref<104x128xbf16, #tpu.memory_space<vmem>>, vector<104x128xbf16>
    tpu.vector_store %arg4[%c0_7, %c0_8], %11 {strides = array<i32>} : memref<104x128xbf16, #tpu.memory_space<vmem>>, vector<104x128xbf16>,
    return
  }
  func.func @transform_0(%arg0: i32) -> (i32, i32) {
    %c0_i32 = arith.constant 0 : i32
    %c0_i32_0 = arith.constant 0 : i32
    return %arg0, %c0_i32 : i32, i32
  }
  func.func @transform_1(%arg0: i32) -> (i32, i32) {
    %c0_i32 = arith.constant 0 : i32
    %c0_i32_0 = arith.constant 0 : i32
    %c0_i32_1 = arith.constant 0 : i32
    return %c0_i32, %c0_i32_0 : i32, i32
  }
  func.func @transform_2(%arg0: i32) -> (i32, i32) {
    %c0_i32 = arith.constant 0 : i32
    %c0_i32_0 = arith.constant 0 : i32
    %c0_i32_1 = arith.constant 0 : i32
    return %c0_i32, %c0_i32_0 : i32, i32
  }
  func.func @transform_3(%arg0: i32) -> (i32, i32) {
    %c0_i32 = arith.constant 0 : i32
    %c0_i32_0 = arith.constant 0 : i32
    return %arg0, %c0_i32 : i32, i32
  }
}

module attributes {stable_mosaic.version = 11 : i64} {
  func.func @_gemm_bias_act_kernel(%arg0: i32, %arg1: memref<8x6272xbf16, #tpu.memory_space<vmem>>, %arg2: memref<6272x128xbf16, #tpu.memory_space<vmem>>, %arg3: memref<1x128xf32, #tpu.memory_space<vmem>>, %arg4: memref<8x128xf32, #tpu.memory_space<vmem>>) attributes {dimension_semantics = [#tpu.dimension_semantics<parallel>], iteration_bounds = array<i64: 1>, scalar_prefetch = 0 : i64, scratch_operands = 0 : i64, tpu.core_type = #tpu.core_type<tc>, window_params = [{transform_indices = @transform_0, window_bounds = array<i64: 8, 6272>}, {pipeline_mode = #tpu.pipeline_mode<synchronous>, transform_indices = @transform_1, window_bounds = array<i64: 6272, 128>}, {pipeline_mode = #tpu.pipeline_mode<synchronous>, transform_indices = @transform_2, window_bounds = array<i64: 1, 128>}, {transform_indices = @transform_3, window_bounds = array<i64: 8, 128>}]} {
    %c0 = arith.constant 0 : index
    %c0_0 = arith.constant 0 : index
    %0 = vector.load %arg1[%c0, %c0_0] : memref<8x6272xbf16, #tpu.memory_space<vmem>>, vector<8x6272xbf16>
    %c0_1 = arith.constant 0 : index
    %c0_2 = arith.constant 0 : index
    %1 = vector.load %arg2[%c0_1, %c0_2] : memref<6272x128xbf16, #tpu.memory_space<vmem>>, vector<6272x128xbf16>
    %cst = arith.constant dense<0.000000e+00> : vector<8x128xf32>
    %2 = tpu.matmul %0, %1, %cst {dimension_numbers = #tpu.dot_dimension_numbers<[1], [0], [0], [1], [0, 0, 1, 1], [], []>} : vector<8x6272xbf16>, vector<6272x128xbf16>, vector<8x128xf32> -> vector<8x128xf32>
    %c0_3 = arith.constant 0 : index
    %c0_4 = arith.constant 0 : index
    %3 = vector.load %arg3[%c0_3, %c0_4] : memref<1x128xf32, #tpu.memory_space<vmem>>, vector<1x128xf32>
    %4 = vector.broadcast %3 : vector<1x128xf32> to vector<8x128xf32>
    %5 = arith.addf %2, %4 : vector<8x128xf32>
    %cst_5 = arith.constant 0.000000e+00 : f32
    %6 = vector.broadcast %cst_5 : f32 to vector<8x128xf32>
    %7 = arith.subf %6, %5 : vector<8x128xf32>
    %8 = math.exp %7 : vector<8x128xf32>
    %cst_6 = arith.constant 1.000000e+00 : f32
    %9 = vector.broadcast %cst_6 : f32 to vector<8x128xf32>
    %10 = arith.addf %9, %8 : vector<8x128xf32>
    %cst_7 = arith.constant 1.000000e+00 : f32
    %11 = vector.broadcast %cst_7 : f32 to vector<8x128xf32>
    %12 = arith.divf %11, %10 : vector<8x128xf32>
    %c0_8 = arith.constant 0 : index
    %c0_9 = arith.constant 0 : index
    %13 = vector.load %arg4[%c0_8, %c0_9] : memref<8x128xf32, #tpu.memory_space<vmem>>, vector<8x128xf32>
    tpu.vector_store %arg4[%c0_8, %c0_9], %12 {strides = array<i32>} : memref<8x128xf32, #tpu.memory_space<vmem>>, vector<8x128xf32>,
    return
  }
  func.func @transform_0(%arg0: i32) -> (i32, i32) {
    %c0_i32 = arith.constant 0 : i32
    %c0_i32_0 = arith.constant 0 : i32
    return %arg0, %c0_i32 : i32, i32
  }
  func.func @transform_1(%arg0: i32) -> (i32, i32) {
    %c0_i32 = arith.constant 0 : i32
    %c0_i32_0 = arith.constant 0 : i32
    %c0_i32_1 = arith.constant 0 : i32
    return %c0_i32, %c0_i32_0 : i32, i32
  }
  func.func @transform_2(%arg0: i32) -> (i32, i32) {
    %c0_i32 = arith.constant 0 : i32
    %c0_i32_0 = arith.constant 0 : i32
    %c0_i32_1 = arith.constant 0 : i32
    return %c0_i32, %c0_i32_0 : i32, i32
  }
  func.func @transform_3(%arg0: i32) -> (i32, i32) {
    %c0_i32 = arith.constant 0 : i32
    %c0_i32_0 = arith.constant 0 : i32
    return %arg0, %c0_i32 : i32, i32
  }
}

</mosaic_0001>

<bundles_post_ra>
// kernel: discriminator_forward.3
= control target key start
LH: loop header
LB: loop body
LE: loop exit
PB: predicated region body
PF: predicated region fallthrough
CT: control target
= control target key end

     0   :  { %v2141_v0 = vmov 0   ;;  %v2142_v2 = vmov 0.0   ;;  %vm2143_vm0 = vmmov 0   ;;  %vm1515_vm2 = vcmask 519168   ;;  %s2916_s1 = inlined_call_operand.vmem [shape: bf16[384,64], index: 1, kind: input, shape index: {}]   ;;  %s2917_s0 = inlined_call_operand.vmem [shape: bf16[392,384], index: 0, kind: input, shape index: {}]   ;;  %s2918_s2 = inlined_call_operand.vmem [shape: f32[1,64], index: 2, kind: input, shape index: {}]   ;;  %s2919_s3 = inlined_call_operand.vmem [shape: bf16[392,64], index: 3, kind: output, shape index: {}]  }
   0x1   :  { %707 = vmatprep.subr.bf16.mxu1 %v2141_v0  ;;  %v2017_v1 = vld [vmem:[%s2916_s1] sm:$0xff]   ;;  %1800 = vmatprep.subr.bf16.mxu0 %v2142_v2  ;;  %v2018_v3 = vld [vmem:[%s2916_s1 + $0x8] sm:$0xff]   ;;  %v2019_v4 = vld [vmem:[%s2916_s1 + $0x10] sm:$0xff]  }
   0x2   :  { %1816 = vmatprep.mubr.msk.bf16.mxu0 %vm2143_vm0, %v2142_v2  ;;  %708 = vmatpush1.bf16.msra.mxu1 %v2017_v1  ;;  %v2025_v5 = vld [vmem:[%s2916_s1 + $0x80] sm:$0xff]   ;;  %v2020_v6 = vld [vmem:[%s2916_s1 + $0x18] sm:$0xff]   ;;  %v2027_v7 = vld [vmem:[%s2916_s1 + $0x88] sm:$0xff]  }
   0x3   :  { %709 = vmatprep.subr.bf16.mxu1 %v2141_v0  ;;  %1801 = vmatpush3.bf16.msra.mxu0 %v2025_v5  ;;  %v2021_v8 = vld [vmem:[%s2916_s1 + $0x20] sm:$0xff]   ;;  %v2029_v9 = vld [vmem:[%s2916_s1 + $0x90] sm:$0xff]   ;;  %v2022_v10 = vld [vmem:[%s2916_s1 + $0x28] sm:$0xff]  }
   0x4   :  { %1802 = vmatprep.subr.bf16.mxu0 %v2142_v2  ;;  %v2031_v11 = vld [vmem:[%s2916_s1 + $0x98] sm:$0xff]   ;;  %v2023_v12 = vld [vmem:[%s2916_s1 + $0x30] sm:$0xff]   ;;  %v2033_v13 = vld [vmem:[%s2916_s1 + $0xa0] sm:$0xff]  }
   0x5   :  { %v2024_v14 = vld [vmem:[%s2916_s1 + $0x38] sm:$0xff]   ;;  %v2043_v15 = vld [vmem:[%s2917_s0 + $0x4] ss:$12 sps:$4 sm:$0xff]   ;;  %v2035_v16 = vld [vmem:[%s2916_s1 + $0xa8] sm:$0xff]  }
   0x6   :  { %710 = vmatpush1.bf16.msra.mxu1 %v2018_v3  ;;  %739 = vmatprep.mubr.bf16.mxu1 %v2043_v15  ;;  %v2026_v17 = vld [vmem:[%s2916_s1 + $0x40] sm:$0xff]   ;;  %v2037_v18 = vld [vmem:[%s2916_s1 + $0xb0] sm:$0xff]   ;;  %v2028_v19 = vld [vmem:[%s2916_s1 + $0x48] sm:$0xff]  }
   0x7   :  { %711 = vmatprep.subr.bf16.mxu1 %v2141_v0  ;;  %1803 = vmatpush3.bf16.msra.mxu0 %v2027_v7  ;;  %v2039_v20 = vld [vmem:[%s2916_s1 + $0xb8] sm:$0xff]   ;;  %v2044_v21 = vld [vmem:[%s2917_s0 + $0x8] ss:$12 sps:$4 sm:$0xff]   ;;  %v2047_v24 = vld [vmem:[%s2917_s0 + $0x20] ss:$12 sps:$4 sm:$0xff]  }
   0x8   :  { %1804 = vmatprep.subr.bf16.mxu0 %v2142_v2  ;;  %v2030_v22 = vld [vmem:[%s2916_s1 + $0x50] sm:$0xff]   ;;  %v2032_v23 = vld [vmem:[%s2916_s1 + $0x58] sm:$0xff]   ;;  %v2034_v25 = vld [vmem:[%s2916_s1 + $0x60] sm:$0xff]  }
   0x9   :  { %v2036_v26 = vld [vmem:[%s2916_s1 + $0x68] sm:$0xff]   ;;  %v2051_v27 = vld [vmem:[%s2917_s0 + $0x38] ss:$12 sps:$4 sm:$0xff]   ;;  %v2038_v28 = vld [vmem:[%s2916_s1 + $0x70] sm:$0xff]  }
   0xa   :  { %712 = vmatpush1.bf16.msra.mxu1 %v2019_v4  ;;  %v2040_v29 = vld [vmem:[%s2916_s1 + $0x78] sm:$0xff]   ;;  %v2041_v30 = vld [vmem:[%s2917_s0] ss:$12 sps:$4 sm:$0xff]   ;;  %v2059_v34 = vld [vmem:[%s2917_s0 + $0x68] ss:$12 sps:$4 sm:$0xff]  }
   0xb   :  { %713 = vmatprep.subr.bf16.mxu1 %v2141_v0  ;;  %1805 = vmatpush3.bf16.msra.mxu0 %v2029_v9  ;;  %v2055_v31 = vld [vmem:[%s2917_s0 + $0x50] ss:$12 sps:$4 sm:$0xff]   ;;  %v2048_v33 = vld [vmem:[%s2917_s0 + $0x18] ss:$12 sps:$4 sm:$0xff]   ;;  %v2049_v35 = vld [vmem:[%s2917_s0 + $0x34] ss:$12 sps:$4 sm:$0xff]  }
   0xc   :  { %1806 = vmatprep.subr.bf16.mxu0 %v2142_v2  ;;  %v2045_v32 = vld [vmem:[%s2917_s0 + $0x1c] ss:$12 sps:$4 sm:$0xff]   ;;  %v2063_v37 = vld [vmem:[%s2917_s0 + $0x80] ss:$12 sps:$4 sm:$0xff]   ;;  %v2067_v40 = vld [vmem:[%s2917_s0 + $0x98] ss:$12 sps:$4 sm:$0xff]  }
   0xd   :  { %v2052_v36 = vld [vmem:[%s2917_s0 + $0x30] ss:$12 sps:$4 sm:$0xff]   ;;  %v2053_v38 = vld [vmem:[%s2917_s0 + $0x4c] ss:$12 sps:$4 sm:$0xff]   ;;  %v2056_v39 = vld [vmem:[%s2917_s0 + $0x48] ss:$12 sps:$4 sm:$0xff]  }
   0xe   :  { %714 = vmatpush1.bf16.msra.mxu1 %v2020_v6  ;;  %v2057_v41 = vld [vmem:[%s2917_s0 + $0x64] ss:$12 sps:$4 sm:$0xff]   ;;  %v2060_v42 = vld [vmem:[%s2917_s0 + $0x60] ss:$12 sps:$4 sm:$0xff]   ;;  %v2061_v44 = vld [vmem:[%s2917_s0 + $0x7c] ss:$12 sps:$4 sm:$0xff]  }
   0xf   :  { %715 = vmatprep.subr.bf16.mxu1 %v2141_v0  ;;  %1807 = vmatpush3.bf16.msra.mxu0 %v2031_v11  ;;  %v2071_v43 = vld [vmem:[%s2917_s0 + $0xb0] ss:$12 sps:$4 sm:$0xff]   ;;  %v2064_v45 = vld [vmem:[%s2917_s0 + $0x78] ss:$12 sps:$4 sm:$0xff]   ;;  %v2075_v46 = vld [vmem:[%s2917_s0 + $0xc8] ss:$12 sps:$4 sm:$0xff]  }
  0x10   :  { %1808 = vmatprep.subr.bf16.mxu0 %v2142_v2  ;;  %v2065_v47 = vld [vmem:[%s2917_s0 + $0x94] ss:$12 sps:$4 sm:$0xff]   ;;  %v2068_v48 = vld [vmem:[%s2917_s0 + $0x90] ss:$12 sps:$4 sm:$0xff]   ;;  %v2069_v50 = vld [vmem:[%s2917_s0 + $0xac] ss:$12 sps:$4 sm:$0xff]  }
  0x11   :  { %v2079_v49 = vld [vmem:[%s2917_s0 + $0xe0] ss:$12 sps:$4 sm:$0xff]   ;;  %v2072_v51 = vld [vmem:[%s2917_s0 + $0xa8] ss:$12 sps:$4 sm:$0xff]   ;;  %v2083_v52 = vld [vmem:[%s2917_s0 + $0xf8] ss:$12 sps:$4 sm:$0xff]  }
  0x12   :  { %716 = vmatpush1.bf16.msra.mxu1 %v2021_v8  ;;  %v2073_v53 = vld [vmem:[%s2917_s0 + $0xc4] ss:$12 sps:$4 sm:$0xff]   ;;  %v2076_v54 = vld [vmem:[%s2917_s0 + $0xc0] ss:$12 sps:$4 sm:$0xff]   ;;  %v2077_v56 = vld [vmem:[%s2917_s0 + $0xdc] ss:$12 sps:$4 sm:$0xff]  }
  0x13   :  { %717 = vmatprep.subr.bf16.mxu1 %v2141_v0  ;;  %1809 = vmatpush3.bf16.msra.mxu0 %v2033_v13  ;;  %v2087_v55 = vld [vmem:[%s2917_s0 + $0x110] ss:$12 sps:$4 sm:$0xff]   ;;  %v2080_v57 = vld [vmem:[%s2917_s0 + $0xd8] ss:$12 sps:$4 sm:$0xff]   ;;  %v2091_v58 = vld [vmem:[%s2917_s0 + $0x128] ss:$12 sps:$4 sm:$0xff]  }
  0x14   :  { %1810 = vmatprep.subr.bf16.mxu0 %v2142_v2  ;;  %v2081_v59 = vld [vmem:[%s2917_s0 + $0xf4] ss:$12 sps:$4 sm:$0xff]   ;;  %v2084_v60 = vld [vmem:[%s2917_s0 + $0xf0] ss:$12 sps:$4 sm:$0xff]   ;;  %v2085_v62 = vld [vmem:[%s2917_s0 + $0x10c] ss:$12 sps:$4 sm:$0xff]  }
  0x15   :  { %v2095_v61 = vld [vmem:[%s2917_s0 + $0x140] ss:$12 sps:$4 sm:$0xff]   ;;  %v2088_v63 = vld [vmem:[%s2917_s0 + $0x108] ss:$12 sps:$4 sm:$0xff]   ;;  %v2089_v1 = vld [vmem:[%s2917_s0 + $0x124] ss:$12 sps:$4 sm:$0xff]  }
  0x16   :  { %718 = vmatpush1.bf16.msra.mxu1 %v2022_v10  ;;  %v2092_v3 = vld [vmem:[%s2917_s0 + $0x120] ss:$12 sps:$4 sm:$0xff]   ;;  %v2103_v4 = vld [vmem:[%s2917_s0 + $0x170] ss:$12 sps:$4 sm:$0xff]   ;;  %v2096_v6 = vld [vmem:[%s2917_s0 + $0x138] ss:$12 sps:$4 sm:$0xff]  }
  0x17   :  { %719 = vmatprep.subr.bf16.mxu1 %v2141_v0  ;;  %1811 = vmatpush3.bf16.msra.mxu0 %v2035_v16  ;;  %v2093_v5 = vld [vmem:[%s2917_s0 + $0x13c] ss:$12 sps:$4 sm:$0xff]   ;;  %v2097_v8 = vld [vmem:[%s2917_s0 + $0x154] ss:$12 sps:$4 sm:$0xff]   ;;  %v2101_v11 = vld [vmem:[%s2917_s0 + $0x16c] ss:$12 sps:$4 sm:$0xff]  }
  0x18   :  { %1812 = vmatprep.subr.bf16.mxu0 %v2142_v2  ;;  %v2107_v7 = vld [vmem:[%s2917_s0 + $0x188] ss:$12 sps:$4 sm:$0xff]   ;;  %v2100_v9 = vld [vmem:[%s2917_s0 + $0x150] ss:$12 sps:$4 sm:$0xff]   ;;  %v2111_v10 = vld [vmem:[%s2917_s0 + $0x1a0] ss:$12 sps:$4 sm:$0xff]  }
  0x19   :  { %v2115_v13 = vld [vmem:[%s2917_s0 + $0x1b8] ss:$12 sps:$4 sm:$0xff]   ;;  %v2108_v15 = vld [vmem:[%s2917_s0 + $0x180] ss:$12 sps:$4 sm:$0xff]   ;;  %v2119_v16 = vld [vmem:[%s2917_s0 + $0x1d0] ss:$12 sps:$4 sm:$0xff]  }
  0x1a   :  { %720 = vmatpush1.bf16.msra.mxu1 %v2023_v12  ;;  %v2104_v12 = vld [vmem:[%s2917_s0 + $0x168] ss:$12 sps:$4 sm:$0xff]  }
  0x1b   :  { %721 = vmatprep.subr.bf16.mxu1 %v2141_v0  ;;  %1813 = vmatpush3.bf16.msra.mxu0 %v2037_v18  ;;  %v2112_v18 = vld [vmem:[%s2917_s0 + $0x198] ss:$12 sps:$4 sm:$0xff]  }
  0x1c   :  { %1814 = vmatprep.subr.bf16.mxu0 %v2142_v2 }
  0x1e   :  { %722 = vmatpush1.bf16.msra.mxu1 %v2024_v14  ;;  %v2105_v14 = vld [vmem:[%s2917_s0 + $0x184] ss:$12 sps:$4 sm:$0xff]  }
  0x1f   :  { %723 = vmatprep.subr.bf16.mxu1 %v2141_v0  ;;  %1815 = vmatpush3.bf16.msra.mxu0 %v2039_v20  ;;  %v2113_v20 = vld [vmem:[%s2917_s0 + $0x1b4] ss:$12 sps:$4 sm:$0xff]  }
  0x22   :  { %724 = vmatpush1.bf16.msra.mxu1 %v2026_v17  ;;  %1817 = vmatmul.mubr.bf16.vlgmr.msra.gmra.mrb[0].mxu0 %v2044_v21  ;;  %v2109_v17 = vld [vmem:[%s2917_s0 + $0x19c] ss:$12 sps:$4 sm:$0xff]  }
  0x23   :  { %725 = vmatprep.subr.bf16.mxu1 %v2141_v0  ;;  %1820 = vmatprep.mubr.msk.bf16.mxu0 %vm2143_vm0, %v2142_v2  ;;  %v2116_v21 = vld [vmem:[%s2917_s0 + $0x1b0] ss:$12 sps:$4 sm:$0xff]  }
  0x26   :  { %726 = vmatpush1.bf16.msra.mxu1 %v2028_v19  ;;  %v2123_v19 = vld [vmem:[%s2917_s0 + $0x1e8] ss:$12 sps:$4 sm:$0xff]  }
  0x27   :  { %727 = vmatprep.subr.bf16.mxu1 %v2141_v0 }
  0x2a   :  { %728 = vmatpush1.bf16.msra.mxu1 %v2030_v22  ;;  %1821 = vmatmul.mubr.bf16.gmra.mrb[4].mxu0 %v2047_v24  ;;  %v2127_v22 = vld [vmem:[%s2917_s0 + $0x200] ss:$12 sps:$4 sm:$0xff]   ;;  %v2120_v24 = vld [vmem:[%s2917_s0 + $0x1c8] ss:$12 sps:$4 sm:$0xff]  }
  0x2b   :  { %729 = vmatprep.subr.bf16.mxu1 %v2141_v0  ;;  %1824 = vmatprep.mubr.msk.bf16.mxu0 %vm2143_vm0, %v2142_v2 }
  0x2e   :  { %730 = vmatpush1.bf16.msra.mxu1 %v2032_v23  ;;  %v2117_v23 = vld [vmem:[%s2917_s0 + $0x1cc] ss:$12 sps:$4 sm:$0xff]  }
  0x2f   :  { %731 = vmatprep.subr.bf16.mxu1 %v2141_v0 }
  0x32   :  { %732 = vmatpush1.bf16.msra.mxu1 %v2034_v25  ;;  %1825 = vmatmul.mubr.bf16.gmra.mrb[8].mxu0 %v2051_v27  ;;  %v2131_v25 = vld [vmem:[%s2917_s0 + $0x218] ss:$12 sps:$4 sm:$0xff]   ;;  %v2124_v27 = vld [vmem:[%s2917_s0 + $0x1e0] ss:$12 sps:$4 sm:$0xff]  }
  0x33   :  { %733 = vmatprep.subr.bf16.mxu1 %v2141_v0  ;;  %1828 = vmatprep.mubr.msk.bf16.mxu0 %vm2143_vm0, %v2142_v2 }
  0x36   :  { %734 = vmatpush1.bf16.msra.mxu1 %v2036_v26  ;;  %v2121_v26 = vld [vmem:[%s2917_s0 + $0x1e4] ss:$12 sps:$4 sm:$0xff]  }
  0x37   :  { %735 = vmatprep.subr.bf16.mxu1 %v2141_v0 }
  0x3a   :  { %736 = vmatpush1.bf16.msra.mxu1 %v2038_v28  ;;  %1829 = vmatmul.mubr.bf16.gmra.mrb[12].mxu0 %v2055_v31  ;;  %v2135_v28 = vld [vmem:[%s2917_s0 + $0x230] ss:$12 sps:$4 sm:$0xff]   ;;  %v2138_v31 = vld [vmem:[%s2917_s0 + $0x248] ss:$0 sps:$4 sm:$0xff]  }
  0x3b   :  { %737 = vmatprep.subr.bf16.mxu1 %v2141_v0  ;;  %1832 = vmatprep.mubr.msk.bf16.mxu0 %vm2143_vm0, %v2142_v2  ;;  %v2099_v0 = vld [vmem:[%s2917_s0 + $0x158] ss:$12 sps:$4 sm:$0xff]  }
  0x3e   :  { %738 = vmatpush1.bf16.msra.mxu1 %v2040_v29  ;;  %v2125_v29 = vld [vmem:[%s2917_s0 + $0x1fc] ss:$12 sps:$4 sm:$0xff]  }
  0x41   :  { %740 = vmatmul.mubr.bf16.vlgmr.msra.gmra.mrb[0].mxu1 %v2041_v30  ;;  %v2128_v30 = vld [vmem:[%s2917_s0 + $0x1f8] ss:$12 sps:$4 sm:$0xff]  }
  0x42   :  { %747 = vmatprep.mubr.bf16.mxu1 %v2045_v32  ;;  %1833 = vmatmul.mubr.bf16.gmra.mrb[16].mxu0 %v2059_v34  ;;  %v2129_v32 = vld [vmem:[%s2917_s0 + $0x214] ss:$12 sps:$4 sm:$0xff]  }
  0x43   :  { %1836 = vmatprep.mubr.msk.bf16.mxu0 %vm2143_vm0, %v2142_v2  ;;  %v111_v34 = vld [vmem:[%s2917_s0 + $0x240] sm:$0xff] }
  0x49   :  { %748 = vmatmul.mubr.bf16.gmra.mrb[4].mxu1 %v2048_v33  ;;  %v2132_v33 = vld [vmem:[%s2917_s0 + $0x210] ss:$12 sps:$4 sm:$0xff]  }
  0x4a   :  { %755 = vmatprep.mubr.bf16.mxu1 %v2049_v35  ;;  %1837 = vmatmul.mubr.bf16.gmra.mrb[20].mxu0 %v2063_v37  ;;  %v2136_v35 = vld [vmem:[%s2917_s0 + $0x228] ss:$12 sps:$4 sm:$0xff]  }
  0x4b   :  { %1840 = vmatprep.mubr.msk.bf16.mxu0 %vm2143_vm0, %v2142_v2 }
  0x51   :  { %756 = vmatmul.mubr.bf16.gmra.mrb[8].mxu1 %v2052_v36  ;;  %v1643_v36 = vcombine.high %v111_v34, %v111_v34 }
  0x52   :  { %763 = vmatprep.mubr.bf16.mxu1 %v2053_v38  ;;  %1841 = vmatmul.mubr.bf16.gmra.mrb[24].mxu0 %v2067_v40  ;;  %v1642_v38 = vcombine.low %v111_v34, %v111_v34 }
  0x53   :  { %1844 = vmatprep.mubr.msk.bf16.mxu0 %vm2143_vm0, %v2142_v2 }
  0x59   :  { %764 = vmatmul.mubr.bf16.gmra.mrb[12].mxu1 %v2056_v39 }
  0x5a   :  { %771 = vmatprep.mubr.bf16.mxu1 %v2057_v41  ;;  %1845 = vmatmul.mubr.bf16.gmra.mrb[28].mxu0 %v2071_v43 }
  0x5b   :  { %1848 = vmatprep.mubr.msk.bf16.mxu0 %vm2143_vm0, %v2142_v2 }
  0x61   :  { %772 = vmatmul.mubr.bf16.gmra.mrb[16].mxu1 %v2060_v42 }
  0x62   :  { %779 = vmatprep.mubr.bf16.mxu1 %v2061_v44  ;;  %1849 = vmatmul.mubr.bf16.gmra.mrb[32].mxu0 %v2075_v46 }
  0x63   :  { %1852 = vmatprep.mubr.msk.bf16.mxu0 %vm2143_vm0, %v2142_v2 }
  0x69   :  { %780 = vmatmul.mubr.bf16.gmra.mrb[20].mxu1 %v2064_v45 }
  0x6a   :  { %787 = vmatprep.mubr.bf16.mxu1 %v2065_v47  ;;  %1853 = vmatmul.mubr.bf16.gmra.mrb[36].mxu0 %v2079_v49 }
  0x6b   :  { %1856 = vmatprep.mubr.msk.bf16.mxu0 %vm2143_vm0, %v2142_v2 }
  0x71   :  { %788 = vmatmul.mubr.bf16.gmra.mrb[24].mxu1 %v2068_v48 }
  0x72   :  { %795 = vmatprep.mubr.bf16.mxu1 %v2069_v50  ;;  %1857 = vmatmul.mubr.bf16.gmra.mrb[40].mxu0 %v2083_v52  ;;  %v2537_v50 = vld [vmem:[%s2918_s2] ss:$0 sm:$0xff] }
  0x73   :  { %1860 = vmatprep.mubr.msk.bf16.mxu0 %vm2143_vm0, %v2142_v2 }
  0x79   :  { %796 = vmatmul.mubr.bf16.gmra.mrb[28].mxu1 %v2072_v51 }
  0x7a   :  { %803 = vmatprep.mubr.bf16.mxu1 %v2073_v53  ;;  %1861 = vmatmul.mubr.bf16.gmra.mrb[44].mxu0 %v2087_v55 }
  0x7b   :  { %1864 = vmatprep.mubr.msk.bf16.mxu0 %vm2143_vm0, %v2142_v2 }
  0x81   :  { %804 = vmatmul.mubr.bf16.gmra.mrb[32].mxu1 %v2076_v54 }
  0x82   :  { %811 = vmatprep.mubr.bf16.mxu1 %v2077_v56  ;;  %1865 = vmatmul.mubr.bf16.gmra.mrb[48].mxu0 %v2091_v58 }
  0x83   :  { %1868 = vmatprep.mubr.msk.bf16.mxu0 %vm2143_vm0, %v2142_v2 }
  0x89   :  { %812 = vmatmul.mubr.bf16.gmra.mrb[36].mxu1 %v2080_v57 }
  0x8a   :  { %819 = vmatprep.mubr.bf16.mxu1 %v2081_v59  ;;  %1869 = vmatmul.mubr.bf16.gmra.mrb[52].mxu0 %v2095_v61 }
  0x8b   :  { %1872 = vmatprep.mubr.msk.bf16.mxu0 %vm2143_vm0, %v2142_v2 }
  0x91   :  { %820 = vmatmul.mubr.bf16.gmra.mrb[40].mxu1 %v2084_v60 }
  0x92   :  { %827 = vmatprep.mubr.bf16.mxu1 %v2085_v62  ;;  %1873 = vmatmul.mubr.bf16.gmra.mrb[56].mxu0 %v2099_v0 }
  0x93   :  { %1876 = vmatprep.mubr.msk.bf16.mxu0 %vm2143_vm0, %v2142_v2 }
  0x99   :  { %828 = vmatmul.mubr.bf16.gmra.mrb[44].mxu1 %v2088_v63 }
  0x9a   :  { %835 = vmatprep.mubr.bf16.mxu1 %v2089_v1  ;;  %1877 = vmatmul.mubr.bf16.gmra.mrb[60].mxu0 %v2103_v4 }
  0x9b   :  { %1880 = vmatprep.mubr.msk.bf16.mxu0 %vm2143_vm0, %v2142_v2 }
  0xa1   :  { %836 = vmatmul.mubr.bf16.gmra.mrb[48].mxu1 %v2092_v3 }
  0xa2   :  { %843 = vmatprep.mubr.bf16.mxu1 %v2093_v5  ;;  %1881 = vmatmul.mubr.bf16.gmra.mrb[64].mxu0 %v2107_v7 }
  0xa3   :  { %1884 = vmatprep.mubr.msk.bf16.mxu0 %vm2143_vm0, %v2142_v2 }
  0xa9   :  { %844 = vmatmul.mubr.bf16.gmra.mrb[52].mxu1 %v2096_v6 }
  0xaa   :  { %851 = vmatprep.mubr.bf16.mxu1 %v2097_v8  ;;  %1885 = vmatmul.mubr.bf16.gmra.mrb[68].mxu0 %v2111_v10 }
  0xab   :  { %1888 = vmatprep.mubr.msk.bf16.mxu0 %vm2143_vm0, %v2142_v2 }
  0xb1   :  { %852 = vmatmul.mubr.bf16.gmra.mrb[56].mxu1 %v2100_v9 }
  0xb2   :  { %859 = vmatprep.mubr.bf16.mxu1 %v2101_v11  ;;  %1889 = vmatmul.mubr.bf16.gmra.mrb[72].mxu0 %v2115_v13 }
  0xb3   :  { %1892 = vmatprep.mubr.msk.bf16.mxu0 %vm2143_vm0, %v2142_v2 }
  0xb9   :  { %860 = vmatmul.mubr.bf16.gmra.mrb[60].mxu1 %v2104_v12 }
  0xba   :  { %867 = vmatprep.mubr.bf16.mxu1 %v2105_v14  ;;  %1893 = vmatmul.mubr.bf16.gmra.mrb[76].mxu0 %v2119_v16 }
  0xbb   :  { %1896 = vmatprep.mubr.msk.bf16.mxu0 %vm2143_vm0, %v2142_v2 }
  0xc1   :  { %868 = vmatmul.mubr.bf16.gmra.mrb[64].mxu1 %v2108_v15 }
  0xc2   :  { %875 = vmatprep.mubr.bf16.mxu1 %v2109_v17  ;;  %1897 = vmatmul.mubr.bf16.gmra.mrb[80].mxu0 %v2123_v19 }
  0xc3   :  { %1900 = vmatprep.mubr.msk.bf16.mxu0 %vm2143_vm0, %v2142_v2 }
  0xc9   :  { %876 = vmatmul.mubr.bf16.gmra.mrb[68].mxu1 %v2112_v18 }
  0xca   :  { %883 = vmatprep.mubr.bf16.mxu1 %v2113_v20  ;;  %1901 = vmatmul.mubr.bf16.gmra.mrb[84].mxu0 %v2127_v22 }
  0xcb   :  { %1904 = vmatprep.mubr.msk.bf16.mxu0 %vm2143_vm0, %v2142_v2 }
  0xd1   :  { %884 = vmatmul.mubr.bf16.gmra.mrb[72].mxu1 %v2116_v21 }
  0xd2   :  { %891 = vmatprep.mubr.bf16.mxu1 %v2117_v23  ;;  %1905 = vmatmul.mubr.bf16.gmra.mrb[88].mxu0 %v2131_v25 }
  0xd3   :  { %1908 = vmatprep.mubr.msk.bf16.mxu0 %vm2143_vm0, %v2142_v2 }
  0xd9   :  { %892 = vmatmul.mubr.bf16.gmra.mrb[76].mxu1 %v2120_v24 }
  0xda   :  { %899 = vmatprep.mubr.bf16.mxu1 %v2121_v26  ;;  %1909 = vmatmul.mubr.bf16.gmra.mrb[92].mxu0 %v2135_v28 }
  0xdb   :  { %1912 = vmatprep.mubr.msk.bf16.mxu0 %vm2143_vm0, %v2142_v2  ;;  %v2133_v2 = vld [vmem:[%s2917_s0 + $0x22c] ss:$12 sps:$4 sm:$0xff]  }
  0xe1   :  { %900 = vmatmul.mubr.bf16.gmra.mrb[80].mxu1 %v2124_v27 }
  0xe2   :  { %907 = vmatprep.mubr.bf16.mxu1 %v2125_v29  ;;  %1913 = vmatmul.mubr.bf16.gmra.mrb[96].mxu0 %v2138_v31 }
  0xe9   :  { %908 = vmatmul.mubr.bf16.gmra.mrb[84].mxu1 %v2128_v30 }
  0xea   :  { %915 = vmatprep.mubr.bf16.mxu1 %v2129_v32 }
  0xf1   :  { %916 = vmatmul.mubr.bf16.gmra.mrb[88].mxu1 %v2132_v33 }
  0xf2   :  { %923 = vmatprep.mubr.bf16.mxu1 %v2133_v2 }
  0xf5   :  { %v973_v37 = vpop.f32.mrb[0].mxu0 }
  0xf6   :  { %v1818_v39 = vpop.f32.mrb[1].mxu0 }
  0xf7   :  { %v976_v40 = vpop.f32.mrb[2].mxu0 }
  0xf8   :  { %v1819_v41 = vpop.f32.mrb[3].mxu0 }
  0xf9   :  { %924 = vmatmul.mubr.bf16.gmra.mrb[92].mxu1 %v2136_v35 }
  0xfa   :  { %931 = vmatprep.mubr.bf16.mxu1 %v1643_v36 }
  0xfd   :  { %v981_v42 = vpop.f32.mrb[4].mxu0 }
  0xfe   :  { %v1822_v43 = vpop.f32.mrb[5].mxu0 }
  0xff   :  { %v984_v44 = vpop.f32.mrb[6].mxu0 }
 0x100   :  { %v1823_v45 = vpop.f32.mrb[7].mxu0 }
 0x101   :  { %932 = vmatmul.mubr.bf16.gmra.mrb[96].mxu1 %v1642_v38 }
 0x105   :  { %v989_v46 = vpop.f32.mrb[8].mxu0 }
 0x106   :  { %v1826_v47 = vpop.f32.mrb[9].mxu0 }
 0x107   :  { %v2532_v48 = vpop.f32.mrb[10].mxu0 }
 0x108   :  { %v1827_v49 = vpop.f32.mrb[11].mxu0 }
 0x10d   :  { %v2539_v52 = vpop.f32.mrb[12].mxu0 }
 0x10e   :  { %v1830_v55 = vpop.f32.mrb[13].mxu0 }
 0x10f   :  { %v2542_v57 = vpop.f32.mrb[14].mxu0 }
 0x110   :  { %v1831_v61 = vpop.f32.mrb[15].mxu0 }
 0x114   :  { %v741_v51 = vpop.f32.mrb[0].mxu1 }
 0x115   :  { %v742_v53 = vadd.f32 %v2537_v50, %v741_v51  ;;  %v743_v54 = vpop.f32.mrb[1].mxu1  ;;  %v2545_v5 = vpop.f32.mrb[16].mxu0 }
 0x116   :  { %v744_v56 = vpop.f32.mrb[2].mxu1  ;;  %v1834_v9 = vpop.f32.mrb[17].mxu0 }
 0x117   :  { %v974_v58 = vadd.f32 %v973_v37, %v742_v53  ;;  %v745_v59 = vadd.f32 %v2537_v50, %v744_v56  ;;  %v746_v60 = vpop.f32.mrb[3].mxu1  ;;  %v2552_v12 = vpop.f32.mrb[18].mxu0 }
 0x118   :  { %v1835_v16 = vpop.f32.mrb[19].mxu0 }
 0x119   :  { %vm1171_vm1 = vcmp.gt.f32.partialorder %v974_v58, 0.0  ;;  %v1220_v62 = vmul.f32 0.2, %v974_v58  ;;  %v977_v63 = vadd.f32 %v976_v40, %v745_v59 }
 0x11b   :  { %v1269_v0 = vsel %vm1171_vm1, %v974_v58, %v1220_v62  ;;  %vm1172_vm3 = vcmp.gt.f32.partialorder %v977_v63, 0.0  ;;  %v1221_v1 = vmul.f32 0.2, %v977_v63 }
 0x11c   :  { %v1718_v3 = vpack.c.bf16 %v1269_v0, %v1269_v0  ;;  %v749_v4 = vpop.f32.mrb[4].mxu1 }
 0x11d   :  { %v1270_v6 = vsel %vm1172_vm3, %v977_v63, %v1221_v1  ;;  %v750_v7 = vadd.f32 %v2537_v50, %v749_v4  ;;  %v751_v8 = vpop.f32.mrb[5].mxu1  ;;  %v2559_v23 = vpop.f32.mrb[20].mxu0 }
 0x11e   :  { %1516 = vst.msk [vmem:[%s2919_s3] sm:$0xf] %vm1515_vm2, %v1718_v3  ;;  %v1719_v10 = vpack.c.bf16 %v1270_v6, %v1270_v6  ;;  %v752_v11 = vpop.f32.mrb[6].mxu1  ;;  %v1838_v27 = vpop.f32.mrb[21].mxu0 }
 0x11f   :  { %v982_v13 = vadd.f32 %v981_v42, %v750_v7  ;;  %v753_v14 = vadd.f32 %v2537_v50, %v752_v11  ;;  %v754_v15 = vpop.f32.mrb[7].mxu1  ;;  %v2566_v30 = vpop.f32.mrb[22].mxu0 }
 0x120   :  { %1517 = vst.msk [vmem:[%s2919_s3 + $0x4] sm:$0xf] %vm1515_vm2, %v1719_v10  ;;  %v1839_v2 = vpop.f32.mrb[23].mxu0 }
 0x121   :  { %vm1173_vm4 = vcmp.gt.f32.partialorder %v982_v13, 0.0  ;;  %v1222_v17 = vmul.f32 0.2, %v982_v13  ;;  %v985_v18 = vadd.f32 %v984_v44, %v753_v14 }
 0x123   :  { %v1271_v19 = vsel %vm1173_vm4, %v982_v13, %v1222_v17  ;;  %vm1174_vm5 = vcmp.gt.f32.partialorder %v985_v18, 0.0  ;;  %v1223_v20 = vmul.f32 0.2, %v985_v18 }
 0x124   :  { %v1720_v21 = vpack.c.bf16 %v1271_v19, %v1271_v19  ;;  %v757_v22 = vpop.f32.mrb[8].mxu1 }
 0x125   :  { %v1272_v24 = vsel %vm1174_vm5, %v985_v18, %v1223_v20  ;;  %v758_v25 = vadd.f32 %v2537_v50, %v757_v22  ;;  %v759_v26 = vpop.f32.mrb[9].mxu1  ;;  %v2574_v40 = vpop.f32.mrb[24].mxu0 }
 0x126   :  { %1518 = vst.msk [vmem:[%s2919_s3 + $0x8] sm:$0xf] %vm1515_vm2, %v1720_v21  ;;  %v1721_v28 = vpack.c.bf16 %v1272_v24, %v1272_v24  ;;  %v760_v29 = vpop.f32.mrb[10].mxu1  ;;  %v1842_v44 = vpop.f32.mrb[25].mxu0 }
 0x127   :  { %v990_v31 = vadd.f32 %v989_v46, %v758_v25  ;;  %v761_v32 = vadd.f32 %v2537_v50, %v760_v29  ;;  %v762_v33 = vpop.f32.mrb[11].mxu1  ;;  %v2581_v47 = vpop.f32.mrb[26].mxu0 }
 0x128   :  { %1519 = vst.msk [vmem:[%s2919_s3 + $0xc] sm:$0xf] %vm1515_vm2, %v1721_v28  ;;  %v1843_v53 = vpop.f32.mrb[27].mxu0 }
 0x129   :  { %vm1175_vm6 = vcmp.gt.f32.partialorder %v990_v31, 0.0  ;;  %v1224_v34 = vmul.f32 0.2, %v990_v31  ;;  %v993_v35 = vadd.f32 %v2532_v48, %v761_v32 }
 0x12b   :  { %v1273_v36 = vsel %vm1175_vm6, %v990_v31, %v1224_v34  ;;  %vm1176_vm7 = vcmp.gt.f32.partialorder %v993_v35, 0.0  ;;  %v1225_v37 = vmul.f32 0.2, %v993_v35 }
 0x12c   :  { %v1722_v38 = vpack.c.bf16 %v1273_v36, %v1273_v36  ;;  %v765_v39 = vpop.f32.mrb[12].mxu1 }
 0x12d   :  { %v1274_v41 = vsel %vm1176_vm7, %v993_v35, %v1225_v37  ;;  %v766_v42 = vadd.f32 %v2537_v50, %v765_v39  ;;  %v767_v43 = vpop.f32.mrb[13].mxu1  ;;  %v2590_v61 = vpop.f32.mrb[28].mxu0 }
 0x12e   :  { %1520 = vst.msk [vmem:[%s2919_s3 + $0x10] sm:$0xf] %vm1515_vm2, %v1722_v38  ;;  %v1723_v45 = vpack.c.bf16 %v1274_v41, %v1274_v41  ;;  %v768_v46 = vpop.f32.mrb[14].mxu1  ;;  %v1846_v0 = vpop.f32.mrb[29].mxu0 }
 0x12f   :  { %v998_v48 = vadd.f32 %v2539_v52, %v766_v42  ;;  %v769_v49 = vadd.f32 %v2537_v50, %v768_v46  ;;  %v770_v51 = vpop.f32.mrb[15].mxu1 }
 0x130   :  { %1521 = vst.msk [vmem:[%s2919_s3 + $0x14] sm:$0xf] %vm1515_vm2, %v1723_v45 }
 0x131   :  { %vm1177_vm8 = vcmp.gt.f32.partialorder %v998_v48, 0.0  ;;  %v1226_v54 = vmul.f32 0.2, %v998_v48  ;;  %v1001_v55 = vadd.f32 %v2542_v57, %v769_v49  ;;  %v2597_v57 = vpop.f32.mrb[30].mxu0 }
 0x132   :  { %v1847_v8 = vpop.f32.mrb[31].mxu0 }
 0x133   :  { %v1275_v56 = vsel %vm1177_vm8, %v998_v48, %v1226_v54  ;;  %vm1178_vm9 = vcmp.gt.f32.partialorder %v1001_v55, 0.0  ;;  %v1227_v58 = vmul.f32 0.2, %v1001_v55 }
 0x134   :  { %v1724_v59 = vpack.c.bf16 %v1275_v56, %v1275_v56  ;;  %v773_v60 = vpop.f32.mrb[16].mxu1 }
 0x135   :  { %v1276_v52 = vsel %vm1178_vm9, %v1001_v55, %v1227_v58  ;;  %v774_v62 = vadd.f32 %v2537_v50, %v773_v60  ;;  %v775_v63 = vpop.f32.mrb[17].mxu1  ;;  %v2606_v16 = vpop.f32.mrb[32].mxu0 }
 0x136   :  { %1522 = vst.msk [vmem:[%s2919_s3 + $0x18] sm:$0xf] %vm1515_vm2, %v1724_v59  ;;  %v1725_v1 = vpack.c.bf16 %v1276_v52, %v1276_v52  ;;  %v776_v3 = vpop.f32.mrb[18].mxu1  ;;  %v1850_v19 = vpop.f32.mrb[33].mxu0 }
 0x137   :  { %v1006_v4 = vadd.f32 %v2545_v5, %v774_v62  ;;  %v777_v6 = vadd.f32 %v2537_v50, %v776_v3  ;;  %v778_v7 = vpop.f32.mrb[19].mxu1 }
 0x138   :  { %1523 = vst.msk [vmem:[%s2919_s3 + $0x1c] sm:$0xf] %vm1515_vm2, %v1725_v1 }
 0x139   :  { %vm1179_vm10 = vcmp.gt.f32.partialorder %v1006_v4, 0.0  ;;  %v1228_v9 = vmul.f32 0.2, %v1006_v4  ;;  %v1009_v10 = vadd.f32 %v2552_v12, %v777_v6  ;;  %v2613_v12 = vpop.f32.mrb[34].mxu0 }
 0x13a   :  { %v1851_v26 = vpop.f32.mrb[35].mxu0 }
 0x13b   :  { %v1277_v11 = vsel %vm1179_vm10, %v1006_v4, %v1228_v9  ;;  %vm1180_vm11 = vcmp.gt.f32.partialorder %v1009_v10, 0.0  ;;  %v1229_v13 = vmul.f32 0.2, %v1009_v10 }
 0x13c   :  { %v1726_v14 = vpack.c.bf16 %v1277_v11, %v1277_v11  ;;  %v781_v15 = vpop.f32.mrb[20].mxu1 }
 0x13d   :  { %v1278_v5 = vsel %vm1180_vm11, %v1009_v10, %v1229_v13  ;;  %v782_v17 = vadd.f32 %v2537_v50, %v781_v15  ;;  %v783_v18 = vpop.f32.mrb[21].mxu1  ;;  %v2622_v2 = vpop.f32.mrb[36].mxu0 }
 0x13e   :  { %1524 = vst.msk [vmem:[%s2919_s3 + $0x20] sm:$0xf] %vm1515_vm2, %v1726_v14  ;;  %v1727_v20 = vpack.c.bf16 %v1278_v5, %v1278_v5  ;;  %v784_v21 = vpop.f32.mrb[22].mxu1  ;;  %v1854_v36 = vpop.f32.mrb[37].mxu0 }
 0x13f   :  { %v1014_v22 = vadd.f32 %v2559_v23, %v782_v17  ;;  %v785_v24 = vadd.f32 %v2537_v50, %v784_v21  ;;  %v786_v25 = vpop.f32.mrb[23].mxu1 }
 0x140   :  { %1525 = vst.msk [vmem:[%s2919_s3 + $0x24] sm:$0xf] %vm1515_vm2, %v1727_v20 }
 0x141   :  { %vm1181_vm12 = vcmp.gt.f32.partialorder %v1014_v22, 0.0  ;;  %v1230_v27 = vmul.f32 0.2, %v1014_v22  ;;  %v1017_v28 = vadd.f32 %v2566_v30, %v785_v24  ;;  %v2629_v30 = vpop.f32.mrb[38].mxu0 }
 0x142   :  { %v1855_v43 = vpop.f32.mrb[39].mxu0 }
 0x143   :  { %v1279_v29 = vsel %vm1181_vm12, %v1014_v22, %v1230_v27  ;;  %vm1182_vm13 = vcmp.gt.f32.partialorder %v1017_v28, 0.0  ;;  %v1231_v31 = vmul.f32 0.2, %v1017_v28 }
 0x144   :  { %v1728_v32 = vpack.c.bf16 %v1279_v29, %v1279_v29  ;;  %v789_v33 = vpop.f32.mrb[24].mxu1 }
 0x145   :  { %v1280_v23 = vsel %vm1182_vm13, %v1017_v28, %v1231_v31  ;;  %v790_v34 = vadd.f32 %v2537_v50, %v789_v33  ;;  %v791_v35 = vpop.f32.mrb[25].mxu1  ;;  %v2638_v53 = vpop.f32.mrb[40].mxu0 }
 0x146   :  { %1526 = vst.msk [vmem:[%s2919_s3 + $0x28] sm:$0xf] %vm1515_vm2, %v1728_v32  ;;  %v1729_v37 = vpack.c.bf16 %v1280_v23, %v1280_v23  ;;  %v792_v38 = vpop.f32.mrb[26].mxu1  ;;  %v1858_v56 = vpop.f32.mrb[41].mxu0 }
 0x147   :  { %v1022_v39 = vadd.f32 %v2574_v40, %v790_v34  ;;  %v793_v41 = vadd.f32 %v2537_v50, %v792_v38  ;;  %v794_v42 = vpop.f32.mrb[27].mxu1 }
 0x148   :  { %1527 = vst.msk [vmem:[%s2919_s3 + $0x2c] sm:$0xf] %vm1515_vm2, %v1729_v37 }
 0x149   :  { %vm1183_vm14 = vcmp.gt.f32.partialorder %v1022_v39, 0.0  ;;  %v1232_v44 = vmul.f32 0.2, %v1022_v39  ;;  %v1025_v45 = vadd.f32 %v2581_v47, %v793_v41  ;;  %v2645_v47 = vpop.f32.mrb[42].mxu0 }
 0x14a   :  { %v1859_v63 = vpop.f32.mrb[43].mxu0 }
 0x14b   :  { %v1281_v46 = vsel %vm1183_vm14, %v1022_v39, %v1232_v44  ;;  %vm1184_vm15 = vcmp.gt.f32.partialorder %v1025_v45, 0.0  ;;  %v1233_v48 = vmul.f32 0.2, %v1025_v45 }
 0x14c   :  { %v1730_v49 = vpack.c.bf16 %v1281_v46, %v1281_v46  ;;  %v797_v51 = vpop.f32.mrb[28].mxu1 }
 0x14d   :  { %v1282_v40 = vsel %vm1184_vm15, %v1025_v45, %v1233_v48  ;;  %v798_v54 = vadd.f32 %v2537_v50, %v797_v51  ;;  %v799_v55 = vpop.f32.mrb[29].mxu1  ;;  %v2654_v8 = vpop.f32.mrb[44].mxu0 }
 0x14e   :  { %1528 = vst.msk [vmem:[%s2919_s3 + $0x30] sm:$0xf] %vm1515_vm2, %v1730_v49  ;;  %v1731_v58 = vpack.c.bf16 %v1282_v40, %v1282_v40  ;;  %v800_v59 = vpop.f32.mrb[30].mxu1  ;;  %v1862_v11 = vpop.f32.mrb[45].mxu0 }
 0x14f   :  { %v1030_v60 = vadd.f32 %v2590_v61, %v798_v54  ;;  %v801_v52 = vadd.f32 %v2537_v50, %v800_v59  ;;  %v802_v62 = vpop.f32.mrb[31].mxu1 }
 0x150   :  { %1529 = vst.msk [vmem:[%s2919_s3 + $0x34] sm:$0xf] %vm1515_vm2, %v1731_v58 }
 0x151   :  { %vm1185_vm0 = vcmp.gt.f32.partialorder %v1030_v60, 0.0  ;;  %v1234_v0 = vmul.f32 0.2, %v1030_v60  ;;  %v1033_v1 = vadd.f32 %v2597_v57, %v801_v52  ;;  %v2661_v57 = vpop.f32.mrb[46].mxu0 }
 0x152   :  { %v1863_v18 = vpop.f32.mrb[47].mxu0 }
 0x153   :  { %v1283_v3 = vsel %vm1185_vm0, %v1030_v60, %v1234_v0  ;;  %vm1186_vm1 = vcmp.gt.f32.partialorder %v1033_v1, 0.0  ;;  %v1235_v4 = vmul.f32 0.2, %v1033_v1 }
 0x154   :  { %v1732_v6 = vpack.c.bf16 %v1283_v3, %v1283_v3  ;;  %v805_v7 = vpop.f32.mrb[32].mxu1 }
 0x155   :  { %v1284_v61 = vsel %vm1186_vm1, %v1033_v1, %v1235_v4  ;;  %v806_v9 = vadd.f32 %v2537_v50, %v805_v7  ;;  %v807_v10 = vpop.f32.mrb[33].mxu1  ;;  %v2670_v26 = vpop.f32.mrb[48].mxu0 }
 0x156   :  { %1530 = vst.msk [vmem:[%s2919_s3 + $0x38] sm:$0xf] %vm1515_vm2, %v1732_v6  ;;  %v1733_v13 = vpack.c.bf16 %v1284_v61, %v1284_v61  ;;  %v808_v14 = vpop.f32.mrb[34].mxu1  ;;  %v1866_v29 = vpop.f32.mrb[49].mxu0 }
 0x157   :  { %v1038_v15 = vadd.f32 %v2606_v16, %v806_v9  ;;  %v809_v5 = vadd.f32 %v2537_v50, %v808_v14  ;;  %v810_v17 = vpop.f32.mrb[35].mxu1 }
 0x158   :  { %1531 = vst.msk [vmem:[%s2919_s3 + $0x3c] sm:$0xf] %vm1515_vm2, %v1733_v13 }
 0x159   :  { %vm1187_vm3 = vcmp.gt.f32.partialorder %v1038_v15, 0.0  ;;  %v1236_v19 = vmul.f32 0.2, %v1038_v15  ;;  %v1041_v20 = vadd.f32 %v2613_v12, %v809_v5  ;;  %v2677_v12 = vpop.f32.mrb[50].mxu0 }
 0x15a   :  { %v1867_v35 = vpop.f32.mrb[51].mxu0 }
 0x15b   :  { %v1285_v21 = vsel %vm1187_vm3, %v1038_v15, %v1236_v19  ;;  %vm1188_vm4 = vcmp.gt.f32.partialorder %v1041_v20, 0.0  ;;  %v1237_v22 = vmul.f32 0.2, %v1041_v20 }
 0x15c   :  { %v1734_v24 = vpack.c.bf16 %v1285_v21, %v1285_v21  ;;  %v813_v25 = vpop.f32.mrb[36].mxu1 }
 0x15d   :  { %v1286_v16 = vsel %vm1188_vm4, %v1041_v20, %v1237_v22  ;;  %v814_v27 = vadd.f32 %v2537_v50, %v813_v25  ;;  %v815_v28 = vpop.f32.mrb[37].mxu1  ;;  %v2686_v43 = vpop.f32.mrb[52].mxu0 }
 0x15e   :  { %1532 = vst.msk [vmem:[%s2919_s3 + $0x40] sm:$0xf] %vm1515_vm2, %v1734_v24  ;;  %v1735_v31 = vpack.c.bf16 %v1286_v16, %v1286_v16  ;;  %v816_v32 = vpop.f32.mrb[38].mxu1  ;;  %v1870_v46 = vpop.f32.mrb[53].mxu0 }
 0x15f   :  { %v1046_v33 = vadd.f32 %v2622_v2, %v814_v27  ;;  %v817_v23 = vadd.f32 %v2537_v50, %v816_v32  ;;  %v818_v34 = vpop.f32.mrb[39].mxu1 }
 0x160   :  { %1533 = vst.msk [vmem:[%s2919_s3 + $0x44] sm:$0xf] %vm1515_vm2, %v1735_v31 }
 0x161   :  { %vm1189_vm5 = vcmp.gt.f32.partialorder %v1046_v33, 0.0  ;;  %v1238_v36 = vmul.f32 0.2, %v1046_v33  ;;  %v1049_v37 = vadd.f32 %v2629_v30, %v817_v23  ;;  %v2693_v30 = vpop.f32.mrb[54].mxu0 }
 0x162   :  { %v1871_v55 = vpop.f32.mrb[55].mxu0 }
 0x163   :  { %v1287_v38 = vsel %vm1189_vm5, %v1046_v33, %v1238_v36  ;;  %vm1190_vm6 = vcmp.gt.f32.partialorder %v1049_v37, 0.0  ;;  %v1239_v39 = vmul.f32 0.2, %v1049_v37 }
 0x164   :  { %v1736_v41 = vpack.c.bf16 %v1287_v38, %v1287_v38  ;;  %v821_v42 = vpop.f32.mrb[40].mxu1 }
 0x165   :  { %v1288_v2 = vsel %vm1190_vm6, %v1049_v37, %v1239_v39  ;;  %v822_v44 = vadd.f32 %v2537_v50, %v821_v42  ;;  %v823_v45 = vpop.f32.mrb[41].mxu1  ;;  %v2702_v63 = vpop.f32.mrb[56].mxu0 }
 0x166   :  { %1534 = vst.msk [vmem:[%s2919_s3 + $0x48] sm:$0xf] %vm1515_vm2, %v1736_v41  ;;  %v1737_v48 = vpack.c.bf16 %v1288_v2, %v1288_v2  ;;  %v824_v49 = vpop.f32.mrb[42].mxu1  ;;  %v1874_v3 = vpop.f32.mrb[57].mxu0 }
 0x167   :  { %v1054_v51 = vadd.f32 %v2638_v53, %v822_v44  ;;  %v825_v40 = vadd.f32 %v2537_v50, %v824_v49  ;;  %v826_v54 = vpop.f32.mrb[43].mxu1 }
 0x168   :  { %1535 = vst.msk [vmem:[%s2919_s3 + $0x4c] sm:$0xf] %vm1515_vm2, %v1737_v48 }
 0x169   :  { %vm1191_vm7 = vcmp.gt.f32.partialorder %v1054_v51, 0.0  ;;  %v1240_v56 = vmul.f32 0.2, %v1054_v51  ;;  %v1057_v58 = vadd.f32 %v2645_v47, %v825_v40  ;;  %v2709_v47 = vpop.f32.mrb[58].mxu0 }
 0x16a   :  { %v1875_v10 = vpop.f32.mrb[59].mxu0 }
 0x16b   :  { %v1289_v59 = vsel %vm1191_vm7, %v1054_v51, %v1240_v56  ;;  %vm1192_vm8 = vcmp.gt.f32.partialorder %v1057_v58, 0.0  ;;  %v1241_v60 = vmul.f32 0.2, %v1057_v58 }
 0x16c   :  { %v1738_v52 = vpack.c.bf16 %v1289_v59, %v1289_v59  ;;  %v829_v62 = vpop.f32.mrb[44].mxu1 }
 0x16d   :  { %v1290_v53 = vsel %vm1192_vm8, %v1057_v58, %v1241_v60  ;;  %v830_v0 = vadd.f32 %v2537_v50, %v829_v62  ;;  %v831_v1 = vpop.f32.mrb[45].mxu1  ;;  %v2718_v18 = vpop.f32.mrb[60].mxu0 }
 0x16e   :  { %1536 = vst.msk [vmem:[%s2919_s3 + $0x50] sm:$0xf] %vm1515_vm2, %v1738_v52  ;;  %v1739_v4 = vpack.c.bf16 %v1290_v53, %v1290_v53  ;;  %v832_v6 = vpop.f32.mrb[46].mxu1  ;;  %v1878_v21 = vpop.f32.mrb[61].mxu0 }
 0x16f   :  { %v1062_v7 = vadd.f32 %v2654_v8, %v830_v0  ;;  %v833_v61 = vadd.f32 %v2537_v50, %v832_v6  ;;  %v834_v9 = vpop.f32.mrb[47].mxu1 }
 0x170   :  { %1537 = vst.msk [vmem:[%s2919_s3 + $0x54] sm:$0xf] %vm1515_vm2, %v1739_v4 }
 0x171   :  { %vm1193_vm9 = vcmp.gt.f32.partialorder %v1062_v7, 0.0  ;;  %v1242_v11 = vmul.f32 0.2, %v1062_v7  ;;  %v1065_v13 = vadd.f32 %v2661_v57, %v833_v61  ;;  %v2725_v57 = vpop.f32.mrb[62].mxu0 }
 0x172   :  { %v1879_v28 = vpop.f32.mrb[63].mxu0 }
 0x173   :  { %v1291_v14 = vsel %vm1193_vm9, %v1062_v7, %v1242_v11  ;;  %vm1194_vm10 = vcmp.gt.f32.partialorder %v1065_v13, 0.0  ;;  %v1243_v15 = vmul.f32 0.2, %v1065_v13 }
 0x174   :  { %v1740_v5 = vpack.c.bf16 %v1291_v14, %v1291_v14  ;;  %v837_v17 = vpop.f32.mrb[48].mxu1 }
 0x175   :  { %v1292_v8 = vsel %vm1194_vm10, %v1065_v13, %v1243_v15  ;;  %v838_v19 = vadd.f32 %v2537_v50, %v837_v17  ;;  %v839_v20 = vpop.f32.mrb[49].mxu1  ;;  %v2734_v35 = vpop.f32.mrb[64].mxu0 }
 0x176   :  { %1538 = vst.msk [vmem:[%s2919_s3 + $0x58] sm:$0xf] %vm1515_vm2, %v1740_v5  ;;  %v1741_v22 = vpack.c.bf16 %v1292_v8, %v1292_v8  ;;  %v840_v24 = vpop.f32.mrb[50].mxu1  ;;  %v1882_v38 = vpop.f32.mrb[65].mxu0 }
 0x177   :  { %v1070_v25 = vadd.f32 %v2670_v26, %v838_v19  ;;  %v841_v16 = vadd.f32 %v2537_v50, %v840_v24  ;;  %v842_v27 = vpop.f32.mrb[51].mxu1 }
 0x178   :  { %1539 = vst.msk [vmem:[%s2919_s3 + $0x5c] sm:$0xf] %vm1515_vm2, %v1741_v22 }
 0x179   :  { %vm1195_vm11 = vcmp.gt.f32.partialorder %v1070_v25, 0.0  ;;  %v1244_v29 = vmul.f32 0.2, %v1070_v25  ;;  %v1073_v31 = vadd.f32 %v2677_v12, %v841_v16  ;;  %v2741_v12 = vpop.f32.mrb[66].mxu0 }
 0x17a   :  { %v1883_v45 = vpop.f32.mrb[67].mxu0 }
 0x17b   :  { %v1293_v32 = vsel %vm1195_vm11, %v1070_v25, %v1244_v29  ;;  %vm1196_vm12 = vcmp.gt.f32.partialorder %v1073_v31, 0.0  ;;  %v1245_v33 = vmul.f32 0.2, %v1073_v31 }
 0x17c   :  { %v1742_v23 = vpack.c.bf16 %v1293_v32, %v1293_v32  ;;  %v845_v34 = vpop.f32.mrb[52].mxu1 }
 0x17d   :  { %v1294_v26 = vsel %vm1196_vm12, %v1073_v31, %v1245_v33  ;;  %v846_v36 = vadd.f32 %v2537_v50, %v845_v34  ;;  %v847_v37 = vpop.f32.mrb[53].mxu1  ;;  %v2750_v55 = vpop.f32.mrb[68].mxu0 }
 0x17e   :  { %1540 = vst.msk [vmem:[%s2919_s3 + $0x60] sm:$0xf] %vm1515_vm2, %v1742_v23  ;;  %v1743_v39 = vpack.c.bf16 %v1294_v26, %v1294_v26  ;;  %v848_v41 = vpop.f32.mrb[54].mxu1  ;;  %v1886_v59 = vpop.f32.mrb[69].mxu0 }
 0x17f   :  { %v1078_v42 = vadd.f32 %v2686_v43, %v846_v36  ;;  %v849_v2 = vadd.f32 %v2537_v50, %v848_v41  ;;  %v850_v44 = vpop.f32.mrb[55].mxu1 }
 0x180   :  { %1541 = vst.msk [vmem:[%s2919_s3 + $0x64] sm:$0xf] %vm1515_vm2, %v1743_v39 }
 0x181   :  { %vm1197_vm13 = vcmp.gt.f32.partialorder %v1078_v42, 0.0  ;;  %v1246_v46 = vmul.f32 0.2, %v1078_v42  ;;  %v1081_v48 = vadd.f32 %v2693_v30, %v849_v2  ;;  %v2757_v30 = vpop.f32.mrb[70].mxu0 }
 0x182   :  { %v1887_v1 = vpop.f32.mrb[71].mxu0 }
 0x183   :  { %v1295_v49 = vsel %vm1197_vm13, %v1078_v42, %v1246_v46  ;;  %vm1198_vm14 = vcmp.gt.f32.partialorder %v1081_v48, 0.0  ;;  %v1247_v51 = vmul.f32 0.2, %v1081_v48 }
 0x184   :  { %v1744_v40 = vpack.c.bf16 %v1295_v49, %v1295_v49  ;;  %v853_v54 = vpop.f32.mrb[56].mxu1 }
 0x185   :  { %v1296_v43 = vsel %vm1198_vm14, %v1081_v48, %v1247_v51  ;;  %v854_v56 = vadd.f32 %v2537_v50, %v853_v54  ;;  %v855_v58 = vpop.f32.mrb[57].mxu1  ;;  %v2766_v10 = vpop.f32.mrb[72].mxu0 }
 0x186   :  { %1542 = vst.msk [vmem:[%s2919_s3 + $0x68] sm:$0xf] %vm1515_vm2, %v1744_v40  ;;  %v1745_v60 = vpack.c.bf16 %v1296_v43, %v1296_v43  ;;  %v856_v52 = vpop.f32.mrb[58].mxu1  ;;  %v1890_v14 = vpop.f32.mrb[73].mxu0 }
 0x187   :  { %v1086_v62 = vadd.f32 %v2702_v63, %v854_v56  ;;  %v857_v53 = vadd.f32 %v2537_v50, %v856_v52  ;;  %v858_v0 = vpop.f32.mrb[59].mxu1 }
 0x188   :  { %1543 = vst.msk [vmem:[%s2919_s3 + $0x6c] sm:$0xf] %vm1515_vm2, %v1745_v60 }
 0x189   :  { %vm1199_vm15 = vcmp.gt.f32.partialorder %v1086_v62, 0.0  ;;  %v1248_v3 = vmul.f32 0.2, %v1086_v62  ;;  %v1089_v4 = vadd.f32 %v2709_v47, %v857_v53  ;;  %v2773_v47 = vpop.f32.mrb[74].mxu0 }
 0x18a   :  { %v1891_v20 = vpop.f32.mrb[75].mxu0 }
 0x18b   :  { %v1297_v6 = vsel %vm1199_vm15, %v1086_v62, %v1248_v3  ;;  %vm1200_vm0 = vcmp.gt.f32.partialorder %v1089_v4, 0.0  ;;  %v1249_v7 = vmul.f32 0.2, %v1089_v4 }
 0x18c   :  { %v1746_v61 = vpack.c.bf16 %v1297_v6, %v1297_v6  ;;  %v861_v9 = vpop.f32.mrb[60].mxu1 }
 0x18d   :  { %v1298_v63 = vsel %vm1200_vm0, %v1089_v4, %v1249_v7  ;;  %v862_v11 = vadd.f32 %v2537_v50, %v861_v9  ;;  %v863_v13 = vpop.f32.mrb[61].mxu1  ;;  %v2782_v28 = vpop.f32.mrb[76].mxu0 }
 0x18e   :  { %1544 = vst.msk [vmem:[%s2919_s3 + $0x70] sm:$0xf] %vm1515_vm2, %v1746_v61  ;;  %v1747_v15 = vpack.c.bf16 %v1298_v63, %v1298_v63  ;;  %v864_v5 = vpop.f32.mrb[62].mxu1  ;;  %v1894_v32 = vpop.f32.mrb[77].mxu0 }
 0x18f   :  { %v1094_v17 = vadd.f32 %v2718_v18, %v862_v11  ;;  %v865_v8 = vadd.f32 %v2537_v50, %v864_v5  ;;  %v866_v19 = vpop.f32.mrb[63].mxu1 }
 0x190   :  { %1545 = vst.msk [vmem:[%s2919_s3 + $0x74] sm:$0xf] %vm1515_vm2, %v1747_v15 }
 0x191   :  { %vm1201_vm1 = vcmp.gt.f32.partialorder %v1094_v17, 0.0  ;;  %v1250_v21 = vmul.f32 0.2, %v1094_v17  ;;  %v1097_v22 = vadd.f32 %v2725_v57, %v865_v8  ;;  %v2789_v57 = vpop.f32.mrb[78].mxu0 }
 0x192   :  { %v1895_v37 = vpop.f32.mrb[79].mxu0 }
 0x193   :  { %v1299_v24 = vsel %vm1201_vm1, %v1094_v17, %v1250_v21  ;;  %vm1202_vm3 = vcmp.gt.f32.partialorder %v1097_v22, 0.0  ;;  %v1251_v25 = vmul.f32 0.2, %v1097_v22 }
 0x194   :  { %v1748_v16 = vpack.c.bf16 %v1299_v24, %v1299_v24  ;;  %v869_v27 = vpop.f32.mrb[64].mxu1 }
 0x195   :  { %v1300_v18 = vsel %vm1202_vm3, %v1097_v22, %v1251_v25  ;;  %v870_v29 = vadd.f32 %v2537_v50, %v869_v27  ;;  %v871_v31 = vpop.f32.mrb[65].mxu1  ;;  %v2798_v45 = vpop.f32.mrb[80].mxu0 }
 0x196   :  { %1546 = vst.msk [vmem:[%s2919_s3 + $0x78] sm:$0xf] %vm1515_vm2, %v1748_v16  ;;  %v1749_v33 = vpack.c.bf16 %v1300_v18, %v1300_v18  ;;  %v872_v23 = vpop.f32.mrb[66].mxu1  ;;  %v1898_v49 = vpop.f32.mrb[81].mxu0 }
 0x197   :  { %v1102_v34 = vadd.f32 %v2734_v35, %v870_v29  ;;  %v873_v26 = vadd.f32 %v2537_v50, %v872_v23  ;;  %v874_v36 = vpop.f32.mrb[67].mxu1 }
 0x198   :  { %1547 = vst.msk [vmem:[%s2919_s3 + $0x7c] sm:$0xf] %vm1515_vm2, %v1749_v33 }
 0x199   :  { %vm1203_vm4 = vcmp.gt.f32.partialorder %v1102_v34, 0.0  ;;  %v1252_v38 = vmul.f32 0.2, %v1102_v34  ;;  %v1105_v39 = vadd.f32 %v2741_v12, %v873_v26  ;;  %v2805_v12 = vpop.f32.mrb[82].mxu0 }
 0x19a   :  { %v1899_v58 = vpop.f32.mrb[83].mxu0 }
 0x19b   :  { %v1301_v41 = vsel %vm1203_vm4, %v1102_v34, %v1252_v38  ;;  %vm1204_vm5 = vcmp.gt.f32.partialorder %v1105_v39, 0.0  ;;  %v1253_v42 = vmul.f32 0.2, %v1105_v39 }
 0x19c   :  { %v1750_v2 = vpack.c.bf16 %v1301_v41, %v1301_v41  ;;  %v877_v44 = vpop.f32.mrb[68].mxu1 }
 0x19d   :  { %v1302_v35 = vsel %vm1204_vm5, %v1105_v39, %v1253_v42  ;;  %v878_v46 = vadd.f32 %v2537_v50, %v877_v44  ;;  %v879_v48 = vpop.f32.mrb[69].mxu1  ;;  %v2814_v1 = vpop.f32.mrb[84].mxu0 }
 0x19e   :  { %1548 = vst.msk [vmem:[%s2919_s3 + $0x80] sm:$0xf] %vm1515_vm2, %v1750_v2  ;;  %v1751_v51 = vpack.c.bf16 %v1302_v35, %v1302_v35  ;;  %v880_v40 = vpop.f32.mrb[70].mxu1  ;;  %v1902_v6 = vpop.f32.mrb[85].mxu0 }
 0x19f   :  { %v1110_v54 = vadd.f32 %v2750_v55, %v878_v46  ;;  %v881_v43 = vadd.f32 %v2537_v50, %v880_v40  ;;  %v882_v56 = vpop.f32.mrb[71].mxu1 }
 0x1a0   :  { %1549 = vst.msk [vmem:[%s2919_s3 + $0x84] sm:$0xf] %vm1515_vm2, %v1751_v51 }
 0x1a1   :  { %vm1205_vm6 = vcmp.gt.f32.partialorder %v1110_v54, 0.0  ;;  %v1254_v59 = vmul.f32 0.2, %v1110_v54  ;;  %v1113_v60 = vadd.f32 %v2757_v30, %v881_v43  ;;  %v2821_v30 = vpop.f32.mrb[86].mxu0 }
 0x1a2   :  { %v1903_v13 = vpop.f32.mrb[87].mxu0 }
 0x1a3   :  { %v1303_v52 = vsel %vm1205_vm6, %v1110_v54, %v1254_v59  ;;  %vm1206_vm7 = vcmp.gt.f32.partialorder %v1113_v60, 0.0  ;;  %v1255_v62 = vmul.f32 0.2, %v1113_v60 }
 0x1a4   :  { %v1752_v53 = vpack.c.bf16 %v1303_v52, %v1303_v52  ;;  %v885_v0 = vpop.f32.mrb[72].mxu1 }
 0x1a5   :  { %v1304_v55 = vsel %vm1206_vm7, %v1113_v60, %v1255_v62  ;;  %v886_v3 = vadd.f32 %v2537_v50, %v885_v0  ;;  %v887_v4 = vpop.f32.mrb[73].mxu1  ;;  %v2830_v20 = vpop.f32.mrb[88].mxu0 }
 0x1a6   :  { %1550 = vst.msk [vmem:[%s2919_s3 + $0x88] sm:$0xf] %vm1515_vm2, %v1752_v53  ;;  %v1753_v7 = vpack.c.bf16 %v1304_v55, %v1304_v55  ;;  %v888_v61 = vpop.f32.mrb[74].mxu1  ;;  %v1906_v24 = vpop.f32.mrb[89].mxu0 }
 0x1a7   :  { %v1118_v9 = vadd.f32 %v2766_v10, %v886_v3  ;;  %v889_v63 = vadd.f32 %v2537_v50, %v888_v61  ;;  %v890_v11 = vpop.f32.mrb[75].mxu1 }
 0x1a8   :  { %1551 = vst.msk [vmem:[%s2919_s3 + $0x8c] sm:$0xf] %vm1515_vm2, %v1753_v7 }
 0x1a9   :  { %vm1207_vm8 = vcmp.gt.f32.partialorder %v1118_v9, 0.0  ;;  %v1256_v14 = vmul.f32 0.2, %v1118_v9  ;;  %v1121_v15 = vadd.f32 %v2773_v47, %v889_v63  ;;  %v2837_v47 = vpop.f32.mrb[90].mxu0 }
 0x1aa   :  { %v1907_v31 = vpop.f32.mrb[91].mxu0 }
 0x1ab   :  { %v1305_v5 = vsel %vm1207_vm8, %v1118_v9, %v1256_v14  ;;  %vm1208_vm9 = vcmp.gt.f32.partialorder %v1121_v15, 0.0  ;;  %v1257_v17 = vmul.f32 0.2, %v1121_v15 }
 0x1ac   :  { %v1754_v8 = vpack.c.bf16 %v1305_v5, %v1305_v5  ;;  %v893_v19 = vpop.f32.mrb[76].mxu1 }
 0x1ad   :  { %v1306_v10 = vsel %vm1208_vm9, %v1121_v15, %v1257_v17  ;;  %v894_v21 = vadd.f32 %v2537_v50, %v893_v19  ;;  %v895_v22 = vpop.f32.mrb[77].mxu1  ;;  %v2846_v37 = vpop.f32.mrb[92].mxu0 }
 0x1ae   :  { %1552 = vst.msk [vmem:[%s2919_s3 + $0x90] sm:$0xf] %vm1515_vm2, %v1754_v8  ;;  %v1755_v25 = vpack.c.bf16 %v1306_v10, %v1306_v10  ;;  %v896_v16 = vpop.f32.mrb[78].mxu1  ;;  %v1910_v41 = vpop.f32.mrb[93].mxu0 }
 0x1af   :  { %v1126_v27 = vadd.f32 %v2782_v28, %v894_v21  ;;  %v897_v18 = vadd.f32 %v2537_v50, %v896_v16  ;;  %v898_v29 = vpop.f32.mrb[79].mxu1 }
 0x1b0   :  { %1553 = vst.msk [vmem:[%s2919_s3 + $0x94] sm:$0xf] %vm1515_vm2, %v1755_v25 }
 0x1b1   :  { %vm1209_vm10 = vcmp.gt.f32.partialorder %v1126_v27, 0.0  ;;  %v1258_v32 = vmul.f32 0.2, %v1126_v27  ;;  %v1129_v33 = vadd.f32 %v2789_v57, %v897_v18  ;;  %v2853_v57 = vpop.f32.mrb[94].mxu0 }
 0x1b2   :  { %v1911_v48 = vpop.f32.mrb[95].mxu0 }
 0x1b3   :  { %v1307_v23 = vsel %vm1209_vm10, %v1126_v27, %v1258_v32  ;;  %vm1210_vm11 = vcmp.gt.f32.partialorder %v1129_v33, 0.0  ;;  %v1259_v34 = vmul.f32 0.2, %v1129_v33 }
 0x1b4   :  { %v1756_v26 = vpack.c.bf16 %v1307_v23, %v1307_v23  ;;  %v901_v36 = vpop.f32.mrb[80].mxu1 }
 0x1b5   :  { %v1308_v28 = vsel %vm1210_vm11, %v1129_v33, %v1259_v34  ;;  %v902_v38 = vadd.f32 %v2537_v50, %v901_v36  ;;  %v903_v39 = vpop.f32.mrb[81].mxu1  ;;  %v2862_v58 = vpop.f32.mrb[96].mxu0 }
 0x1b6   :  { %1554 = vst.msk [vmem:[%s2919_s3 + $0x98] sm:$0xf] %vm1515_vm2, %v1756_v26  ;;  %v1757_v42 = vpack.c.bf16 %v1308_v28, %v1308_v28  ;;  %v904_v2 = vpop.f32.mrb[82].mxu1  ;;  %v1914_v52 = vpop.f32.mrb[97].mxu0 }
 0x1b7   :  { %v1134_v44 = vadd.f32 %v2798_v45, %v902_v38  ;;  %v905_v35 = vadd.f32 %v2537_v50, %v904_v2  ;;  %v906_v46 = vpop.f32.mrb[83].mxu1 }
 0x1b8   :  { %1555 = vst.msk [vmem:[%s2919_s3 + $0x9c] sm:$0xf] %vm1515_vm2, %v1757_v42 }
 0x1b9   :  { %vm1211_vm12 = vcmp.gt.f32.partialorder %v1134_v44, 0.0  ;;  %v1260_v49 = vmul.f32 0.2, %v1134_v44  ;;  %v1137_v51 = vadd.f32 %v2805_v12, %v905_v35  ;;  %v1168_v12 = vpop.f32.mrb[98].mxu0 }
 0x1ba   :  { %v1915_v4 = vpop.f32.mrb[99].mxu0 }
 0x1bb   :  { %v1309_v40 = vsel %vm1211_vm12, %v1134_v44, %v1260_v49  ;;  %vm1212_vm13 = vcmp.gt.f32.partialorder %v1137_v51, 0.0  ;;  %v1261_v54 = vmul.f32 0.2, %v1137_v51 }
 0x1bc   :  { %v1758_v43 = vpack.c.bf16 %v1309_v40, %v1309_v40  ;;  %v909_v56 = vpop.f32.mrb[84].mxu1 }
 0x1bd   :  { %v1310_v45 = vsel %vm1212_vm13, %v1137_v51, %v1261_v54  ;;  %v910_v59 = vadd.f32 %v2537_v50, %v909_v56  ;;  %v911_v60 = vpop.f32.mrb[85].mxu1 }
 0x1be   :  { %1556 = vst.msk [vmem:[%s2919_s3 + $0xa0] sm:$0xf] %vm1515_vm2, %v1758_v43  ;;  %v1759_v62 = vpack.c.bf16 %v1310_v45, %v1310_v45  ;;  %v912_v53 = vpop.f32.mrb[86].mxu1 }
 0x1bf   :  { %v1142_v0 = vadd.f32 %v2814_v1, %v910_v59  ;;  %v913_v55 = vadd.f32 %v2537_v50, %v912_v53  ;;  %v914_v3 = vpop.f32.mrb[87].mxu1 }
 0x1c0   :  { %1557 = vst.msk [vmem:[%s2919_s3 + $0xa4] sm:$0xf] %vm1515_vm2, %v1759_v62 }
 0x1c1   :  { %vm1213_vm14 = vcmp.gt.f32.partialorder %v1142_v0, 0.0  ;;  %v1262_v6 = vmul.f32 0.2, %v1142_v0  ;;  %v1145_v7 = vadd.f32 %v2821_v30, %v913_v55 }
 0x1c3   :  { %v1311_v61 = vsel %vm1213_vm14, %v1142_v0, %v1262_v6  ;;  %vm1214_vm15 = vcmp.gt.f32.partialorder %v1145_v7, 0.0  ;;  %v1263_v9 = vmul.f32 0.2, %v1145_v7 }
 0x1c4   :  { %v1760_v63 = vpack.c.bf16 %v1311_v61, %v1311_v61  ;;  %v917_v11 = vpop.f32.mrb[88].mxu1 }
 0x1c5   :  { %v1312_v13 = vsel %vm1214_vm15, %v1145_v7, %v1263_v9  ;;  %v918_v1 = vadd.f32 %v2537_v50, %v917_v11  ;;  %v919_v14 = vpop.f32.mrb[89].mxu1 }
 0x1c6   :  { %1558 = vst.msk [vmem:[%s2919_s3 + $0xa8] sm:$0xf] %vm1515_vm2, %v1760_v63  ;;  %v1761_v15 = vpack.c.bf16 %v1312_v13, %v1312_v13  ;;  %v920_v5 = vpop.f32.mrb[90].mxu1 }
 0x1c7   :  { %v1150_v17 = vadd.f32 %v2830_v20, %v918_v1  ;;  %v921_v30 = vadd.f32 %v2537_v50, %v920_v5  ;;  %v922_v8 = vpop.f32.mrb[91].mxu1 }
 0x1c8   :  { %1559 = vst.msk [vmem:[%s2919_s3 + $0xac] sm:$0xf] %vm1515_vm2, %v1761_v15 }
 0x1c9   :  { %vm1215_vm0 = vcmp.gt.f32.partialorder %v1150_v17, 0.0  ;;  %v1264_v19 = vmul.f32 0.2, %v1150_v17  ;;  %v1153_v10 = vadd.f32 %v2837_v47, %v921_v30 }
 0x1cb   :  { %v1313_v21 = vsel %vm1215_vm0, %v1150_v17, %v1264_v19  ;;  %vm1216_vm1 = vcmp.gt.f32.partialorder %v1153_v10, 0.0  ;;  %v1265_v22 = vmul.f32 0.2, %v1153_v10 }
 0x1cc   :  { %v1762_v24 = vpack.c.bf16 %v1313_v21, %v1313_v21  ;;  %v925_v25 = vpop.f32.mrb[92].mxu1 }
 0x1cd   :  { %v1314_v16 = vsel %vm1216_vm1, %v1153_v10, %v1265_v22  ;;  %v926_v20 = vadd.f32 %v2537_v50, %v925_v25  ;;  %v927_v27 = vpop.f32.mrb[93].mxu1 }
 0x1ce   :  { %1560 = vst.msk [vmem:[%s2919_s3 + $0xb0] sm:$0xf] %vm1515_vm2, %v1762_v24  ;;  %v1763_v18 = vpack.c.bf16 %v1314_v16, %v1314_v16  ;;  %v928_v29 = vpop.f32.mrb[94].mxu1 }
 0x1cf   :  { %v1158_v31 = vadd.f32 %v2846_v37, %v926_v20  ;;  %v929_v47 = vadd.f32 %v2537_v50, %v928_v29  ;;  %v930_v32 = vpop.f32.mrb[95].mxu1  ;;  %v2140_v50 = vld [vmem:[%s2918_s2] ss:$0 sm:$0xff] }
 0x1d0   :  { %1561 = vst.msk [vmem:[%s2919_s3 + $0xb4] sm:$0xf] %vm1515_vm2, %v1763_v18 }
 0x1d1   :  { %vm1217_vm3 = vcmp.gt.f32.partialorder %v1158_v31, 0.0  ;;  %v1266_v33 = vmul.f32 0.2, %v1158_v31  ;;  %v1161_v23 = vadd.f32 %v2853_v57, %v929_v47 }
 0x1d3   :  { %v1315_v34 = vsel %vm1217_vm3, %v1158_v31, %v1266_v33  ;;  %vm1218_vm4 = vcmp.gt.f32.partialorder %v1161_v23, 0.0  ;;  %v1267_v26 = vmul.f32 0.2, %v1161_v23 }
 0x1d4   :  { %v1764_v36 = vpack.c.bf16 %v1315_v34, %v1315_v34  ;;  %v933_v28 = vpop.f32.mrb[96].mxu1 }
 0x1d5   :  { %v1316_v38 = vsel %vm1218_vm4, %v1161_v23, %v1267_v26  ;;  %v934_v37 = vadd.f32 %v2140_v50, %v933_v28  ;;  %v935_v39 = vpop.f32.mrb[97].mxu1 }
 0x1d6   :  { %1562 = vst.msk [vmem:[%s2919_s3 + $0xb8] sm:$0xf] %vm1515_vm2, %v1764_v36  ;;  %v1765_v41 = vpack.c.bf16 %v1316_v38, %v1316_v38  ;;  %v936_v42 = vpop.f32.mrb[98].mxu1 }
 0x1d7   :  { %v1166_v2 = vadd.f32 %v2862_v58, %v934_v37  ;;  %v937_v57 = vpop.f32.mrb[99].mxu1 }
 0x1d8   :  { %1563 = vst.msk [vmem:[%s2919_s3 + $0xbc] sm:$0xf] %vm1515_vm2, %v1765_v41 }
 0x1d9   :  { %vm1219_vm5 = vcmp.gt.f32.partialorder %v1166_v2, 0.0  ;;  %v1268_v44 = vmul.f32 0.2, %v1166_v2 }
 0x1db   :  { %v1317_v35 = vsel %vm1219_vm5, %v1166_v2, %v1268_v44 }
 0x1dc   :  { %v1766_v46 = vpack.c.bf16 %v1317_v35, %v1317_v35 }
 0x1de   :  { %1564 = vst.msk [vmem:[%s2919_s3 + $0xc0] sm:$0xf] %vm1515_vm2, %v1766_v46 }

// kernel: discriminator_forward.4
= control target key start
LH: loop header
LB: loop body
LE: loop exit
PB: predicated region body
PF: predicated region fallthrough
CT: control target
= control target key end

     0   :  { %vm3026_vm0 = vmmov 0   ;;  %s3774_s1 = inlined_call_operand.vmem [shape: bf16[1664,128], index: 1, kind: input, shape index: {}]   ;;  %s3775_s0 = inlined_call_operand.vmem [shape: bf16[104,1664], index: 0, kind: input, shape index: {}]   ;;  %s3776_s2 = inlined_call_operand.vmem [shape: f32[1,128], index: 2, kind: input, shape index: {}]   ;;  %s3777_s3 = inlined_call_operand.vmem [shape: bf16[104,128], index: 3, kind: output, shape index: {}]  }
   0x1   :  { %v2794_v0 = vld [vmem:[%s3774_s1 + $0x40] sm:$0xff]   ;;  %v2796_v2 = vld [vmem:[%s3774_s1 + $0x48] sm:$0xff]   ;;  %v2798_v4 = vld [vmem:[%s3774_s1 + $0x50] sm:$0xff]  }
   0x2   :  { %v2795_v1 = vld [vmem:[%s3774_s1] sm:$0xff]   ;;  %2776 = vmatprep.subr.bf16.mxu1 %v2794_v0  ;;  %2369 = vmatprep.subr.bf16.mxu0 %v2794_v0  ;;  %v2797_v3 = vld [vmem:[%s3774_s1 + $0x8] sm:$0xff]   ;;  %v2799_v5 = vld [vmem:[%s3774_s1 + $0x10] sm:$0xff]  }
   0x3   :  { %2784 = vmatpush3.bf16.msra.mxu1 %v2795_v1  ;;  %2370 = vmatpush3.bf16.msra.mxu0 %v2795_v1  ;;  %v2800_v6 = vld [vmem:[%s3774_s1 + $0x58] sm:$0xff]   ;;  %v2802_v8 = vld [vmem:[%s3774_s1 + $0x60] sm:$0xff]   ;;  %v2804_v10 = vld [vmem:[%s3774_s1 + $0x68] sm:$0xff]  }
   0x4   :  { %2777 = vmatprep.subr.bf16.mxu1 %v2796_v2  ;;  %2371 = vmatprep.subr.bf16.mxu0 %v2796_v2  ;;  %v2801_v7 = vld [vmem:[%s3774_s1 + $0x18] sm:$0xff]   ;;  %v2803_v9 = vld [vmem:[%s3774_s1 + $0x20] sm:$0xff]   ;;  %v2805_v12 = vld [vmem:[%s3774_s1 + $0x28] sm:$0xff]  }
   0x5   :  { %v2812_v11 = vld [vmem:[%s3775_s0 + $0x1a4] ss:$52 sps:$4 sm:$0xff]   ;;  %v2806_v14 = vld [vmem:[%s3774_s1 + $0x70] sm:$0xff]   ;;  %v2820_v24 = vld [vmem:[%s3774_s1 + $0xc8] sm:$0xff]  }
   0x6   :  { %v2816_v13 = vld [vmem:[%s3775_s0 + $0x4] ss:$52 sps:$4 sm:$0xff]   ;;  %1451 = vmatprep.mubr.bf16.mxu1 %v2812_v11  ;;  %v2807_v15 = vld [vmem:[%s3774_s1 + $0x30] sm:$0xff]   ;;  %v2822_v25 = vld [vmem:[%s3774_s1 + $0x148] sm:$0xff]  }
   0x7   :  { %2785 = vmatpush3.bf16.msra.mxu1 %v2797_v3  ;;  %2372 = vmatpush3.bf16.msra.mxu0 %v2797_v3  ;;  %v2808_v16 = vld [vmem:[%s3774_s1 + $0x78] sm:$0xff]   ;;  %v2813_v18 = vld [vmem:[%s3774_s1 + $0xc0] sm:$0xff]   ;;  %v2821_v27 = vld [vmem:[%s3774_s1 + $0x88] sm:$0xff]  }
   0x8   :  { %2778 = vmatprep.subr.bf16.mxu1 %v2798_v4  ;;  %2373 = vmatprep.subr.bf16.mxu0 %v2798_v4  ;;  %v2809_v17 = vld [vmem:[%s3774_s1 + $0x38] sm:$0xff]   ;;  %v2810_v19 = vld [vmem:[%s3775_s0 + $0x1a0] ss:$52 sps:$4 sm:$0xff]   ;;  %v2823_v29 = vld [vmem:[%s3774_s1 + $0x108] sm:$0xff]  }
   0x9   :  { %1419 = vmatprep.mubr.bf16.mxu0 %v2816_v13  ;;  %v2814_v20 = vld [vmem:[%s3775_s0] ss:$52 sps:$4 sm:$0xff]   ;;  %v2828_v33 = vld [vmem:[%s3775_s0 + $0x68] ss:$52 sps:$4 sm:$0xff]   ;;  %v2842_v46 = vld [vmem:[%s3775_s0 + $0xd0] ss:$52 sps:$4 sm:$0xff]  }
   0xa   :  { %v2818_v21 = vld [vmem:[%s3774_s1 + $0x140] sm:$0xff]   ;;  %v2824_v30 = vld [vmem:[%s3774_s1 + $0xd0] sm:$0xff]   ;;  %v2835_v34 = vld [vmem:[%s3775_s0 + $0x208] ss:$52 sps:$4 sm:$0xff]  }
   0xb   :  { %2786 = vmatpush3.bf16.msra.mxu1 %v2799_v5  ;;  %2374 = vmatpush3.bf16.msra.mxu0 %v2799_v5  ;;  %v2817_v22 = vld [vmem:[%s3774_s1 + $0x80] sm:$0xff]   ;;  %v2829_v31 = vld [vmem:[%s3774_s1 + $0x150] sm:$0xff]   ;;  %v2831_v36 = vld [vmem:[%s3774_s1 + $0xd8] sm:$0xff]  }
   0xc   :  { %2779 = vmatprep.subr.bf16.mxu1 %v2800_v6  ;;  %2375 = vmatprep.subr.bf16.mxu0 %v2800_v6  ;;  %v2819_v23 = vld [vmem:[%s3774_s1 + $0x100] sm:$0xff]   ;;  %v2827_v32 = vld [vmem:[%s3774_s1 + $0x90] sm:$0xff]   ;;  %v2836_v37 = vld [vmem:[%s3774_s1 + $0x158] sm:$0xff]  }
   0xd   :  { %v2825_v26 = vld [vmem:[%s3775_s0 + $0x6c] ss:$52 sps:$4 sm:$0xff]   ;;  %v2830_v35 = vld [vmem:[%s3774_s1 + $0x110] sm:$0xff]   ;;  %v2834_v38 = vld [vmem:[%s3774_s1 + $0x98] sm:$0xff]  }
   0xe   :  { %v2832_v28 = vld [vmem:[%s3775_s0 + $0x20c] ss:$52 sps:$4 sm:$0xff]   ;;  %v2839_v39 = vld [vmem:[%s3775_s0 + $0xd4] ss:$52 sps:$4 sm:$0xff]   ;;  %v2837_v40 = vld [vmem:[%s3774_s1 + $0x118] sm:$0xff]  }
   0xf   :  { %2787 = vmatpush3.bf16.msra.mxu1 %v2801_v7  ;;  %2376 = vmatpush3.bf16.msra.mxu0 %v2801_v7  ;;  %v2838_v41 = vld [vmem:[%s3774_s1 + $0xe0] sm:$0xff]   ;;  %v99_v42 = vld [vmem:[%s3775_s0 + $0x270] sm:$0xff]  ;;  %v2845_v49 = vld [vmem:[%s3774_s1 + $0xe8] sm:$0xff]  }
  0x10   :  { %2780 = vmatprep.subr.bf16.mxu1 %v2802_v8  ;;  %2377 = vmatprep.subr.bf16.mxu0 %v2802_v8  ;;  %v2843_v43 = vld [vmem:[%s3774_s1 + $0x160] sm:$0xff]   ;;  %v2192_v44 = vcombine.high %v99_v42, %v99_v42  ;;  %v2191_v48 = vcombine.low %v99_v42, %v99_v42  ;;  %v2849_v50 = vld [vmem:[%s3774_s1 + $0x168] sm:$0xff]   ;;  %v2852_v52 = vld [vmem:[%s3775_s0 + $0x13c] ss:$52 sps:$4 sm:$0xff]  }
  0x11   :  { %v2841_v45 = vld [vmem:[%s3774_s1 + $0xa0] sm:$0xff]   ;;  %v2847_v51 = vld [vmem:[%s3774_s1 + $0xa8] sm:$0xff]   ;;  %v2851_v54 = vld [vmem:[%s3774_s1 + $0xf0] sm:$0xff]  }
  0x12   :  { %v2844_v47 = vld [vmem:[%s3774_s1 + $0x120] sm:$0xff]   ;;  %v2850_v53 = vld [vmem:[%s3774_s1 + $0x128] sm:$0xff]   ;;  %v2856_v55 = vld [vmem:[%s3774_s1 + $0x170] sm:$0xff]  }
  0x13   :  { %2788 = vmatpush3.bf16.msra.mxu1 %v2803_v9  ;;  %2378 = vmatpush3.bf16.msra.mxu0 %v2803_v9  ;;  %v2854_v56 = vld [vmem:[%s3774_s1 + $0xb0] sm:$0xff]   ;;  %v2855_v57 = vld [vmem:[%s3775_s0 + $0x138] ss:$52 sps:$4 sm:$0xff]   ;;  %v2865_v0 = vld [vmem:[%s3774_s1 + $0x1c0] sm:$0xff]  }
  0x14   :  { %2781 = vmatprep.subr.bf16.mxu1 %v2804_v10  ;;  %2379 = vmatprep.subr.bf16.mxu0 %v2804_v10  ;;  %v2857_v58 = vld [vmem:[%s3774_s1 + $0x130] sm:$0xff]   ;;  %v2858_v59 = vld [vmem:[%s3774_s1 + $0xf8] sm:$0xff]   ;;  %v2863_v61 = vld [vmem:[%s3775_s0 + $0xc] ss:$52 sps:$4 sm:$0xff]  }
  0x15   :  { %v2860_v60 = vld [vmem:[%s3774_s1 + $0x178] sm:$0xff]   ;;  %v2868_v1 = vld [vmem:[%s3775_s0 + $0x14] ss:$52 sps:$4 sm:$0xff]   ;;  %v2866_v3 = vld [vmem:[%s3775_s0 + $0x10] ss:$52 sps:$4 sm:$0xff]  }
  0x16   :  { %v2859_v62 = vld [vmem:[%s3774_s1 + $0xb8] sm:$0xff]   ;;  %v2869_v4 = vld [vmem:[%s3774_s1 + $0x180] sm:$0xff]   ;;  %v2872_v7 = vld [vmem:[%s3775_s0 + $0x74] ss:$52 sps:$4 sm:$0xff]  }
  0x17   :  { %2789 = vmatpush3.bf16.msra.mxu1 %v2805_v12  ;;  %2380 = vmatpush3.bf16.msra.mxu0 %v2805_v12  ;;  %v2864_v63 = vld [vmem:[%s3774_s1 + $0x138] sm:$0xff]   ;;  %v2870_v5 = vld [vmem:[%s3774_s1 + $0x240] sm:$0xff]   ;;  %v2874_v8 = vld [vmem:[%s3774_s1 + $0x1c8] sm:$0xff]  }
  0x18   :  { %2782 = vmatprep.subr.bf16.mxu1 %v2806_v14  ;;  %2381 = vmatprep.subr.bf16.mxu0 %v2806_v14  ;;  %v2861_v2 = vld [vmem:[%s3775_s0 + $0x8] ss:$52 sps:$4 sm:$0xff]   ;;  %v2871_v6 = vld [vmem:[%s3774_s1 + $0x200] sm:$0xff]   ;;  %v2879_v12 = vld [vmem:[%s3775_s0 + $0x78] ss:$52 sps:$4 sm:$0xff]  }
  0x19   :  { %v2876_v9 = vld [vmem:[%s3774_s1 + $0x188] sm:$0xff]   ;;  %v2877_v10 = vld [vmem:[%s3775_s0 + $0x7c] ss:$52 sps:$4 sm:$0xff]  }
  0x1a   :  { %v2875_v11 = vld [vmem:[%s3775_s0 + $0x70] ss:$52 sps:$4 sm:$0xff]   ;;  %v2880_v13 = vld [vmem:[%s3774_s1 + $0x248] sm:$0xff]  }
  0x1b   :  { %2790 = vmatpush3.bf16.msra.mxu1 %v2807_v15  ;;  %2382 = vmatpush3.bf16.msra.mxu0 %v2807_v15  ;;  %v2881_v14 = vld [vmem:[%s3774_s1 + $0x208] sm:$0xff]   ;;  %v2882_v15 = vld [vmem:[%s3774_s1 + $0x1d0] sm:$0xff]  }
  0x1c   :  { %2783 = vmatprep.subr.bf16.mxu1 %v2808_v16  ;;  %2383 = vmatprep.subr.bf16.mxu0 %v2808_v16  ;;  %v2883_v16 = vld [vmem:[%s3775_s0 + $0xdc] ss:$52 sps:$4 sm:$0xff]   ;;  %v2917_v42 = vld [vmem:[%s3774_s1 + $0x268] sm:$0xff]  }
  0x1f   :  { %2791 = vmatpush3.bf16.msra.mxu1 %v2809_v17  ;;  %2384 = vmatpush3.bf16.msra.mxu0 %v2809_v17  ;;  %v2885_v17 = vld [vmem:[%s3774_s1 + $0x190] sm:$0xff]  }
  0x20   :  { %2427 = vmatprep.subr.bf16.mxu1 %v2813_v18  ;;  %2485 = vmatprep.subr.bf16.mxu0 %v2818_v21  ;;  %v2887_v18 = vld [vmem:[%s3775_s0 + $0xe4] ss:$52 sps:$4 sm:$0xff]   ;;  %v2889_v21 = vld [vmem:[%s3775_s0 + $0xe0] ss:$52 sps:$4 sm:$0xff]  }
  0x22   :  { %1452 = vmatmul.mubr.bf16.vlgmr.msra.gmra.mrb[0].mxu1 %v2810_v19  ;;  %1420 = vmatmul.mubr.bf16.vlgmr.msra.gmra.mrb[0].mxu0 %v2814_v20  ;;  %v2890_v19 = vld [vmem:[%s3774_s1 + $0x250] sm:$0xff]   ;;  %v2886_v20 = vld [vmem:[%s3775_s0 + $0xd8] ss:$52 sps:$4 sm:$0xff]  }
  0x23   :  { %2428 = vmatpush3.bf16.msra.mxu1 %v2817_v22  ;;  %2486 = vmatpush3.bf16.msra.mxu0 %v2819_v23  ;;  %v2891_v22 = vld [vmem:[%s3774_s1 + $0x210] sm:$0xff]   ;;  %v2892_v23 = vld [vmem:[%s3774_s1 + $0x1d8] sm:$0xff]  }
  0x24   :  { %2429 = vmatprep.subr.bf16.mxu1 %v2820_v24  ;;  %2487 = vmatprep.subr.bf16.mxu0 %v2822_v25  ;;  %v2893_v24 = vld [vmem:[%s3774_s1 + $0x198] sm:$0xff]  }
  0x25   :  { %1427 = vmatprep.mubr.bf16.mxu0 %v2825_v26  ;;  %1459 = vmatprep.mubr.bf16.mxu1 %v2832_v28  ;;  %v2894_v25 = vld [vmem:[%s3775_s0 + $0x144] ss:$52 sps:$4 sm:$0xff]   ;;  %v2897_v26 = vld [vmem:[%s3775_s0 + $0x14c] ss:$52 sps:$4 sm:$0xff]  }
  0x26   :  { %v2901_v28 = vld [vmem:[%s3774_s1 + $0x218] sm:$0xff]  }
  0x27   :  { %2430 = vmatpush3.bf16.msra.mxu1 %v2821_v27  ;;  %2488 = vmatpush3.bf16.msra.mxu0 %v2823_v29  ;;  %v2900_v27 = vld [vmem:[%s3774_s1 + $0x258] sm:$0xff]   ;;  %v2902_v29 = vld [vmem:[%s3774_s1 + $0x1e0] sm:$0xff]  }
  0x28   :  { %2431 = vmatprep.subr.bf16.mxu1 %v2824_v30  ;;  %2489 = vmatprep.subr.bf16.mxu0 %v2829_v31  ;;  %v2896_v30 = vld [vmem:[%s3775_s0 + $0x140] ss:$52 sps:$4 sm:$0xff]  }
  0x29   :  { %v2903_v31 = vld [vmem:[%s3774_s1 + $0x1a0] sm:$0xff]  }
  0x2a   :  { %1428 = vmatmul.mubr.bf16.gmra.mrb[4].mxu0 %v2828_v33  ;;  %1460 = vmatmul.mubr.bf16.gmra.mrb[4].mxu1 %v2835_v34  ;;  %v2904_v33 = vld [vmem:[%s3775_s0 + $0x1ac] ss:$52 sps:$4 sm:$0xff]   ;;  %v2907_v34 = vld [vmem:[%s3775_s0 + $0x1b4] ss:$52 sps:$4 sm:$0xff]  }
  0x2b   :  { %2432 = vmatpush3.bf16.msra.mxu1 %v2827_v32  ;;  %2490 = vmatpush3.bf16.msra.mxu0 %v2830_v35  ;;  %v2899_v32 = vld [vmem:[%s3775_s0 + $0x148] ss:$52 sps:$4 sm:$0xff]   ;;  %v2909_v35 = vld [vmem:[%s3774_s1 + $0x260] sm:$0xff]  }
  0x2c   :  { %2433 = vmatprep.subr.bf16.mxu1 %v2831_v36  ;;  %2491 = vmatprep.subr.bf16.mxu0 %v2836_v37  ;;  %v2911_v36 = vld [vmem:[%s3774_s1 + $0x220] sm:$0xff]   ;;  %v2912_v37 = vld [vmem:[%s3774_s1 + $0x1e8] sm:$0xff]  }
  0x2d   :  { %1435 = vmatprep.mubr.bf16.mxu0 %v2839_v39  ;;  %1467 = vmatprep.mubr.bf16.mxu1 %v2192_v44  ;;  %v2906_v39 = vld [vmem:[%s3775_s0 + $0x1a8] ss:$52 sps:$4 sm:$0xff]  }
  0x2e   :  { %v2920_v44 = vld [vmem:[%s3774_s1 + $0x228] sm:$0xff]  }
  0x2f   :  { %2434 = vmatpush3.bf16.msra.mxu1 %v2834_v38  ;;  %2492 = vmatpush3.bf16.msra.mxu0 %v2837_v40  ;;  %v2913_v38 = vld [vmem:[%s3774_s1 + $0x1a8] sm:$0xff]   ;;  %v2910_v40 = vld [vmem:[%s3775_s0 + $0x1b0] ss:$52 sps:$4 sm:$0xff]  }
  0x30   :  { %2435 = vmatprep.subr.bf16.mxu1 %v2838_v41  ;;  %2493 = vmatprep.subr.bf16.mxu0 %v2843_v43  ;;  %v2914_v41 = vld [vmem:[%s3775_s0 + $0x214] ss:$52 sps:$4 sm:$0xff]   ;;  %v2918_v43 = vld [vmem:[%s3775_s0 + $0x21c] ss:$52 sps:$4 sm:$0xff]  }
  0x32   :  { %1436 = vmatmul.mubr.bf16.gmra.mrb[8].mxu0 %v2842_v46  ;;  %1468 = vmatmul.mubr.bf16.gmra.mrb[8].mxu1 %v2191_v48  ;;  %v2923_v46 = vld [vmem:[%s3774_s1 + $0x1b0] sm:$0xff]  }
  0x33   :  { %2436 = vmatpush3.bf16.msra.mxu1 %v2841_v45  ;;  %2494 = vmatpush3.bf16.msra.mxu0 %v2844_v47  ;;  %v2922_v45 = vld [vmem:[%s3774_s1 + $0x1f0] sm:$0xff]   ;;  %v100_v47 = vld [vmem:[%s3775_s0 + $0x278] sm:$0xff] }
  0x34   :  { %2437 = vmatprep.subr.bf16.mxu1 %v2845_v49  ;;  %2495 = vmatprep.subr.bf16.mxu0 %v2849_v50  ;;  %v2925_v48 = vld [vmem:[%s3774_s1 + $0x270] sm:$0xff]   ;;  %v2921_v50 = vld [vmem:[%s3775_s0 + $0x218] ss:$52 sps:$4 sm:$0xff]  }
  0x35   :  { %1443 = vmatprep.mubr.bf16.mxu0 %v2852_v52  ;;  %1507 = vmatprep.mubr.bf16.mxu1 %v2863_v61  ;;  %v2916_v49 = vld [vmem:[%s3775_s0 + $0x210] ss:$52 sps:$4 sm:$0xff]   ;;  %v2193_v61 = vcombine.low %v100_v47, %v100_v47 }
  0x36   :  { %v101_v52 = vld [vmem:[%s3775_s0 + $0x280] sm:$0xff] }
  0x37   :  { %2438 = vmatpush3.bf16.msra.mxu1 %v2847_v51  ;;  %2496 = vmatpush3.bf16.msra.mxu0 %v2850_v53  ;;  %v2927_v51 = vld [vmem:[%s3774_s1 + $0x230] sm:$0xff]   ;;  %v2929_v53 = vld [vmem:[%s3774_s1 + $0x1f8] sm:$0xff]  }
  0x38   :  { %2439 = vmatprep.subr.bf16.mxu1 %v2851_v54  ;;  %2497 = vmatprep.subr.bf16.mxu0 %v2856_v55  ;;  %v2931_v54 = vld [vmem:[%s3774_s1 + $0x1b8] sm:$0xff]   ;;  %v2194_v55 = vcombine.high %v100_v47, %v100_v47 }
  0x39   :  { %v2987_v47 = vld [vmem:[%s3775_s0 + $0x228] ss:$52 sps:$4 sm:$0xff]  }
  0x3a   :  { %1444 = vmatmul.mubr.bf16.gmra.mrb[12].mxu0 %v2855_v57  ;;  %v2932_v57 = vld [vmem:[%s3774_s1 + $0x278] sm:$0xff]  }
  0x3b   :  { %2440 = vmatpush3.bf16.msra.mxu1 %v2854_v56  ;;  %2498 = vmatpush3.bf16.msra.mxu0 %v2857_v58  ;;  %v2196_v56 = vcombine.high %v101_v52, %v101_v52  ;;  %v2936_v58 = vld [vmem:[%s3774_s1 + $0x238] sm:$0xff]  }
  0x3c   :  { %2441 = vmatprep.subr.bf16.mxu1 %v2858_v59  ;;  %2499 = vmatprep.subr.bf16.mxu0 %v2860_v60  ;;  %v2937_v59 = vld [vmem:[%s3774_s1 + $0x2c0] sm:$0xff]   ;;  %v3025_v60 = vmov 0.0  }
  0x3d   :  { %1595 = vmatprep.mubr.bf16.mxu0 %v2868_v1  ;;  %v2933_v1 = vld [vmem:[%s3775_s0 + $0x18] ss:$52 sps:$4 sm:$0xff]  }
  0x3f   :  { %2442 = vmatpush3.bf16.msra.mxu1 %v2859_v62  ;;  %2500 = vmatpush3.bf16.msra.mxu0 %v2864_v63  ;;  %v2195_v62 = vcombine.low %v101_v52, %v101_v52  ;;  %v2935_v63 = vld [vmem:[%s3775_s0 + $0x1c] ss:$52 sps:$4 sm:$0xff]   ;;  %v2999_v52 = vld [vmem:[%s3775_s0 + $0x2c] ss:$52 sps:$4 sm:$0xff]  }
  0x40   :  { %2543 = vmatprep.subr.bf16.mxu1 %v2865_v0  ;;  %2601 = vmatprep.subr.bf16.mxu0 %v2870_v5  ;;  %v2940_v0 = vld [vmem:[%s3775_s0 + $0x24] ss:$52 sps:$4 sm:$0xff]  }
  0x41   :  { %v2943_v5 = vld [vmem:[%s3775_s0 + $0x84] ss:$52 sps:$4 sm:$0xff]  }
  0x42   :  { %1508 = vmatmul.mubr.bf16.vlgmr.msra.gmra.mrb[12].mxu1 %v2861_v2  ;;  %1596 = vmatmul.mubr.bf16.vlgmr.msra.gmra.mrb[16].mxu0 %v2866_v3  ;;  %v2938_v2 = vld [vmem:[%s3775_s0 + $0x20] ss:$52 sps:$4 sm:$0xff]  }
  0x43   :  { %2544 = vmatpush3.bf16.msra.mxu1 %v2869_v4  ;;  %2602 = vmatpush3.bf16.msra.mxu0 %v2871_v6  ;;  %v2941_v3 = vld [vmem:[%s3774_s1 + $0x280] sm:$0xff]   ;;  %v2945_v6 = vld [vmem:[%s3774_s1 + $0x2c8] sm:$0xff]  }
  0x44   :  { %1515 = vmatprep.mubr.bf16.mxu1 %v2872_v7  ;;  %2545 = vmatprep.subr.bf16.mxu1 %v2874_v8  ;;  %v2942_v4 = vld [vmem:[%s3774_s1 + $0x300] sm:$0xff]   ;;  %v2947_v8 = vld [vmem:[%s3774_s1 + $0x288] sm:$0xff]  }
  0x45   :  { %1603 = vmatprep.mubr.bf16.mxu0 %v2877_v10  ;;  %2603 = vmatprep.subr.bf16.mxu0 %v2880_v13  ;;  %v2948_v7 = vld [vmem:[%s3775_s0 + $0x8c] ss:$52 sps:$4 sm:$0xff]  }
  0x46   :  { %v2946_v10 = vld [vmem:[%s3775_s0 + $0x80] ss:$52 sps:$4 sm:$0xff]  }
  0x47   :  { %2546 = vmatpush3.bf16.msra.mxu1 %v2876_v9  ;;  %2604 = vmatpush3.bf16.msra.mxu0 %v2881_v14  ;;  %v2951_v9 = vld [vmem:[%s3774_s1 + $0x308] sm:$0xff]   ;;  %v2955_v14 = vld [vmem:[%s3774_s1 + $0x290] sm:$0xff]  }
  0x48   :  { %2547 = vmatprep.subr.bf16.mxu1 %v2882_v15  ;;  %2605 = vmatprep.subr.bf16.mxu0 %v2890_v19  ;;  %v2953_v13 = vld [vmem:[%s3775_s0 + $0xec] ss:$52 sps:$4 sm:$0xff]   ;;  %v2957_v15 = vld [vmem:[%s3775_s0 + $0xf4] ss:$52 sps:$4 sm:$0xff]   ;;  %v2969_v19 = vld [vmem:[%s3774_s1 + $0x318] sm:$0xff]  }
  0x4a   :  { %1516 = vmatmul.mubr.bf16.gmra.mrb[16].mxu1 %v2875_v11  ;;  %1604 = vmatmul.mubr.bf16.gmra.mrb[20].mxu0 %v2879_v12  ;;  %v2952_v11 = vld [vmem:[%s3774_s1 + $0x2d0] sm:$0xff]   ;;  %v2950_v12 = vld [vmem:[%s3775_s0 + $0x88] ss:$52 sps:$4 sm:$0xff]  }
  0x4b   :  { %1523 = vmatprep.mubr.bf16.mxu1 %v2883_v16  ;;  %2548 = vmatpush3.bf16.msra.mxu1 %v2885_v17  ;;  %v2960_v16 = vld [vmem:[%s3774_s1 + $0x310] sm:$0xff]   ;;  %v2961_v17 = vld [vmem:[%s3774_s1 + $0x2d8] sm:$0xff]  }
  0x4c   :  { %1611 = vmatprep.mubr.bf16.mxu0 %v2887_v18  ;;  %2606 = vmatpush3.bf16.msra.mxu0 %v2891_v22  ;;  %v2962_v18 = vld [vmem:[%s3774_s1 + $0x298] sm:$0xff]   ;;  %v2959_v22 = vld [vmem:[%s3775_s0 + $0xf0] ss:$52 sps:$4 sm:$0xff]  }
  0x4d   :  { %2549 = vmatprep.subr.bf16.mxu1 %v2892_v23  ;;  %2607 = vmatprep.subr.bf16.mxu0 %v2900_v27  ;;  %v2963_v23 = vld [vmem:[%s3775_s0 + $0x154] ss:$52 sps:$4 sm:$0xff]  }
  0x4e   :  { %v2979_v27 = vld [vmem:[%s3774_s1 + $0x2e8] sm:$0xff]  }
  0x4f   :  { %2550 = vmatpush3.bf16.msra.mxu1 %v2893_v24  ;;  %v2966_v24 = vld [vmem:[%s3775_s0 + $0x15c] ss:$52 sps:$4 sm:$0xff]  }
  0x50   :  { %2608 = vmatpush3.bf16.msra.mxu0 %v2901_v28  ;;  %2551 = vmatprep.subr.bf16.mxu1 %v2902_v29  ;;  %v2980_v28 = vld [vmem:[%s3774_s1 + $0x2a8] sm:$0xff]   ;;  %v2965_v29 = vld [vmem:[%s3775_s0 + $0x150] ss:$52 sps:$4 sm:$0xff]  }
  0x51   :  { %2609 = vmatprep.subr.bf16.mxu0 %v2909_v35  ;;  %v2989_v35 = vld [vmem:[%s3774_s1 + $0x2b0] sm:$0xff]  }
  0x52   :  { %1524 = vmatmul.mubr.bf16.gmra.mrb[20].mxu1 %v2886_v20  ;;  %1612 = vmatmul.mubr.bf16.gmra.mrb[24].mxu0 %v2889_v21  ;;  %v2956_v20 = vld [vmem:[%s3775_s0 + $0xe8] ss:$52 sps:$4 sm:$0xff]   ;;  %v2970_v21 = vld [vmem:[%s3774_s1 + $0x2e0] sm:$0xff]  }
  0x53   :  { %1531 = vmatprep.mubr.bf16.mxu1 %v2894_v25  ;;  %1619 = vmatprep.mubr.bf16.mxu0 %v2897_v26  ;;  %v2971_v25 = vld [vmem:[%s3774_s1 + $0x2a0] sm:$0xff]  }
  0x54   :  { %2552 = vmatpush3.bf16.msra.mxu1 %v2903_v31  ;;  %2610 = vmatpush3.bf16.msra.mxu0 %v2911_v36  ;;  %v2978_v26 = vld [vmem:[%s3774_s1 + $0x320] sm:$0xff]   ;;  %v2986_v31 = vld [vmem:[%s3774_s1 + $0x328] sm:$0xff]   ;;  %v2992_v36 = vld [vmem:[%s3774_s1 + $0x330] sm:$0xff]  }
  0x55   :  { %2553 = vmatprep.subr.bf16.mxu1 %v2912_v37  ;;  %2611 = vmatprep.subr.bf16.mxu0 %v2917_v42  ;;  %v2994_v37 = vld [vmem:[%s3774_s1 + $0x2f8] sm:$0xff]  }
  0x56   :  { %v2981_v42 = vld [vmem:[%s3775_s0 + $0x224] ss:$52 sps:$4 sm:$0xff]  }
  0x58   :  { %2554 = vmatpush3.bf16.msra.mxu1 %v2913_v38  ;;  %2612 = vmatpush3.bf16.msra.mxu0 %v2920_v44  ;;  %v2996_v38 = vld [vmem:[%s3774_s1 + $0x2b8] sm:$0xff]   ;;  %v102_v44 = vld [vmem:[%s3775_s0 + $0x288] sm:$0xff] }
  0x59   :  { %2555 = vmatprep.subr.bf16.mxu1 %v2922_v45  ;;  %2613 = vmatprep.subr.bf16.mxu0 %v2925_v48  ;;  %v103_v45 = vld [vmem:[%s3775_s0 + $0x290] sm:$0xff]  ;;  %v2198_v48 = vcombine.high %v102_v44, %v102_v44 }
  0x5a   :  { %1532 = vmatmul.mubr.bf16.gmra.mrb[24].mxu1 %v2896_v30  ;;  %1620 = vmatmul.mubr.bf16.gmra.mrb[28].mxu0 %v2899_v32  ;;  %v2968_v30 = vld [vmem:[%s3775_s0 + $0x158] ss:$52 sps:$4 sm:$0xff]   ;;  %v2988_v32 = vld [vmem:[%s3774_s1 + $0x2f0] sm:$0xff]  }
  0x5b   :  { %1539 = vmatprep.mubr.bf16.mxu1 %v2904_v33  ;;  %1627 = vmatprep.mubr.bf16.mxu0 %v2907_v34  ;;  %v2972_v33 = vld [vmem:[%s3775_s0 + $0x1bc] ss:$52 sps:$4 sm:$0xff]   ;;  %v2975_v34 = vld [vmem:[%s3775_s0 + $0x1c4] ss:$52 sps:$4 sm:$0xff]  }
  0x5c   :  { %2556 = vmatpush3.bf16.msra.mxu1 %v2923_v46  ;;  %2614 = vmatpush3.bf16.msra.mxu0 %v2927_v51  ;;  %v2983_v46 = vld [vmem:[%s3775_s0 + $0x220] ss:$52 sps:$4 sm:$0xff]   ;;  %v2199_v51 = vcombine.low %v103_v45, %v103_v45 }
  0x5d   :  { %2557 = vmatprep.subr.bf16.mxu1 %v2929_v53  ;;  %2615 = vmatprep.subr.bf16.mxu0 %v2932_v57  ;;  %v2997_v53 = vld [vmem:[%s3775_s0 + $0x28] ss:$52 sps:$4 sm:$0xff]   ;;  %v3005_v57 = vld [vmem:[%s3775_s0 + $0x98] ss:$52 sps:$4 sm:$0xff]  }
  0x60   :  { %2558 = vmatpush3.bf16.msra.mxu1 %v2931_v54  ;;  %2616 = vmatpush3.bf16.msra.mxu0 %v2936_v58  ;;  %v3001_v54 = vld [vmem:[%s3775_s0 + $0x30] ss:$52 sps:$4 sm:$0xff]  }
  0x61   :  { %2659 = vmatprep.subr.bf16.mxu1 %v2937_v59  ;;  %2732 = vmatprep.subr.bf16.mxu0 %v3025_v60  ;;  %v3006_v58 = vld [vmem:[%s3775_s0 + $0xfc] ss:$52 sps:$4 sm:$0xff]   ;;  %v3008_v59 = vld [vmem:[%s3775_s0 + $0xf8] ss:$52 sps:$4 sm:$0xff]  }
  0x62   :  { %1540 = vmatmul.mubr.bf16.gmra.mrb[28].mxu1 %v2906_v39  ;;  %1628 = vmatmul.mubr.bf16.gmra.mrb[32].mxu0 %v2910_v40  ;;  %v3000_v39 = vld [vmem:[%s3774_s1 + $0x338] sm:$0xff]  }
  0x63   :  { %1547 = vmatprep.mubr.bf16.mxu1 %v2914_v41  ;;  %1635 = vmatprep.mubr.bf16.mxu0 %v2918_v43  ;;  %v2974_v40 = vld [vmem:[%s3775_s0 + $0x1b8] ss:$52 sps:$4 sm:$0xff]   ;;  %v2977_v41 = vld [vmem:[%s3775_s0 + $0x1c0] ss:$52 sps:$4 sm:$0xff]  }
  0x64   :  { %v2984_v43 = vld [vmem:[%s3775_s0 + $0x22c] ss:$52 sps:$4 sm:$0xff]  }
  0x6a   :  { %1548 = vmatmul.mubr.bf16.gmra.mrb[32].mxu1 %v2916_v49  ;;  %1636 = vmatmul.mubr.bf16.gmra.mrb[36].mxu0 %v2921_v50  ;;  %v2200_v49 = vcombine.high %v103_v45, %v103_v45  ;;  %v2197_v50 = vcombine.low %v102_v44, %v102_v44 }
  0x6b   :  { %1555 = vmatprep.mubr.bf16.mxu1 %v2194_v55  ;;  %1643 = vmatprep.mubr.bf16.mxu0 %v2196_v56  ;;  %v3002_v55 = vld [vmem:[%s3775_s0 + $0x94] ss:$52 sps:$4 sm:$0xff]   ;;  %v3004_v56 = vld [vmem:[%s3775_s0 + $0x90] ss:$52 sps:$4 sm:$0xff]  }
  0x72   :  { %1556 = vmatmul.mubr.bf16.gmra.mrb[36].mxu1 %v2193_v61  ;;  %1644 = vmatmul.mubr.bf16.gmra.mrb[40].mxu0 %v2195_v62  ;;  %v3009_v61 = vld [vmem:[%s3775_s0 + $0x100] ss:$52 sps:$4 sm:$0xff]   ;;  %v3010_v62 = vld [vmem:[%s3775_s0 + $0x164] ss:$52 sps:$4 sm:$0xff]  }
  0x73   :  { %1683 = vmatprep.mubr.bf16.mxu1 %v2935_v63  ;;  %1771 = vmatprep.mubr.bf16.mxu0 %v2940_v0  ;;  %v3012_v63 = vld [vmem:[%s3775_s0 + $0x160] ss:$52 sps:$4 sm:$0xff]   ;;  %v3013_v0 = vld [vmem:[%s3775_s0 + $0x168] ss:$52 sps:$4 sm:$0xff]  }
  0x7a   :  { %1684 = vmatmul.mubr.bf16.vlgmr.msra.gmra.mrb[40].mxu1 %v2933_v1  ;;  %1772 = vmatmul.mubr.bf16.vlgmr.msra.gmra.mrb[44].mxu0 %v2938_v2  ;;  %v3014_v1 = vld [vmem:[%s3775_s0 + $0x1cc] ss:$52 sps:$4 sm:$0xff]   ;;  %v3016_v2 = vld [vmem:[%s3775_s0 + $0x1c8] ss:$52 sps:$4 sm:$0xff]  }
  0x7b   :  { %2660 = vmatpush3.bf16.msra.mxu1 %v2941_v3  ;;  %2733 = vmatpush3.bf16.msra.mxu0 %v2942_v4  ;;  %v3017_v3 = vld [vmem:[%s3775_s0 + $0x1d0] ss:$52 sps:$4 sm:$0xff]   ;;  %v3018_v4 = vld [vmem:[%s3775_s0 + $0x234] ss:$52 sps:$4 sm:$0xff]  }
  0x7c   :  { %1691 = vmatprep.mubr.bf16.mxu1 %v2943_v5  ;;  %2661 = vmatprep.subr.bf16.mxu1 %v2945_v6  ;;  %v104_v5 = vld [vmem:[%s3775_s0 + $0x298] sm:$0xff]  ;;  %v3020_v6 = vld [vmem:[%s3775_s0 + $0x230] ss:$52 sps:$4 sm:$0xff]  }
  0x7d   :  { %1779 = vmatprep.mubr.bf16.mxu0 %v2948_v7  ;;  %2734 = vmatprep.subr.bf16.mxu0 %v3025_v60  ;;  %v3021_v7 = vld [vmem:[%s3775_s0 + $0x238] ss:$52 sps:$4 sm:$0xff]  }
  0x7f   :  { %2662 = vmatpush3.bf16.msra.mxu1 %v2947_v8  ;;  %2735 = vmatpush3.bf16.msra.mxu0 %v2951_v9  ;;  %v2202_v8 = vcombine.high %v104_v5, %v104_v5  ;;  %v2201_v9 = vcombine.low %v104_v5, %v104_v5 }
  0x80   :  { %2663 = vmatprep.subr.bf16.mxu1 %v2952_v11  ;;  %2736 = vmatprep.subr.bf16.mxu0 %v3025_v60 }
  0x82   :  { %1692 = vmatmul.mubr.bf16.gmra.mrb[44].mxu1 %v2946_v10  ;;  %1780 = vmatmul.mubr.bf16.gmra.mrb[48].mxu0 %v2950_v12  ;;  %v3024_v10 = vld [vmem:[%s3775_s0 + $0x2a0] ss:$0 sps:$4 sm:$0xff]  }
  0x83   :  { %1699 = vmatprep.mubr.bf16.mxu1 %v2953_v13  ;;  %2664 = vmatpush3.bf16.msra.mxu1 %v2955_v14 }
  0x84   :  { %1787 = vmatprep.mubr.bf16.mxu0 %v2957_v15  ;;  %2737 = vmatpush3.bf16.msra.mxu0 %v2960_v16 }
  0x85   :  { %2665 = vmatprep.subr.bf16.mxu1 %v2961_v17  ;;  %2738 = vmatprep.subr.bf16.mxu0 %v3025_v60 }
  0x87   :  { %2666 = vmatpush3.bf16.msra.mxu1 %v2962_v18 }
  0x88   :  { %2739 = vmatpush3.bf16.msra.mxu0 %v2969_v19  ;;  %2667 = vmatprep.subr.bf16.mxu1 %v2970_v21 }
  0x89   :  { %2740 = vmatprep.subr.bf16.mxu0 %v3025_v60 }
  0x8a   :  { %1700 = vmatmul.mubr.bf16.gmra.mrb[48].mxu1 %v2956_v20  ;;  %1788 = vmatmul.mubr.bf16.gmra.mrb[52].mxu0 %v2959_v22 }
  0x8b   :  { %1707 = vmatprep.mubr.bf16.mxu1 %v2963_v23  ;;  %1795 = vmatprep.mubr.bf16.mxu0 %v2966_v24 }
  0x8c   :  { %2668 = vmatpush3.bf16.msra.mxu1 %v2971_v25  ;;  %2741 = vmatpush3.bf16.msra.mxu0 %v2978_v26 }
  0x8d   :  { %2669 = vmatprep.subr.bf16.mxu1 %v2979_v27  ;;  %2742 = vmatprep.subr.bf16.mxu0 %v3025_v60 }
  0x90   :  { %2670 = vmatpush3.bf16.msra.mxu1 %v2980_v28  ;;  %2743 = vmatpush3.bf16.msra.mxu0 %v2986_v31 }
  0x91   :  { %2671 = vmatprep.subr.bf16.mxu1 %v2988_v32  ;;  %2744 = vmatprep.subr.bf16.mxu0 %v3025_v60 }
  0x92   :  { %1708 = vmatmul.mubr.bf16.gmra.mrb[52].mxu1 %v2965_v29  ;;  %1796 = vmatmul.mubr.bf16.gmra.mrb[56].mxu0 %v2968_v30 }
  0x93   :  { %1715 = vmatprep.mubr.bf16.mxu1 %v2972_v33  ;;  %1803 = vmatprep.mubr.bf16.mxu0 %v2975_v34 }
  0x94   :  { %2672 = vmatpush3.bf16.msra.mxu1 %v2989_v35  ;;  %2745 = vmatpush3.bf16.msra.mxu0 %v2992_v36 }
  0x95   :  { %2673 = vmatprep.subr.bf16.mxu1 %v2994_v37  ;;  %2746 = vmatprep.subr.bf16.mxu0 %v3025_v60 }
  0x98   :  { %2674 = vmatpush3.bf16.msra.mxu1 %v2996_v38  ;;  %2747 = vmatpush3.bf16.msra.mxu0 %v3000_v39 }
  0x9a   :  { %1716 = vmatmul.mubr.bf16.gmra.mrb[56].mxu1 %v2974_v40  ;;  %1804 = vmatmul.mubr.bf16.gmra.mrb[60].mxu0 %v2977_v41 }
  0x9b   :  { %1723 = vmatprep.mubr.bf16.mxu1 %v2981_v42  ;;  %1811 = vmatprep.mubr.bf16.mxu0 %v2984_v43 }
  0xa2   :  { %1724 = vmatmul.mubr.bf16.gmra.mrb[60].mxu1 %v2983_v46  ;;  %1812 = vmatmul.mubr.bf16.gmra.mrb[64].mxu0 %v2987_v47 }
  0xa3   :  { %1731 = vmatprep.mubr.bf16.mxu1 %v2198_v48  ;;  %1819 = vmatprep.mubr.bf16.mxu0 %v2200_v49 }
  0xaa   :  { %1732 = vmatmul.mubr.bf16.gmra.mrb[64].mxu1 %v2197_v50  ;;  %1820 = vmatmul.mubr.bf16.gmra.mrb[68].mxu0 %v2199_v51 }
  0xab   :  { %1859 = vmatprep.mubr.bf16.mxu1 %v2999_v52  ;;  %2748 = vmatprep.mubr.msk.bf16.mxu0 %vm3026_vm0, %v3025_v60 }
  0xb2   :  { %1860 = vmatmul.mubr.bf16.vlgmr.msra.gmra.mrb[68].mxu1 %v2997_v53  ;;  %2749 = vmatmul.mubr.bf16.vlgmr.msra.gmra.mrb[72].mxu0 %v3001_v54  ;;  %v3653_v53 = vld [vmem:[%s3776_s2] ss:$0 sm:$0xff] }
  0xb3   :  { %1867 = vmatprep.mubr.bf16.mxu1 %v3002_v55  ;;  %2752 = vmatprep.mubr.msk.bf16.mxu0 %vm3026_vm0, %v3025_v60 }
  0xba   :  { %1868 = vmatmul.mubr.bf16.gmra.mrb[72].mxu1 %v3004_v56  ;;  %2753 = vmatmul.mubr.bf16.gmra.mrb[76].mxu0 %v3005_v57 }
  0xbb   :  { %1875 = vmatprep.mubr.bf16.mxu1 %v3006_v58  ;;  %2756 = vmatprep.mubr.msk.bf16.mxu0 %vm3026_vm0, %v3025_v60 }
  0xc2   :  { %1876 = vmatmul.mubr.bf16.gmra.mrb[76].mxu1 %v3008_v59  ;;  %2757 = vmatmul.mubr.bf16.gmra.mrb[80].mxu0 %v3009_v61 }
  0xc3   :  { %1883 = vmatprep.mubr.bf16.mxu1 %v3010_v62  ;;  %2760 = vmatprep.mubr.msk.bf16.mxu0 %vm3026_vm0, %v3025_v60 }
  0xca   :  { %1884 = vmatmul.mubr.bf16.gmra.mrb[80].mxu1 %v3012_v63  ;;  %2761 = vmatmul.mubr.bf16.gmra.mrb[84].mxu0 %v3013_v0 }
  0xcb   :  { %1891 = vmatprep.mubr.bf16.mxu1 %v3014_v1  ;;  %2764 = vmatprep.mubr.msk.bf16.mxu0 %vm3026_vm0, %v3025_v60 }
  0xd2   :  { %1892 = vmatmul.mubr.bf16.gmra.mrb[84].mxu1 %v3016_v2  ;;  %2765 = vmatmul.mubr.bf16.gmra.mrb[88].mxu0 %v3017_v3 }
  0xd3   :  { %1899 = vmatprep.mubr.bf16.mxu1 %v3018_v4  ;;  %2768 = vmatprep.mubr.msk.bf16.mxu0 %vm3026_vm0, %v3025_v60 }
  0xda   :  { %1900 = vmatmul.mubr.bf16.gmra.mrb[88].mxu1 %v3020_v6  ;;  %2769 = vmatmul.mubr.bf16.gmra.mrb[92].mxu0 %v3021_v7 }
  0xdb   :  { %1907 = vmatprep.mubr.bf16.mxu1 %v2202_v8  ;;  %2772 = vmatprep.mubr.msk.bf16.mxu0 %vm3026_vm0, %v3025_v60 }
  0xe2   :  { %1908 = vmatmul.mubr.bf16.gmra.mrb[92].mxu1 %v2201_v9  ;;  %2773 = vmatmul.mubr.bf16.gmra.mrb[96].mxu0 %v3024_v10 }
  0xf5   :  { %v2409_v11 = vpop.f32.mrb[0].mxu1  ;;  %v2385_v12 = vpop.f32.mrb[0].mxu0 }
  0xf6   :  { %v2410_v13 = vpop.f32.mrb[1].mxu1  ;;  %v2386_v14 = vpop.f32.mrb[1].mxu0 }
  0xf7   :  { %v3636_v15 = vadd.f32 %v2410_v13, %v2409_v11  ;;  %v2412_v16 = vpop.f32.mrb[2].mxu1  ;;  %v2387_v17 = vadd.f32 %v2386_v14, %v2385_v12  ;;  %v2388_v18 = vpop.f32.mrb[2].mxu0 }
  0xf8   :  { %v2413_v19 = vpop.f32.mrb[3].mxu1  ;;  %v2389_v20 = vpop.f32.mrb[3].mxu0 }
  0xf9   :  { %v3638_v21 = vadd.f32 %v2413_v19, %v2412_v16  ;;  %v2390_v60 = vadd.f32 %v2389_v20, %v2388_v18  ;;  %v1422_v56 = vadd.f32 %v2387_v17, %v3653_v53 }
  0xfb   :  { %v1425_v0 = vadd.f32 %v2390_v60, %v3653_v53 }
  0xfd   :  { %v2391_v22 = vpop.f32.mrb[4].mxu0  ;;  %v2415_v23 = vpop.f32.mrb[4].mxu1 }
  0xfe   :  { %v2392_v24 = vpop.f32.mrb[5].mxu0  ;;  %v2416_v25 = vpop.f32.mrb[5].mxu1 }
  0xff   :  { %v2393_v26 = vadd.f32 %v2392_v24, %v2391_v22  ;;  %v2394_v27 = vpop.f32.mrb[6].mxu0  ;;  %v3640_v28 = vadd.f32 %v2416_v25, %v2415_v23  ;;  %v2418_v29 = vpop.f32.mrb[6].mxu1 }
 0x100   :  { %v2395_v30 = vpop.f32.mrb[7].mxu0  ;;  %v2419_v31 = vpop.f32.mrb[7].mxu1 }
 0x101   :  { %v2396_v32 = vadd.f32 %v2395_v30, %v2394_v27  ;;  %v3642_v33 = vadd.f32 %v2419_v31, %v2418_v29  ;;  %v1430_v11 = vadd.f32 %v2393_v26, %v3653_v53 }
 0x103   :  { %v1433_v19 = vadd.f32 %v2396_v32, %v3653_v53 }
 0x105   :  { %v2397_v34 = vpop.f32.mrb[8].mxu0  ;;  %v2421_v35 = vpop.f32.mrb[8].mxu1 }
 0x106   :  { %v2398_v36 = vpop.f32.mrb[9].mxu0  ;;  %v2422_v37 = vpop.f32.mrb[9].mxu1 }
 0x107   :  { %v2399_v38 = vadd.f32 %v2398_v36, %v2397_v34  ;;  %v2400_v39 = vpop.f32.mrb[10].mxu0  ;;  %v3644_v40 = vadd.f32 %v2422_v37, %v2421_v35  ;;  %v2424_v41 = vpop.f32.mrb[10].mxu1 }
 0x108   :  { %v2401_v42 = vpop.f32.mrb[11].mxu0  ;;  %v2425_v43 = vpop.f32.mrb[11].mxu1 }
 0x109   :  { %v2402_v44 = vadd.f32 %v2401_v42, %v2400_v39  ;;  %v1438_v31 = vadd.f32 %v2399_v38, %v3653_v53 }
 0x10b   :  { %v1441_v41 = vadd.f32 %v2402_v44, %v3653_v53 }
 0x10d   :  { %v2403_v45 = vpop.f32.mrb[12].mxu0 }
 0x10e   :  { %v2404_v46 = vpop.f32.mrb[13].mxu0 }
 0x10f   :  { %v3646_v47 = vadd.f32 %v2404_v46, %v2403_v45  ;;  %v2406_v48 = vpop.f32.mrb[14].mxu0 }
 0x110   :  { %v2407_v49 = vpop.f32.mrb[15].mxu0 }
 0x111   :  { %v3648_v50 = vadd.f32 %v2407_v49, %v2406_v48 }
 0x115   :  { %v2443_v51 = vpop.f32.mrb[12].mxu1  ;;  %v2501_v52 = vpop.f32.mrb[16].mxu0 }
 0x116   :  { %v2444_v54 = vpop.f32.mrb[13].mxu1  ;;  %v2502_v55 = vpop.f32.mrb[17].mxu0 }
 0x117   :  { %v2445_v57 = vadd.f32 %v2444_v54, %v2443_v51  ;;  %v2446_v58 = vpop.f32.mrb[14].mxu1  ;;  %v2503_v59 = vadd.f32 %v2502_v55, %v2501_v52  ;;  %v2504_v61 = vpop.f32.mrb[18].mxu0  ;;  %v1446_v55 = vadd.f32 %v3646_v47, %v3653_v53 }
 0x118   :  { %v2447_v62 = vpop.f32.mrb[15].mxu1  ;;  %v2505_v63 = vpop.f32.mrb[19].mxu0 }
 0x119   :  { %v1510_v1 = vadd.f32 %v2445_v57, %v1422_v56  ;;  %v2448_v2 = vadd.f32 %v2447_v62, %v2446_v58  ;;  %v2506_v3 = vadd.f32 %v2505_v63, %v2504_v61  ;;  %v1449_v62 = vadd.f32 %v3648_v50, %v3653_v53 }
 0x11b   :  { %v1513_v4 = vadd.f32 %v2448_v2, %v1425_v0  ;;  %v3657_v5 = vadd.f32 %v2503_v59, %v1510_v1 }
 0x11d   :  { %v3659_v6 = vadd.f32 %v2506_v3, %v1513_v4  ;;  %v2449_v7 = vpop.f32.mrb[16].mxu1  ;;  %v2507_v8 = vpop.f32.mrb[20].mxu0 }
 0x11e   :  { %v2450_v9 = vpop.f32.mrb[17].mxu1  ;;  %v2508_v10 = vpop.f32.mrb[21].mxu0 }
 0x11f   :  { %v2451_v12 = vadd.f32 %v2450_v9, %v2449_v7  ;;  %v2452_v13 = vpop.f32.mrb[18].mxu1  ;;  %v2509_v14 = vadd.f32 %v2508_v10, %v2507_v8  ;;  %v2510_v16 = vpop.f32.mrb[22].mxu0  ;;  %v1454_v10 = vadd.f32 %v3636_v15, %v3653_v53 }
 0x120   :  { %v2453_v17 = vpop.f32.mrb[19].mxu1  ;;  %v2511_v18 = vpop.f32.mrb[23].mxu0 }
 0x121   :  { %v1518_v20 = vadd.f32 %v2451_v12, %v1430_v11  ;;  %v2454_v60 = vadd.f32 %v2453_v17, %v2452_v13  ;;  %v2512_v22 = vadd.f32 %v2511_v18, %v2510_v16  ;;  %v1457_v17 = vadd.f32 %v3638_v21, %v3653_v53 }
 0x123   :  { %v1521_v23 = vadd.f32 %v2454_v60, %v1433_v19  ;;  %v3663_v24 = vadd.f32 %v2509_v14, %v1518_v20 }
 0x125   :  { %v3665_v25 = vadd.f32 %v2512_v22, %v1521_v23  ;;  %v2455_v27 = vpop.f32.mrb[20].mxu1  ;;  %v2513_v29 = vpop.f32.mrb[24].mxu0 }
 0x126   :  { %v2456_v30 = vpop.f32.mrb[21].mxu1  ;;  %v2514_v26 = vpop.f32.mrb[25].mxu0 }
 0x127   :  { %v2457_v34 = vadd.f32 %v2456_v30, %v2455_v27  ;;  %v2458_v35 = vpop.f32.mrb[22].mxu1  ;;  %v2515_v36 = vadd.f32 %v2514_v26, %v2513_v29  ;;  %v2516_v37 = vpop.f32.mrb[26].mxu0  ;;  %v1462_v26 = vadd.f32 %v3640_v28, %v3653_v53 }
 0x128   :  { %v2459_v39 = vpop.f32.mrb[23].mxu1  ;;  %v2517_v32 = vpop.f32.mrb[27].mxu0 }
 0x129   :  { %v1526_v42 = vadd.f32 %v2457_v34, %v1438_v31  ;;  %v2460_v43 = vadd.f32 %v2459_v39, %v2458_v35  ;;  %v2518_v45 = vadd.f32 %v2517_v32, %v2516_v37  ;;  %v1465_v39 = vadd.f32 %v3642_v33, %v3653_v53 }
 0x12b   :  { %v1529_v46 = vadd.f32 %v2460_v43, %v1441_v41  ;;  %v3669_v48 = vadd.f32 %v2515_v36, %v1526_v42 }
 0x12d   :  { %v3671_v49 = vadd.f32 %v2518_v45, %v1529_v46  ;;  %v2461_v51 = vpop.f32.mrb[24].mxu1  ;;  %v2519_v52 = vpop.f32.mrb[28].mxu0 }
 0x12e   :  { %v2462_v54 = vpop.f32.mrb[25].mxu1  ;;  %v2520_v38 = vpop.f32.mrb[29].mxu0 }
 0x12f   :  { %v2463_v56 = vadd.f32 %v2462_v54, %v2461_v51  ;;  %v2464_v57 = vpop.f32.mrb[26].mxu1  ;;  %v2521_v58 = vadd.f32 %v2520_v38, %v2519_v52  ;;  %v2522_v59 = vpop.f32.mrb[30].mxu0  ;;  %v1470_v38 = vadd.f32 %v3644_v40, %v3653_v53 }
 0x130   :  { %v2465_v44 = vpop.f32.mrb[27].mxu1  ;;  %v2523_v61 = vpop.f32.mrb[31].mxu0 }
 0x131   :  { %v1534_v63 = vadd.f32 %v2463_v56, %v1446_v55  ;;  %v2466_v0 = vadd.f32 %v2465_v44, %v2464_v57  ;;  %v2524_v1 = vadd.f32 %v2523_v61, %v2522_v59 }
 0x133   :  { %v1537_v2 = vadd.f32 %v2466_v0, %v1449_v62  ;;  %v3677_v3 = vadd.f32 %v2521_v58, %v1534_v63 }
 0x135   :  { %v3679_v4 = vadd.f32 %v2524_v1, %v1537_v2  ;;  %v2467_v7 = vpop.f32.mrb[28].mxu1  ;;  %v2525_v8 = vpop.f32.mrb[32].mxu0 }
 0x136   :  { %v2468_v47 = vpop.f32.mrb[29].mxu1  ;;  %v2526_v9 = vpop.f32.mrb[33].mxu0 }
 0x137   :  { %v2469_v11 = vadd.f32 %v2468_v47, %v2467_v7  ;;  %v2470_v12 = vpop.f32.mrb[30].mxu1  ;;  %v2527_v13 = vadd.f32 %v2526_v9, %v2525_v8  ;;  %v2528_v14 = vpop.f32.mrb[34].mxu0 }
 0x138   :  { %v2471_v50 = vpop.f32.mrb[31].mxu1  ;;  %v2529_v16 = vpop.f32.mrb[35].mxu0 }
 0x139   :  { %v1542_v18 = vadd.f32 %v2469_v11, %v1454_v10  ;;  %v2472_v19 = vadd.f32 %v2471_v50, %v2470_v12  ;;  %v2530_v20 = vadd.f32 %v2529_v16, %v2528_v14 }
 0x13b   :  { %v1545_v60 = vadd.f32 %v2472_v19, %v1457_v17  ;;  %v3685_v22 = vadd.f32 %v2527_v13, %v1542_v18 }
 0x13d   :  { %v3687_v23 = vadd.f32 %v2530_v20, %v1545_v60  ;;  %v2473_v27 = vpop.f32.mrb[32].mxu1  ;;  %v2531_v29 = vpop.f32.mrb[36].mxu0 }
 0x13e   :  { %v2474_v15 = vpop.f32.mrb[33].mxu1  ;;  %v2532_v30 = vpop.f32.mrb[37].mxu0 }
 0x13f   :  { %v2475_v31 = vadd.f32 %v2474_v15, %v2473_v27  ;;  %v2476_v34 = vpop.f32.mrb[34].mxu1  ;;  %v2533_v35 = vadd.f32 %v2532_v30, %v2531_v29  ;;  %v2534_v36 = vpop.f32.mrb[38].mxu0 }
 0x140   :  { %v2477_v21 = vpop.f32.mrb[35].mxu1  ;;  %v2535_v37 = vpop.f32.mrb[39].mxu0 }
 0x141   :  { %v1550_v32 = vadd.f32 %v2475_v31, %v1462_v26  ;;  %v2478_v41 = vadd.f32 %v2477_v21, %v2476_v34  ;;  %v2536_v42 = vadd.f32 %v2535_v37, %v2534_v36 }
 0x143   :  { %v1553_v43 = vadd.f32 %v2478_v41, %v1465_v39  ;;  %v3693_v45 = vadd.f32 %v2533_v35, %v1550_v32 }
 0x145   :  { %v3695_v46 = vadd.f32 %v2536_v42, %v1553_v43  ;;  %v2479_v51 = vpop.f32.mrb[36].mxu1  ;;  %v2537_v52 = vpop.f32.mrb[40].mxu0 }
 0x146   :  { %v2480_v28 = vpop.f32.mrb[37].mxu1  ;;  %v2538_v54 = vpop.f32.mrb[41].mxu0 }
 0x147   :  { %v2481_v55 = vadd.f32 %v2480_v28, %v2479_v51  ;;  %v2482_v56 = vpop.f32.mrb[38].mxu1  ;;  %v2539_v57 = vadd.f32 %v2538_v54, %v2537_v52  ;;  %v2540_v58 = vpop.f32.mrb[42].mxu0 }
 0x148   :  { %v2483_v33 = vpop.f32.mrb[39].mxu1  ;;  %v2541_v59 = vpop.f32.mrb[43].mxu0 }
 0x149   :  { %v1558_v44 = vadd.f32 %v2481_v55, %v1470_v38 }
 0x14b   :  { %v3699_v61 = vadd.f32 %v2539_v57, %v1558_v44 }
 0x14d   :  { %v2559_v62 = vpop.f32.mrb[40].mxu1  ;;  %v2617_v63 = vpop.f32.mrb[44].mxu0 }
 0x14e   :  { %v2560_v0 = vpop.f32.mrb[41].mxu1  ;;  %v2618_v1 = vpop.f32.mrb[45].mxu0 }
 0x14f   :  { %v2561_v2 = vadd.f32 %v2560_v0, %v2559_v62  ;;  %v2562_v7 = vpop.f32.mrb[42].mxu1  ;;  %v2619_v8 = vadd.f32 %v2618_v1, %v2617_v63  ;;  %v2620_v47 = vpop.f32.mrb[46].mxu0 }
 0x150   :  { %v2563_v9 = vpop.f32.mrb[43].mxu1  ;;  %v2621_v10 = vpop.f32.mrb[47].mxu0 }
 0x151   :  { %v1686_v40 = vadd.f32 %v2561_v2, %v3657_v5  ;;  %v2564_v53 = vadd.f32 %v2563_v9, %v2562_v7  ;;  %v2622_v11 = vadd.f32 %v2621_v10, %v2620_v47 }
 0x153   :  { %v1689_v12 = vadd.f32 %v2564_v53, %v3659_v6  ;;  %v3703_v13 = vadd.f32 %v2619_v8, %v1686_v40 }
 0x155   :  { %v3705_v14 = vadd.f32 %v2622_v11, %v1689_v12  ;;  %v2565_v50 = vpop.f32.mrb[44].mxu1  ;;  %v2623_v16 = vpop.f32.mrb[48].mxu0 }
 0x156   :  { %v2566_v17 = vpop.f32.mrb[45].mxu1  ;;  %v2624_v18 = vpop.f32.mrb[49].mxu0 }
 0x157   :  { %v2567_v19 = vadd.f32 %v2566_v17, %v2565_v50  ;;  %v2568_v20 = vpop.f32.mrb[46].mxu1  ;;  %v2625_v60 = vadd.f32 %v2624_v18, %v2623_v16  ;;  %v2626_v27 = vpop.f32.mrb[50].mxu0 }
 0x158   :  { %v2569_v29 = vpop.f32.mrb[47].mxu1  ;;  %v2627_v15 = vpop.f32.mrb[51].mxu0 }
 0x159   :  { %v1694_v5 = vadd.f32 %v2567_v19, %v3663_v24  ;;  %v2570_v30 = vadd.f32 %v2569_v29, %v2568_v20  ;;  %v2628_v26 = vadd.f32 %v2627_v15, %v2626_v27 }
 0x15b   :  { %v1697_v6 = vadd.f32 %v2570_v30, %v3665_v25  ;;  %v3709_v31 = vadd.f32 %v2625_v60, %v1694_v5 }
 0x15d   :  { %v3711_v34 = vadd.f32 %v2628_v26, %v1697_v6  ;;  %v2571_v35 = vpop.f32.mrb[48].mxu1  ;;  %v2629_v36 = vpop.f32.mrb[52].mxu0 }
 0x15e   :  { %v2572_v21 = vpop.f32.mrb[49].mxu1  ;;  %v2630_v37 = vpop.f32.mrb[53].mxu0 }
 0x15f   :  { %v2573_v39 = vadd.f32 %v2572_v21, %v2571_v35  ;;  %v2574_v32 = vpop.f32.mrb[50].mxu1  ;;  %v2631_v41 = vadd.f32 %v2630_v37, %v2629_v36  ;;  %v2632_v42 = vpop.f32.mrb[54].mxu0 }
 0x160   :  { %v2575_v43 = vpop.f32.mrb[51].mxu1  ;;  %v2633_v51 = vpop.f32.mrb[55].mxu0 }
 0x161   :  { %v1702_v24 = vadd.f32 %v2573_v39, %v3669_v48  ;;  %v2576_v52 = vadd.f32 %v2575_v43, %v2574_v32  ;;  %v2634_v28 = vadd.f32 %v2633_v51, %v2632_v42 }
 0x163   :  { %v1705_v25 = vadd.f32 %v2576_v52, %v3671_v49  ;;  %v3715_v54 = vadd.f32 %v2631_v41, %v1702_v24 }
 0x165   :  { %v3717_v38 = vadd.f32 %v2634_v28, %v1705_v25  ;;  %v2577_v55 = vpop.f32.mrb[52].mxu1  ;;  %v2635_v56 = vpop.f32.mrb[56].mxu0 }
 0x166   :  { %v2578_v57 = vpop.f32.mrb[53].mxu1  ;;  %v2636_v58 = vpop.f32.mrb[57].mxu0 }
 0x167   :  { %v2579_v33 = vadd.f32 %v2578_v57, %v2577_v55  ;;  %v2580_v59 = vpop.f32.mrb[54].mxu1  ;;  %v2637_v44 = vadd.f32 %v2636_v58, %v2635_v56  ;;  %v2638_v62 = vpop.f32.mrb[58].mxu0 }
 0x168   :  { %v2581_v63 = vpop.f32.mrb[55].mxu1  ;;  %v2639_v0 = vpop.f32.mrb[59].mxu0 }
 0x169   :  { %v1710_v48 = vadd.f32 %v2579_v33, %v3677_v3  ;;  %v2582_v1 = vadd.f32 %v2581_v63, %v2580_v59  ;;  %v2640_v2 = vadd.f32 %v2639_v0, %v2638_v62 }
 0x16b   :  { %v1713_v49 = vadd.f32 %v2582_v1, %v3679_v4  ;;  %v3721_v7 = vadd.f32 %v2637_v44, %v1710_v48 }
 0x16d   :  { %v3723_v8 = vadd.f32 %v2640_v2, %v1713_v49  ;;  %v2583_v47 = vpop.f32.mrb[56].mxu1  ;;  %v2641_v9 = vpop.f32.mrb[60].mxu0 }
 0x16e   :  { %v2584_v10 = vpop.f32.mrb[57].mxu1  ;;  %v2642_v40 = vpop.f32.mrb[61].mxu0 }
 0x16f   :  { %v2585_v53 = vadd.f32 %v2584_v10, %v2583_v47  ;;  %v2586_v11 = vpop.f32.mrb[58].mxu1  ;;  %v2643_v12 = vadd.f32 %v2642_v40, %v2641_v9  ;;  %v2644_v50 = vpop.f32.mrb[62].mxu0 }
 0x170   :  { %v2587_v16 = vpop.f32.mrb[59].mxu1  ;;  %v2645_v17 = vpop.f32.mrb[63].mxu0 }
 0x171   :  { %v1718_v3 = vadd.f32 %v2585_v53, %v3685_v22  ;;  %v2588_v18 = vadd.f32 %v2587_v16, %v2586_v11  ;;  %v2646_v19 = vadd.f32 %v2645_v17, %v2644_v50 }
 0x173   :  { %v1721_v4 = vadd.f32 %v2588_v18, %v3687_v23  ;;  %v3727_v20 = vadd.f32 %v2643_v12, %v1718_v3 }
 0x175   :  { %v3729_v60 = vadd.f32 %v2646_v19, %v1721_v4  ;;  %v2589_v27 = vpop.f32.mrb[60].mxu1  ;;  %v2647_v29 = vpop.f32.mrb[64].mxu0 }
 0x176   :  { %v2590_v15 = vpop.f32.mrb[61].mxu1  ;;  %v2648_v5 = vpop.f32.mrb[65].mxu0 }
 0x177   :  { %v2591_v30 = vadd.f32 %v2590_v15, %v2589_v27  ;;  %v2592_v26 = vpop.f32.mrb[62].mxu1  ;;  %v2649_v6 = vadd.f32 %v2648_v5, %v2647_v29  ;;  %v2650_v35 = vpop.f32.mrb[66].mxu0 }
 0x178   :  { %v2593_v36 = vpop.f32.mrb[63].mxu1  ;;  %v2651_v21 = vpop.f32.mrb[67].mxu0 }
 0x179   :  { %v1726_v22 = vadd.f32 %v2591_v30, %v3693_v45  ;;  %v2594_v37 = vadd.f32 %v2593_v36, %v2592_v26  ;;  %v2652_v39 = vadd.f32 %v2651_v21, %v2650_v35 }
 0x17b   :  { %v1729_v23 = vadd.f32 %v2594_v37, %v3695_v46  ;;  %v3733_v32 = vadd.f32 %v2649_v6, %v1726_v22 }
 0x17d   :  { %v3735_v41 = vadd.f32 %v2652_v39, %v1729_v23  ;;  %v2595_v42 = vpop.f32.mrb[64].mxu1  ;;  %v2653_v43 = vpop.f32.mrb[68].mxu0 }
 0x17e   :  { %v2596_v51 = vpop.f32.mrb[65].mxu1  ;;  %v2654_v24 = vpop.f32.mrb[69].mxu0 }
 0x17f   :  { %v2597_v52 = vadd.f32 %v2596_v51, %v2595_v42  ;;  %v2598_v28 = vpop.f32.mrb[66].mxu1  ;;  %v2655_v25 = vadd.f32 %v2654_v24, %v2653_v43  ;;  %v2656_v55 = vpop.f32.mrb[70].mxu0 }
 0x180   :  { %v2599_v56 = vpop.f32.mrb[67].mxu1  ;;  %v2657_v57 = vpop.f32.mrb[71].mxu0 }
 0x181   :  { %v1734_v45 = vadd.f32 %v2597_v52, %v3699_v61 }
 0x183   :  { %v3738_v58 = vadd.f32 %v2655_v25, %v1734_v45 }
 0x185   :  { %v2675_v33 = vpop.f32.mrb[68].mxu1  ;;  %v1949_v46 = vpop.f32.mrb[72].mxu0 }
 0x186   :  { %v2676_v59 = vpop.f32.mrb[69].mxu1  ;;  %v2750_v44 = vpop.f32.mrb[73].mxu0 }
 0x187   :  { %v2677_v62 = vadd.f32 %v2676_v59, %v2675_v33  ;;  %v2678_v63 = vpop.f32.mrb[70].mxu1  ;;  %v1952_v0 = vpop.f32.mrb[74].mxu0 }
 0x188   :  { %v2679_v48 = vpop.f32.mrb[71].mxu1  ;;  %v2751_v1 = vpop.f32.mrb[75].mxu0 }
 0x189   :  { %v2680_v2 = vadd.f32 %v2679_v48, %v2678_v63  ;;  %v1862_v49 = vadd.f32 %v2677_v62, %v3703_v13 }
 0x18b   :  { %v1950_v47 = vadd.f32 %v1949_v46, %v1862_v49  ;;  %v1865_v9 = vadd.f32 %v2680_v2, %v3705_v14 }
 0x18d   :  { %v2016_v10 = vmul.f32 0.2, %v1950_v47  ;;  %v1953_v40 = vadd.f32 %v1952_v0, %v1865_v9  ;;  %v2681_v61 = vpop.f32.mrb[72].mxu1  ;;  %v1957_v53 = vpop.f32.mrb[76].mxu0  ;;  %vm2003_vm1 = vcmp.gt.f32.partialorder %v1950_v47, 0.0 }
 0x18e   :  { %v2682_v11 = vpop.f32.mrb[73].mxu1  ;;  %v2754_v12 = vpop.f32.mrb[77].mxu0 }
 0x18f   :  { %vm2004_vm2 = vcmp.gt.f32.partialorder %v1953_v40, 0.0  ;;  %v2017_v50 = vmul.f32 0.2, %v1953_v40  ;;  %v2683_v16 = vadd.f32 %v2682_v11, %v2681_v61  ;;  %v2684_v17 = vpop.f32.mrb[74].mxu1  ;;  %v1960_v3 = vpop.f32.mrb[78].mxu0  ;;  %v2029_v4 = vsel %vm2003_vm1, %v1950_v47, %v2016_v10 }
 0x190   :  { %v2685_v18 = vpop.f32.mrb[75].mxu1  ;;  %v2755_v19 = vpop.f32.mrb[79].mxu0 }
 0x191   :  { %v2030_v27 = vsel %vm2004_vm2, %v1953_v40, %v2017_v50  ;;  %v2686_v13 = vadd.f32 %v2685_v18, %v2684_v17  ;;  %v1870_v29 = vadd.f32 %v2683_v16, %v3709_v31 }
 0x192   :  { %v2337_v14 = vpack.c.bf16 %v2030_v27, %v2029_v4 }
 0x193   :  { %v1958_v15 = vadd.f32 %v1957_v53, %v1870_v29  ;;  %v1873_v5 = vadd.f32 %v2686_v13, %v3711_v34 }
 0x194   :  { %2338 = vst [vmem:[%s3777_s3] sm:$0xff] %v2337_v14  }
 0x195   :  { %v2018_v30 = vmul.f32 0.2, %v1958_v15  ;;  %v1961_v26 = vadd.f32 %v1960_v3, %v1873_v5  ;;  %v2687_v6 = vpop.f32.mrb[76].mxu1  ;;  %v1965_v35 = vpop.f32.mrb[80].mxu0  ;;  %vm2005_vm3 = vcmp.gt.f32.partialorder %v1958_v15, 0.0 }
 0x196   :  { %v2688_v36 = vpop.f32.mrb[77].mxu1  ;;  %v2758_v21 = vpop.f32.mrb[81].mxu0 }
 0x197   :  { %vm2006_vm4 = vcmp.gt.f32.partialorder %v1961_v26, 0.0  ;;  %v2019_v22 = vmul.f32 0.2, %v1961_v26  ;;  %v2689_v37 = vadd.f32 %v2688_v36, %v2687_v6  ;;  %v2690_v39 = vpop.f32.mrb[78].mxu1  ;;  %v1968_v31 = vpop.f32.mrb[82].mxu0  ;;  %v2031_v43 = vsel %vm2005_vm3, %v1958_v15, %v2018_v30 }
 0x198   :  { %v2691_v23 = vpop.f32.mrb[79].mxu1  ;;  %v2759_v42 = vpop.f32.mrb[83].mxu0 }
 0x199   :  { %v2032_v34 = vsel %vm2006_vm4, %v1961_v26, %v2019_v22  ;;  %v2692_v51 = vadd.f32 %v2691_v23, %v2690_v39  ;;  %v1878_v24 = vadd.f32 %v2689_v37, %v3715_v54 }
 0x19a   :  { %v2342_v52 = vpack.c.bf16 %v2032_v34, %v2031_v43 }
 0x19b   :  { %v1966_v28 = vadd.f32 %v1965_v35, %v1878_v24  ;;  %v1881_v25 = vadd.f32 %v2692_v51, %v3717_v38 }
 0x19c   :  { %2364 = vst [vmem:[%s3777_s3 + $0x8] sm:$0xff] %v2342_v52  }
 0x19d   :  { %v2020_v55 = vmul.f32 0.2, %v1966_v28  ;;  %v1969_v56 = vadd.f32 %v1968_v31, %v1881_v25  ;;  %v2693_v57 = vpop.f32.mrb[80].mxu1  ;;  %v1973_v45 = vpop.f32.mrb[84].mxu0  ;;  %vm2007_vm5 = vcmp.gt.f32.partialorder %v1966_v28, 0.0 }
 0x19e   :  { %v2694_v33 = vpop.f32.mrb[81].mxu1  ;;  %v2762_v46 = vpop.f32.mrb[85].mxu0 }
 0x19f   :  { %vm2008_vm6 = vcmp.gt.f32.partialorder %v1969_v56, 0.0  ;;  %v2021_v59 = vmul.f32 0.2, %v1969_v56  ;;  %v2695_v44 = vadd.f32 %v2694_v33, %v2693_v57  ;;  %v2696_v62 = vpop.f32.mrb[82].mxu1  ;;  %v1976_v54 = vpop.f32.mrb[86].mxu0  ;;  %v2033_v48 = vsel %vm2007_vm5, %v1966_v28, %v2020_v55 }
 0x1a0   :  { %v2697_v63 = vpop.f32.mrb[83].mxu1  ;;  %v2763_v0 = vpop.f32.mrb[87].mxu0 }
 0x1a1   :  { %v2034_v38 = vsel %vm2008_vm6, %v1969_v56, %v2021_v59  ;;  %v2698_v1 = vadd.f32 %v2697_v63, %v2696_v62  ;;  %v1886_v2 = vadd.f32 %v2695_v44, %v3721_v7 }
 0x1a2   :  { %v2347_v49 = vpack.c.bf16 %v2034_v38, %v2033_v48 }
 0x1a3   :  { %v1974_v47 = vadd.f32 %v1973_v45, %v1886_v2  ;;  %v1889_v9 = vadd.f32 %v2698_v1, %v3723_v8 }
 0x1a4   :  { %2365 = vst [vmem:[%s3777_s3 + $0x10] sm:$0xff] %v2347_v49  }
 0x1a5   :  { %v2022_v10 = vmul.f32 0.2, %v1974_v47  ;;  %v1977_v40 = vadd.f32 %v1976_v54, %v1889_v9  ;;  %v2699_v61 = vpop.f32.mrb[84].mxu1  ;;  %v1981_v53 = vpop.f32.mrb[88].mxu0  ;;  %vm2009_vm7 = vcmp.gt.f32.partialorder %v1974_v47, 0.0 }
 0x1a6   :  { %v2700_v11 = vpop.f32.mrb[85].mxu1  ;;  %v2766_v12 = vpop.f32.mrb[89].mxu0 }
 0x1a7   :  { %vm2010_vm8 = vcmp.gt.f32.partialorder %v1977_v40, 0.0  ;;  %v2023_v50 = vmul.f32 0.2, %v1977_v40  ;;  %v2701_v16 = vadd.f32 %v2700_v11, %v2699_v61  ;;  %v2702_v17 = vpop.f32.mrb[86].mxu1  ;;  %v1984_v7 = vpop.f32.mrb[90].mxu0  ;;  %v2035_v19 = vsel %vm2009_vm7, %v1974_v47, %v2022_v10 }
 0x1a8   :  { %v2703_v3 = vpop.f32.mrb[87].mxu1  ;;  %v2767_v18 = vpop.f32.mrb[91].mxu0 }
 0x1a9   :  { %v2036_v8 = vsel %vm2010_vm8, %v1977_v40, %v2023_v50  ;;  %v2704_v4 = vadd.f32 %v2703_v3, %v2702_v17  ;;  %v1894_v27 = vadd.f32 %v2701_v16, %v3727_v20 }
 0x1aa   :  { %v2352_v13 = vpack.c.bf16 %v2036_v8, %v2035_v19 }
 0x1ab   :  { %v1982_v29 = vadd.f32 %v1981_v53, %v1894_v27  ;;  %v1897_v14 = vadd.f32 %v2704_v4, %v3729_v60 }
 0x1ac   :  { %2366 = vst [vmem:[%s3777_s3 + $0x18] sm:$0xff] %v2352_v13  }
 0x1ad   :  { %v2024_v15 = vmul.f32 0.2, %v1982_v29  ;;  %v1985_v5 = vadd.f32 %v1984_v7, %v1897_v14  ;;  %v2705_v30 = vpop.f32.mrb[88].mxu1  ;;  %v1989_v26 = vpop.f32.mrb[92].mxu0  ;;  %vm2011_vm9 = vcmp.gt.f32.partialorder %v1982_v29, 0.0 }
 0x1ae   :  { %v2706_v6 = vpop.f32.mrb[89].mxu1  ;;  %v2770_v35 = vpop.f32.mrb[93].mxu0 }
 0x1af   :  { %vm2012_vm10 = vcmp.gt.f32.partialorder %v1985_v5, 0.0  ;;  %v2025_v36 = vmul.f32 0.2, %v1985_v5  ;;  %v2707_v21 = vadd.f32 %v2706_v6, %v2705_v30  ;;  %v2708_v22 = vpop.f32.mrb[90].mxu1  ;;  %v1992_v20 = vpop.f32.mrb[94].mxu0  ;;  %v2037_v31 = vsel %vm2011_vm9, %v1982_v29, %v2024_v15 }
 0x1b0   :  { %v2709_v37 = vpop.f32.mrb[91].mxu1  ;;  %v2771_v39 = vpop.f32.mrb[95].mxu0 }
 0x1b1   :  { %v2038_v60 = vsel %vm2012_vm10, %v1985_v5, %v2025_v36  ;;  %v2710_v23 = vadd.f32 %v2709_v37, %v2708_v22  ;;  %v1902_v42 = vadd.f32 %v2707_v21, %v3733_v32 }
 0x1b2   :  { %v2357_v43 = vpack.c.bf16 %v2038_v60, %v2037_v31 }
 0x1b3   :  { %v1990_v34 = vadd.f32 %v1989_v26, %v1902_v42  ;;  %v1905_v51 = vadd.f32 %v2710_v23, %v3735_v41 }
 0x1b4   :  { %2367 = vst [vmem:[%s3777_s3 + $0x20] sm:$0xff] %v2357_v43  }
 0x1b5   :  { %v2026_v24 = vmul.f32 0.2, %v1990_v34  ;;  %v1993_v52 = vadd.f32 %v1992_v20, %v1905_v51  ;;  %v2711_v28 = vpop.f32.mrb[92].mxu1  ;;  %v1997_v25 = vpop.f32.mrb[96].mxu0  ;;  %vm2013_vm11 = vcmp.gt.f32.partialorder %v1990_v34, 0.0 }
 0x1b6   :  { %v2712_v55 = vpop.f32.mrb[93].mxu1  ;;  %v2774_v56 = vpop.f32.mrb[97].mxu0 }
 0x1b7   :  { %vm2014_vm12 = vcmp.gt.f32.partialorder %v1993_v52, 0.0  ;;  %v2027_v57 = vmul.f32 0.2, %v1993_v52  ;;  %v2713_v45 = vadd.f32 %v2712_v55, %v2711_v28  ;;  %v2714_v33 = vpop.f32.mrb[94].mxu1  ;;  %v2000_v32 = vpop.f32.mrb[98].mxu0  ;;  %v2039_v44 = vsel %vm2013_vm11, %v1990_v34, %v2026_v24 }
 0x1b8   :  { %v2715_v46 = vpop.f32.mrb[95].mxu1  ;;  %v2775_v59 = vpop.f32.mrb[99].mxu0 }
 0x1b9   :  { %v2040_v41 = vsel %vm2014_vm12, %v1993_v52, %v2027_v57  ;;  %v1910_v62 = vadd.f32 %v2713_v45, %v3738_v58 }
 0x1ba   :  { %v2362_v54 = vpack.c.bf16 %v2040_v41, %v2039_v44 }
 0x1bb   :  { %v1998_v63 = vadd.f32 %v1997_v25, %v1910_v62 }
 0x1bc   :  { %2368 = vst [vmem:[%s3777_s3 + $0x28] sm:$0xff] %v2362_v54  }
 0x1bd   :  { %vm2015_vm13 = vcmp.gt.f32.partialorder %v1998_v63, 0.0  ;;  %v2028_v0 = vmul.f32 0.2, %v1998_v63 }
 0x1bf   :  { %v2041_v48 = vsel %vm2015_vm13, %v1998_v63, %v2028_v0 }
 0x1c0   :  { %v2333_v38 = vpack.c.bf16 %v2041_v48, %v2041_v48 }
 0x1c2   :  { %2107 = vst [vmem:[%s3777_s3 + $0x30] sm:$0xf] %v2333_v38 }

// kernel: discriminator_forward.5
= control target key start
LH: loop header
LB: loop body
LE: loop exit
PB: predicated region body
PF: predicated region fallthrough
CT: control target
= control target key end

     0   :  { %vm5813_vm0 = vmmov 0   ;;  %s7103_s1 = inlined_call_operand.vmem [shape: bf16[6272,128], index: 1, kind: input, shape index: {}]   ;;  %s7104_s0 = inlined_call_operand.vmem [shape: bf16[8,6272], index: 0, kind: input, shape index: {}]   ;;  %s7105_s2 = inlined_call_operand.vmem [shape: f32[1,128], index: 2, kind: input, shape index: {}]   ;;  %s7106_s3 = inlined_call_operand.vmem [shape: f32[8,128], index: 3, kind: output, shape index: {}]  }
   0x1   :  { %v5367_v0 = vld [vmem:[%s7103_s1 + $0x40] sm:$0xff]   ;;  %v5371_v4 = vld [vmem:[%s7103_s1 + $0x48] sm:$0xff]   ;;  %v5375_v8 = vld [vmem:[%s7103_s1 + $0x50] sm:$0xff]  }
   0x2   :  { %v5368_v1 = vld [vmem:[%s7103_s1] sm:$0xff]   ;;  %4808 = vmatprep.subr.bf16.mxu0 %v5367_v0  ;;  %v5372_v5 = vld [vmem:[%s7103_s1 + $0x8] sm:$0xff]   ;;  %v5376_v9 = vld [vmem:[%s7103_s1 + $0x10] sm:$0xff]  }
   0x3   :  { %v5369_v2 = vld [vmem:[%s7103_s1 + $0xc0] sm:$0xff]   ;;  %4809 = vmatpush3.bf16.msra.mxu0 %v5368_v1  ;;  %v5373_v6 = vld [vmem:[%s7103_s1 + $0xc8] sm:$0xff]   ;;  %v5377_v10 = vld [vmem:[%s7103_s1 + $0xd0] sm:$0xff]  }
   0x4   :  { %v5370_v3 = vld [vmem:[%s7103_s1 + $0x80] sm:$0xff]   ;;  %4830 = vmatprep.subr.bf16.mxu1 %v5369_v2  ;;  %4810 = vmatprep.subr.bf16.mxu0 %v5371_v4  ;;  %v5374_v7 = vld [vmem:[%s7103_s1 + $0x88] sm:$0xff]   ;;  %v5378_v11 = vld [vmem:[%s7103_s1 + $0x90] sm:$0xff]  }
   0x5   :  { %4831 = vmatpush3.bf16.msra.mxu1 %v5370_v3  ;;  %v5379_v12 = vld [vmem:[%s7103_s1 + $0x58] sm:$0xff]   ;;  %v5383_v16 = vld [vmem:[%s7103_s1 + $0x60] sm:$0xff]   ;;  %v5387_v20 = vld [vmem:[%s7103_s1 + $0x68] sm:$0xff]  }
   0x6   :  { %4832 = vmatprep.subr.bf16.mxu1 %v5373_v6  ;;  %v5380_v13 = vld [vmem:[%s7103_s1 + $0x18] sm:$0xff]   ;;  %v5384_v17 = vld [vmem:[%s7103_s1 + $0x20] sm:$0xff]   ;;  %v5388_v21 = vld [vmem:[%s7103_s1 + $0x28] sm:$0xff]  }
   0x7   :  { %4811 = vmatpush3.bf16.msra.mxu0 %v5372_v5  ;;  %v5381_v14 = vld [vmem:[%s7103_s1 + $0xd8] sm:$0xff]   ;;  %v5385_v18 = vld [vmem:[%s7103_s1 + $0xe0] sm:$0xff]   ;;  %v5389_v22 = vld [vmem:[%s7103_s1 + $0xe8] sm:$0xff]  }
   0x8   :  { %4812 = vmatprep.subr.bf16.mxu0 %v5375_v8  ;;  %v5382_v15 = vld [vmem:[%s7103_s1 + $0x98] sm:$0xff]   ;;  %v5386_v19 = vld [vmem:[%s7103_s1 + $0xa0] sm:$0xff]   ;;  %v5390_v23 = vld [vmem:[%s7103_s1 + $0xa8] sm:$0xff]  }
   0x9   :  { %4833 = vmatpush3.bf16.msra.mxu1 %v5374_v7  ;;  %v5391_v24 = vld [vmem:[%s7103_s1 + $0x70] sm:$0xff]   ;;  %v5395_v28 = vld [vmem:[%s7103_s1 + $0x78] sm:$0xff]   ;;  %v15_v31 = vld [vmem:[%s7104_s0] sm:$0xff] }
   0xa   :  { %4834 = vmatprep.subr.bf16.mxu1 %v5377_v10  ;;  %v5392_v25 = vld [vmem:[%s7103_s1 + $0x30] sm:$0xff]   ;;  %v5396_v29 = vld [vmem:[%s7103_s1 + $0x38] sm:$0xff]   ;;  %v4367_v32 = vcombine.low %v15_v31, %v15_v31  ;;  %v4368_v33 = vcombine.high %v15_v31, %v15_v31  ;;  %v5401_v35 = vld [vmem:[%s7103_s1 + $0x140] sm:$0xff]  }
   0xb   :  { %4813 = vmatpush3.bf16.msra.mxu0 %v5376_v9  ;;  %v5393_v26 = vld [vmem:[%s7103_s1 + $0xf0] sm:$0xff]   ;;  %v5397_v30 = vld [vmem:[%s7103_s1 + $0xf8] sm:$0xff]   ;;  %v16_v36 = vld [vmem:[%s7104_s0 + $0x8] sm:$0xff] }
   0xc   :  { %4814 = vmatprep.subr.bf16.mxu0 %v5379_v12  ;;  %v5394_v27 = vld [vmem:[%s7103_s1 + $0xb0] sm:$0xff]   ;;  %v5400_v34 = vld [vmem:[%s7103_s1 + $0xb8] sm:$0xff]   ;;  %3387 = vmatprep.mubr.bf16.mxu0 %v4368_v33  ;;  %v4369_v37 = vcombine.low %v16_v36, %v16_v36  ;;  %v4370_v38 = vcombine.high %v16_v36, %v16_v36  ;;  %v5404_v39 = vld [vmem:[%s7103_s1 + $0x100] sm:$0xff]  }
   0xd   :  { %4835 = vmatpush3.bf16.msra.mxu1 %v5378_v11  ;;  %v5405_v40 = vld [vmem:[%s7103_s1 + $0x1c0] sm:$0xff]   ;;  %v5407_v42 = vld [vmem:[%s7103_s1 + $0x148] sm:$0xff]   ;;  %v5411_v46 = vld [vmem:[%s7103_s1 + $0x150] sm:$0xff]  }
   0xe   :  { %4836 = vmatprep.subr.bf16.mxu1 %v5381_v14  ;;  %3427 = vmatprep.mubr.bf16.mxu1 %v4370_v38  ;;  %v5406_v41 = vld [vmem:[%s7103_s1 + $0x180] sm:$0xff]   ;;  %v5408_v43 = vld [vmem:[%s7103_s1 + $0x108] sm:$0xff]   ;;  %v5412_v47 = vld [vmem:[%s7103_s1 + $0x110] sm:$0xff]  }
   0xf   :  { %4815 = vmatpush3.bf16.msra.mxu0 %v5380_v13  ;;  %v5409_v44 = vld [vmem:[%s7103_s1 + $0x1c8] sm:$0xff]   ;;  %v5413_v48 = vld [vmem:[%s7103_s1 + $0x1d0] sm:$0xff]   ;;  %v5415_v50 = vld [vmem:[%s7103_s1 + $0x158] sm:$0xff]  }
  0x10   :  { %4816 = vmatprep.subr.bf16.mxu0 %v5383_v16  ;;  %v5410_v45 = vld [vmem:[%s7103_s1 + $0x188] sm:$0xff]   ;;  %v5414_v49 = vld [vmem:[%s7103_s1 + $0x190] sm:$0xff]   ;;  %v5416_v51 = vld [vmem:[%s7103_s1 + $0x118] sm:$0xff]  }
  0x11   :  { %4837 = vmatpush3.bf16.msra.mxu1 %v5382_v15  ;;  %v5417_v52 = vld [vmem:[%s7103_s1 + $0x1d8] sm:$0xff]   ;;  %v5419_v54 = vld [vmem:[%s7103_s1 + $0x160] sm:$0xff]   ;;  %v5423_v58 = vld [vmem:[%s7103_s1 + $0x168] sm:$0xff]  }
  0x12   :  { %4838 = vmatprep.subr.bf16.mxu1 %v5385_v18  ;;  %v5418_v53 = vld [vmem:[%s7103_s1 + $0x198] sm:$0xff]   ;;  %v5420_v55 = vld [vmem:[%s7103_s1 + $0x120] sm:$0xff]   ;;  %v5424_v59 = vld [vmem:[%s7103_s1 + $0x128] sm:$0xff]  }
  0x13   :  { %4817 = vmatpush3.bf16.msra.mxu0 %v5384_v17  ;;  %v5421_v56 = vld [vmem:[%s7103_s1 + $0x1e0] sm:$0xff]   ;;  %v5425_v60 = vld [vmem:[%s7103_s1 + $0x1e8] sm:$0xff]   ;;  %v5427_v62 = vld [vmem:[%s7103_s1 + $0x170] sm:$0xff]  }
  0x14   :  { %4818 = vmatprep.subr.bf16.mxu0 %v5387_v20  ;;  %v5422_v57 = vld [vmem:[%s7103_s1 + $0x1a0] sm:$0xff]   ;;  %v5426_v61 = vld [vmem:[%s7103_s1 + $0x1a8] sm:$0xff]   ;;  %v5428_v63 = vld [vmem:[%s7103_s1 + $0x130] sm:$0xff]  }
  0x15   :  { %4839 = vmatpush3.bf16.msra.mxu1 %v5386_v19  ;;  %v5429_v0 = vld [vmem:[%s7103_s1 + $0x1f0] sm:$0xff]   ;;  %v5431_v2 = vld [vmem:[%s7103_s1 + $0x178] sm:$0xff]   ;;  %v5437_v9 = vld [vmem:[%s7103_s1 + $0x240] sm:$0xff]  }
  0x16   :  { %4840 = vmatprep.subr.bf16.mxu1 %v5389_v22  ;;  %v5430_v1 = vld [vmem:[%s7103_s1 + $0x1b0] sm:$0xff]   ;;  %v5432_v3 = vld [vmem:[%s7103_s1 + $0x138] sm:$0xff]   ;;  %v5440_v13 = vld [vmem:[%s7103_s1 + $0x200] sm:$0xff]  }
  0x17   :  { %4819 = vmatpush3.bf16.msra.mxu0 %v5388_v21  ;;  %v5433_v4 = vld [vmem:[%s7103_s1 + $0x1f8] sm:$0xff]   ;;  %v17_v5 = vld [vmem:[%s7104_s0 + $0x10] sm:$0xff]  ;;  %v5441_v14 = vld [vmem:[%s7103_s1 + $0x2c0] sm:$0xff]  }
  0x18   :  { %4820 = vmatprep.subr.bf16.mxu0 %v5391_v24  ;;  %v4371_v6 = vcombine.low %v17_v5, %v17_v5  ;;  %v4372_v7 = vcombine.high %v17_v5, %v17_v5  ;;  %v5436_v8 = vld [vmem:[%s7103_s1 + $0x1b8] sm:$0xff]   ;;  %v5442_v15 = vld [vmem:[%s7103_s1 + $0x280] sm:$0xff]   ;;  %v5443_v16 = vld [vmem:[%s7103_s1 + $0x248] sm:$0xff]  }
  0x19   :  { %4841 = vmatpush3.bf16.msra.mxu1 %v5390_v23  ;;  %v18_v10 = vld [vmem:[%s7104_s0 + $0x18] sm:$0xff]  ;;  %v5444_v17 = vld [vmem:[%s7103_s1 + $0x208] sm:$0xff]   ;;  %v5447_v20 = vld [vmem:[%s7103_s1 + $0x250] sm:$0xff]  }
  0x1a   :  { %4842 = vmatprep.subr.bf16.mxu1 %v5393_v26  ;;  %v4373_v11 = vcombine.low %v18_v10, %v18_v10  ;;  %v4374_v12 = vcombine.high %v18_v10, %v18_v10  ;;  %v5445_v18 = vld [vmem:[%s7103_s1 + $0x2c8] sm:$0xff]   ;;  %v5448_v21 = vld [vmem:[%s7103_s1 + $0x210] sm:$0xff]   ;;  %v5451_v24 = vld [vmem:[%s7103_s1 + $0x258] sm:$0xff]  }
  0x1b   :  { %4821 = vmatpush3.bf16.msra.mxu0 %v5392_v25  ;;  %v5446_v19 = vld [vmem:[%s7103_s1 + $0x288] sm:$0xff]   ;;  %v5449_v22 = vld [vmem:[%s7103_s1 + $0x2d0] sm:$0xff]   ;;  %v5452_v25 = vld [vmem:[%s7103_s1 + $0x218] sm:$0xff]  }
  0x1c   :  { %4822 = vmatprep.subr.bf16.mxu0 %v5395_v28  ;;  %v5450_v23 = vld [vmem:[%s7103_s1 + $0x290] sm:$0xff]   ;;  %v5453_v26 = vld [vmem:[%s7103_s1 + $0x2d8] sm:$0xff]   ;;  %v5455_v28 = vld [vmem:[%s7103_s1 + $0x260] sm:$0xff]  }
  0x1d   :  { %4843 = vmatpush3.bf16.msra.mxu1 %v5394_v27  ;;  %v5454_v27 = vld [vmem:[%s7103_s1 + $0x298] sm:$0xff]   ;;  %v5458_v31 = vld [vmem:[%s7103_s1 + $0x2a0] sm:$0xff]   ;;  %v5460_v33 = vld [vmem:[%s7103_s1 + $0x228] sm:$0xff]  }
  0x1e   :  { %4844 = vmatprep.subr.bf16.mxu1 %v5397_v30  ;;  %v5457_v30 = vld [vmem:[%s7103_s1 + $0x2e0] sm:$0xff]   ;;  %v5463_v36 = vld [vmem:[%s7103_s1 + $0x270] sm:$0xff]  }
  0x1f   :  { %4823 = vmatpush3.bf16.msra.mxu0 %v5396_v29  ;;  %v5456_v29 = vld [vmem:[%s7103_s1 + $0x220] sm:$0xff]   ;;  %v5465_v38 = vld [vmem:[%s7103_s1 + $0x2f0] sm:$0xff]  }
  0x20   :  { %4852 = vmatprep.subr.bf16.mxu0 %v5401_v35  ;;  %v5462_v35 = vld [vmem:[%s7103_s1 + $0x2a8] sm:$0xff]   ;;  %v5494_v5 = vld [vmem:[%s7103_s1 + $0x3a0] sm:$0xff]   ;;  %v5499_v10 = vld [vmem:[%s7103_s1 + $0x370] sm:$0xff]  }
  0x21   :  { %4845 = vmatpush3.bf16.msra.mxu1 %v5400_v34  ;;  %v5461_v34 = vld [vmem:[%s7103_s1 + $0x2e8] sm:$0xff]  }
  0x22   :  { %3388 = vmatmul.mubr.bf16.vlgmr.msra.gmra.mrb[0].mxu0 %v4367_v32  ;;  %4874 = vmatprep.subr.bf16.mxu1 %v5405_v40  ;;  %v5459_v32 = vld [vmem:[%s7103_s1 + $0x268] sm:$0xff]   ;;  %v5467_v40 = vld [vmem:[%s7103_s1 + $0x278] sm:$0xff]  }
  0x23   :  { %4853 = vmatpush3.bf16.msra.mxu0 %v5404_v39  ;;  %3467 = vmatprep.mubr.bf16.mxu0 %v4372_v7  ;;  %v5466_v39 = vld [vmem:[%s7103_s1 + $0x2b0] sm:$0xff]   ;;  %v5496_v7 = vld [vmem:[%s7103_s1 + $0x328] sm:$0xff]  }
  0x24   :  { %3428 = vmatmul.mubr.bf16.vlgmr.msra.gmra.mrb[0].mxu1 %v4369_v37  ;;  %4854 = vmatprep.subr.bf16.mxu0 %v5407_v42  ;;  %v5464_v37 = vld [vmem:[%s7103_s1 + $0x230] sm:$0xff]   ;;  %v5469_v42 = vld [vmem:[%s7103_s1 + $0x2f8] sm:$0xff]  }
  0x25   :  { %4875 = vmatpush3.bf16.msra.mxu1 %v5406_v41  ;;  %3507 = vmatprep.mubr.bf16.mxu1 %v4374_v12  ;;  %v5468_v41 = vld [vmem:[%s7103_s1 + $0x238] sm:$0xff]   ;;  %v5501_v12 = vld [vmem:[%s7103_s1 + $0x3f0] sm:$0xff]  }
  0x26   :  { %4876 = vmatprep.subr.bf16.mxu1 %v5409_v44 }
  0x27   :  { %4855 = vmatpush3.bf16.msra.mxu0 %v5408_v43  ;;  %v19_v43 = vld [vmem:[%s7104_s0 + $0x20] sm:$0xff] }
  0x28   :  { %4856 = vmatprep.subr.bf16.mxu0 %v5411_v46  ;;  %v4375_v44 = vcombine.low %v19_v43, %v19_v43  ;;  %v5472_v46 = vld [vmem:[%s7103_s1 + $0x2b8] sm:$0xff]  }
  0x29   :  { %4877 = vmatpush3.bf16.msra.mxu1 %v5410_v45  ;;  %v4376_v45 = vcombine.high %v19_v43, %v19_v43  ;;  %v5530_v43 = vld [vmem:[%s7103_s1 + $0x4a0] sm:$0xff]  }
  0x2a   :  { %4878 = vmatprep.subr.bf16.mxu1 %v5413_v48  ;;  %v20_v48 = vld [vmem:[%s7104_s0 + $0x28] sm:$0xff] }
  0x2b   :  { %4857 = vmatpush3.bf16.msra.mxu0 %v5412_v47  ;;  %v5473_v47 = vld [vmem:[%s7103_s1 + $0x340] sm:$0xff]  }
  0x2c   :  { %4858 = vmatprep.subr.bf16.mxu0 %v5415_v50  ;;  %v4378_v50 = vcombine.high %v20_v48, %v20_v48 }
  0x2d   :  { %4879 = vmatpush3.bf16.msra.mxu1 %v5414_v49  ;;  %v4377_v49 = vcombine.low %v20_v48, %v20_v48  ;;  %v5535_v48 = vld [vmem:[%s7103_s1 + $0x470] sm:$0xff]  }
  0x2e   :  { %4880 = vmatprep.subr.bf16.mxu1 %v5417_v52  ;;  %v5477_v52 = vld [vmem:[%s7103_s1 + $0x3c0] sm:$0xff]  }
  0x2f   :  { %4859 = vmatpush3.bf16.msra.mxu0 %v5416_v51  ;;  %v5476_v51 = vld [vmem:[%s7103_s1 + $0x300] sm:$0xff]  }
  0x30   :  { %4860 = vmatprep.subr.bf16.mxu0 %v5419_v54  ;;  %v5479_v54 = vld [vmem:[%s7103_s1 + $0x348] sm:$0xff]  }
  0x31   :  { %4881 = vmatpush3.bf16.msra.mxu1 %v5418_v53  ;;  %v5478_v53 = vld [vmem:[%s7103_s1 + $0x380] sm:$0xff]  }
  0x32   :  { %4882 = vmatprep.subr.bf16.mxu1 %v5421_v56  ;;  %v5481_v56 = vld [vmem:[%s7103_s1 + $0x3c8] sm:$0xff]  }
  0x33   :  { %4861 = vmatpush3.bf16.msra.mxu0 %v5420_v55  ;;  %v5480_v55 = vld [vmem:[%s7103_s1 + $0x308] sm:$0xff]  }
  0x34   :  { %4862 = vmatprep.subr.bf16.mxu0 %v5423_v58  ;;  %v5483_v58 = vld [vmem:[%s7103_s1 + $0x350] sm:$0xff]  }
  0x35   :  { %4883 = vmatpush3.bf16.msra.mxu1 %v5422_v57  ;;  %v5482_v57 = vld [vmem:[%s7103_s1 + $0x388] sm:$0xff]  }
  0x36   :  { %4884 = vmatprep.subr.bf16.mxu1 %v5425_v60  ;;  %v5485_v60 = vld [vmem:[%s7103_s1 + $0x3d0] sm:$0xff]  }
  0x37   :  { %4863 = vmatpush3.bf16.msra.mxu0 %v5424_v59  ;;  %v5484_v59 = vld [vmem:[%s7103_s1 + $0x310] sm:$0xff]  }
  0x38   :  { %4864 = vmatprep.subr.bf16.mxu0 %v5427_v62  ;;  %v5487_v62 = vld [vmem:[%s7103_s1 + $0x358] sm:$0xff]  }
  0x39   :  { %4885 = vmatpush3.bf16.msra.mxu1 %v5426_v61  ;;  %v5486_v61 = vld [vmem:[%s7103_s1 + $0x390] sm:$0xff]  }
  0x3a   :  { %4886 = vmatprep.subr.bf16.mxu1 %v5429_v0  ;;  %v5489_v0 = vld [vmem:[%s7103_s1 + $0x3d8] sm:$0xff]  }
  0x3b   :  { %4865 = vmatpush3.bf16.msra.mxu0 %v5428_v63  ;;  %v5488_v63 = vld [vmem:[%s7103_s1 + $0x318] sm:$0xff]  }
  0x3c   :  { %4866 = vmatprep.subr.bf16.mxu0 %v5431_v2  ;;  %v5491_v2 = vld [vmem:[%s7103_s1 + $0x360] sm:$0xff]  }
  0x3d   :  { %4887 = vmatpush3.bf16.msra.mxu1 %v5430_v1  ;;  %v5490_v1 = vld [vmem:[%s7103_s1 + $0x398] sm:$0xff]  }
  0x3e   :  { %4888 = vmatprep.subr.bf16.mxu1 %v5433_v4  ;;  %v5493_v4 = vld [vmem:[%s7103_s1 + $0x3e0] sm:$0xff]  }
  0x3f   :  { %4867 = vmatpush3.bf16.msra.mxu0 %v5432_v3  ;;  %v5492_v3 = vld [vmem:[%s7103_s1 + $0x320] sm:$0xff]  }
  0x40   :  { %4896 = vmatprep.subr.bf16.mxu0 %v5437_v9  ;;  %v5498_v9 = vld [vmem:[%s7103_s1 + $0x3a8] sm:$0xff]  }
  0x41   :  { %4889 = vmatpush3.bf16.msra.mxu1 %v5436_v8  ;;  %v5497_v8 = vld [vmem:[%s7103_s1 + $0x3e8] sm:$0xff]  }
  0x42   :  { %3468 = vmatmul.mubr.bf16.vlgmr.msra.gmra.mrb[4].mxu0 %v4371_v6  ;;  %4918 = vmatprep.subr.bf16.mxu1 %v5441_v14  ;;  %v5495_v6 = vld [vmem:[%s7103_s1 + $0x368] sm:$0xff]   ;;  %v5503_v14 = vld [vmem:[%s7103_s1 + $0x378] sm:$0xff]  }
  0x43   :  { %4897 = vmatpush3.bf16.msra.mxu0 %v5440_v13  ;;  %3547 = vmatprep.mubr.bf16.mxu0 %v4376_v45  ;;  %v5502_v13 = vld [vmem:[%s7103_s1 + $0x3b0] sm:$0xff]   ;;  %v5532_v45 = vld [vmem:[%s7103_s1 + $0x428] sm:$0xff]  }
  0x44   :  { %3508 = vmatmul.mubr.bf16.vlgmr.msra.gmra.mrb[4].mxu1 %v4373_v11  ;;  %4898 = vmatprep.subr.bf16.mxu0 %v5443_v16  ;;  %v5500_v11 = vld [vmem:[%s7103_s1 + $0x330] sm:$0xff]   ;;  %v5505_v16 = vld [vmem:[%s7103_s1 + $0x3f8] sm:$0xff]  }
  0x45   :  { %4919 = vmatpush3.bf16.msra.mxu1 %v5442_v15  ;;  %3587 = vmatprep.mubr.bf16.mxu1 %v4378_v50  ;;  %v5504_v15 = vld [vmem:[%s7103_s1 + $0x338] sm:$0xff]   ;;  %v5537_v50 = vld [vmem:[%s7103_s1 + $0x4f0] sm:$0xff]  }
  0x46   :  { %4920 = vmatprep.subr.bf16.mxu1 %v5445_v18 }
  0x47   :  { %4899 = vmatpush3.bf16.msra.mxu0 %v5444_v17  ;;  %v21_v17 = vld [vmem:[%s7104_s0 + $0x30] sm:$0xff] }
  0x48   :  { %4900 = vmatprep.subr.bf16.mxu0 %v5447_v20  ;;  %v4379_v18 = vcombine.low %v21_v17, %v21_v17  ;;  %v5508_v20 = vld [vmem:[%s7103_s1 + $0x3b8] sm:$0xff]  }
  0x49   :  { %4921 = vmatpush3.bf16.msra.mxu1 %v5446_v19  ;;  %v4380_v19 = vcombine.high %v21_v17, %v21_v17  ;;  %v5566_v17 = vld [vmem:[%s7103_s1 + $0x5a0] sm:$0xff]  }
  0x4a   :  { %4922 = vmatprep.subr.bf16.mxu1 %v5449_v22  ;;  %v22_v22 = vld [vmem:[%s7104_s0 + $0x38] sm:$0xff] }
  0x4b   :  { %4901 = vmatpush3.bf16.msra.mxu0 %v5448_v21  ;;  %v5509_v21 = vld [vmem:[%s7103_s1 + $0x440] sm:$0xff]  }
  0x4c   :  { %4902 = vmatprep.subr.bf16.mxu0 %v5451_v24  ;;  %v4382_v24 = vcombine.high %v22_v22, %v22_v22 }
  0x4d   :  { %4923 = vmatpush3.bf16.msra.mxu1 %v5450_v23  ;;  %v4381_v23 = vcombine.low %v22_v22, %v22_v22  ;;  %v5571_v22 = vld [vmem:[%s7103_s1 + $0x570] sm:$0xff]  }
  0x4e   :  { %4924 = vmatprep.subr.bf16.mxu1 %v5453_v26  ;;  %v5513_v26 = vld [vmem:[%s7103_s1 + $0x4c0] sm:$0xff]  }
  0x4f   :  { %4903 = vmatpush3.bf16.msra.mxu0 %v5452_v25  ;;  %v5512_v25 = vld [vmem:[%s7103_s1 + $0x400] sm:$0xff]  }
  0x50   :  { %4904 = vmatprep.subr.bf16.mxu0 %v5455_v28  ;;  %v5515_v28 = vld [vmem:[%s7103_s1 + $0x448] sm:$0xff]  }
  0x51   :  { %4925 = vmatpush3.bf16.msra.mxu1 %v5454_v27  ;;  %v5514_v27 = vld [vmem:[%s7103_s1 + $0x480] sm:$0xff]  }
  0x52   :  { %4926 = vmatprep.subr.bf16.mxu1 %v5457_v30  ;;  %v5517_v30 = vld [vmem:[%s7103_s1 + $0x4c8] sm:$0xff]  }
  0x53   :  { %4905 = vmatpush3.bf16.msra.mxu0 %v5456_v29  ;;  %v5516_v29 = vld [vmem:[%s7103_s1 + $0x408] sm:$0xff]  }
  0x54   :  { %4906 = vmatprep.subr.bf16.mxu0 %v5459_v32  ;;  %v5519_v32 = vld [vmem:[%s7103_s1 + $0x450] sm:$0xff]  }
  0x55   :  { %4927 = vmatpush3.bf16.msra.mxu1 %v5458_v31  ;;  %v5518_v31 = vld [vmem:[%s7103_s1 + $0x488] sm:$0xff]  }
  0x56   :  { %4928 = vmatprep.subr.bf16.mxu1 %v5461_v34  ;;  %v5521_v34 = vld [vmem:[%s7103_s1 + $0x4d0] sm:$0xff]  }
  0x57   :  { %4907 = vmatpush3.bf16.msra.mxu0 %v5460_v33  ;;  %v5520_v33 = vld [vmem:[%s7103_s1 + $0x410] sm:$0xff]  }
  0x58   :  { %4908 = vmatprep.subr.bf16.mxu0 %v5463_v36  ;;  %v5523_v36 = vld [vmem:[%s7103_s1 + $0x458] sm:$0xff]  }
  0x59   :  { %4929 = vmatpush3.bf16.msra.mxu1 %v5462_v35  ;;  %v5522_v35 = vld [vmem:[%s7103_s1 + $0x490] sm:$0xff]  }
  0x5a   :  { %4930 = vmatprep.subr.bf16.mxu1 %v5465_v38  ;;  %v5525_v38 = vld [vmem:[%s7103_s1 + $0x4d8] sm:$0xff]  }
  0x5b   :  { %4909 = vmatpush3.bf16.msra.mxu0 %v5464_v37  ;;  %v5524_v37 = vld [vmem:[%s7103_s1 + $0x418] sm:$0xff]  }
  0x5c   :  { %4910 = vmatprep.subr.bf16.mxu0 %v5467_v40  ;;  %v5527_v40 = vld [vmem:[%s7103_s1 + $0x460] sm:$0xff]  }
  0x5d   :  { %4931 = vmatpush3.bf16.msra.mxu1 %v5466_v39  ;;  %v5526_v39 = vld [vmem:[%s7103_s1 + $0x498] sm:$0xff]  }
  0x5e   :  { %4932 = vmatprep.subr.bf16.mxu1 %v5469_v42  ;;  %v5529_v42 = vld [vmem:[%s7103_s1 + $0x4e0] sm:$0xff]  }
  0x5f   :  { %4911 = vmatpush3.bf16.msra.mxu0 %v5468_v41  ;;  %v5528_v41 = vld [vmem:[%s7103_s1 + $0x420] sm:$0xff]  }
  0x60   :  { %4940 = vmatprep.subr.bf16.mxu0 %v5473_v47  ;;  %v5534_v47 = vld [vmem:[%s7103_s1 + $0x4a8] sm:$0xff]  }
  0x61   :  { %4933 = vmatpush3.bf16.msra.mxu1 %v5472_v46  ;;  %v5533_v46 = vld [vmem:[%s7103_s1 + $0x4e8] sm:$0xff]  }
  0x62   :  { %3548 = vmatmul.mubr.bf16.vlgmr.msra.gmra.mrb[8].mxu0 %v4375_v44  ;;  %4962 = vmatprep.subr.bf16.mxu1 %v5477_v52  ;;  %v5531_v44 = vld [vmem:[%s7103_s1 + $0x468] sm:$0xff]   ;;  %v5539_v52 = vld [vmem:[%s7103_s1 + $0x478] sm:$0xff]  }
  0x63   :  { %4941 = vmatpush3.bf16.msra.mxu0 %v5476_v51  ;;  %3627 = vmatprep.mubr.bf16.mxu0 %v4380_v19  ;;  %v5538_v51 = vld [vmem:[%s7103_s1 + $0x4b0] sm:$0xff]   ;;  %v5568_v19 = vld [vmem:[%s7103_s1 + $0x528] sm:$0xff]  }
  0x64   :  { %3588 = vmatmul.mubr.bf16.vlgmr.msra.gmra.mrb[8].mxu1 %v4377_v49  ;;  %4942 = vmatprep.subr.bf16.mxu0 %v5479_v54  ;;  %v5536_v49 = vld [vmem:[%s7103_s1 + $0x430] sm:$0xff]   ;;  %v5541_v54 = vld [vmem:[%s7103_s1 + $0x4f8] sm:$0xff]  }
  0x65   :  { %4963 = vmatpush3.bf16.msra.mxu1 %v5478_v53  ;;  %3667 = vmatprep.mubr.bf16.mxu1 %v4382_v24  ;;  %v5540_v53 = vld [vmem:[%s7103_s1 + $0x438] sm:$0xff]   ;;  %v5573_v24 = vld [vmem:[%s7103_s1 + $0x5f0] sm:$0xff]  }
  0x66   :  { %4964 = vmatprep.subr.bf16.mxu1 %v5481_v56 }
  0x67   :  { %4943 = vmatpush3.bf16.msra.mxu0 %v5480_v55  ;;  %v23_v55 = vld [vmem:[%s7104_s0 + $0x40] sm:$0xff] }
  0x68   :  { %4944 = vmatprep.subr.bf16.mxu0 %v5483_v58  ;;  %v4383_v56 = vcombine.low %v23_v55, %v23_v55  ;;  %v5544_v58 = vld [vmem:[%s7103_s1 + $0x4b8] sm:$0xff]  }
  0x69   :  { %4965 = vmatpush3.bf16.msra.mxu1 %v5482_v57  ;;  %v4384_v57 = vcombine.high %v23_v55, %v23_v55  ;;  %v5602_v55 = vld [vmem:[%s7103_s1 + $0x6a0] sm:$0xff]  }
  0x6a   :  { %4966 = vmatprep.subr.bf16.mxu1 %v5485_v60  ;;  %v24_v60 = vld [vmem:[%s7104_s0 + $0x48] sm:$0xff] }
  0x6b   :  { %4945 = vmatpush3.bf16.msra.mxu0 %v5484_v59  ;;  %v5545_v59 = vld [vmem:[%s7103_s1 + $0x540] sm:$0xff]  }
  0x6c   :  { %4946 = vmatprep.subr.bf16.mxu0 %v5487_v62  ;;  %v4386_v62 = vcombine.high %v24_v60, %v24_v60 }
  0x6d   :  { %4967 = vmatpush3.bf16.msra.mxu1 %v5486_v61  ;;  %v4385_v61 = vcombine.low %v24_v60, %v24_v60  ;;  %v5607_v60 = vld [vmem:[%s7103_s1 + $0x670] sm:$0xff]  }
  0x6e   :  { %4968 = vmatprep.subr.bf16.mxu1 %v5489_v0  ;;  %v5549_v0 = vld [vmem:[%s7103_s1 + $0x5c0] sm:$0xff]  }
  0x6f   :  { %4947 = vmatpush3.bf16.msra.mxu0 %v5488_v63  ;;  %v5548_v63 = vld [vmem:[%s7103_s1 + $0x500] sm:$0xff]  }
  0x70   :  { %4948 = vmatprep.subr.bf16.mxu0 %v5491_v2  ;;  %v5551_v2 = vld [vmem:[%s7103_s1 + $0x548] sm:$0xff]  }
  0x71   :  { %4969 = vmatpush3.bf16.msra.mxu1 %v5490_v1  ;;  %v5550_v1 = vld [vmem:[%s7103_s1 + $0x580] sm:$0xff]  }
  0x72   :  { %4970 = vmatprep.subr.bf16.mxu1 %v5493_v4  ;;  %v5553_v4 = vld [vmem:[%s7103_s1 + $0x5c8] sm:$0xff]  }
  0x73   :  { %4949 = vmatpush3.bf16.msra.mxu0 %v5492_v3  ;;  %v5552_v3 = vld [vmem:[%s7103_s1 + $0x508] sm:$0xff]  }
  0x74   :  { %4950 = vmatprep.subr.bf16.mxu0 %v5495_v6  ;;  %v5555_v6 = vld [vmem:[%s7103_s1 + $0x550] sm:$0xff]  }
  0x75   :  { %4971 = vmatpush3.bf16.msra.mxu1 %v5494_v5  ;;  %v5554_v5 = vld [vmem:[%s7103_s1 + $0x588] sm:$0xff]  }
  0x76   :  { %4972 = vmatprep.subr.bf16.mxu1 %v5497_v8  ;;  %v5557_v8 = vld [vmem:[%s7103_s1 + $0x5d0] sm:$0xff]  }
  0x77   :  { %4951 = vmatpush3.bf16.msra.mxu0 %v5496_v7  ;;  %v5556_v7 = vld [vmem:[%s7103_s1 + $0x510] sm:$0xff]  }
  0x78   :  { %4952 = vmatprep.subr.bf16.mxu0 %v5499_v10  ;;  %v5559_v10 = vld [vmem:[%s7103_s1 + $0x558] sm:$0xff]  }
  0x79   :  { %4973 = vmatpush3.bf16.msra.mxu1 %v5498_v9  ;;  %v5558_v9 = vld [vmem:[%s7103_s1 + $0x590] sm:$0xff]  }
  0x7a   :  { %4974 = vmatprep.subr.bf16.mxu1 %v5501_v12  ;;  %v5561_v12 = vld [vmem:[%s7103_s1 + $0x5d8] sm:$0xff]  }
  0x7b   :  { %4953 = vmatpush3.bf16.msra.mxu0 %v5500_v11  ;;  %v5560_v11 = vld [vmem:[%s7103_s1 + $0x518] sm:$0xff]  }
  0x7c   :  { %4954 = vmatprep.subr.bf16.mxu0 %v5503_v14  ;;  %v5563_v14 = vld [vmem:[%s7103_s1 + $0x560] sm:$0xff]  }
  0x7d   :  { %4975 = vmatpush3.bf16.msra.mxu1 %v5502_v13  ;;  %v5562_v13 = vld [vmem:[%s7103_s1 + $0x598] sm:$0xff]  }
  0x7e   :  { %4976 = vmatprep.subr.bf16.mxu1 %v5505_v16  ;;  %v5565_v16 = vld [vmem:[%s7103_s1 + $0x5e0] sm:$0xff]  }
  0x7f   :  { %4955 = vmatpush3.bf16.msra.mxu0 %v5504_v15  ;;  %v5564_v15 = vld [vmem:[%s7103_s1 + $0x520] sm:$0xff]  }
  0x80   :  { %4984 = vmatprep.subr.bf16.mxu0 %v5509_v21  ;;  %v5570_v21 = vld [vmem:[%s7103_s1 + $0x5a8] sm:$0xff]  }
  0x81   :  { %4977 = vmatpush3.bf16.msra.mxu1 %v5508_v20  ;;  %v5569_v20 = vld [vmem:[%s7103_s1 + $0x5e8] sm:$0xff]  }
  0x82   :  { %3628 = vmatmul.mubr.bf16.vlgmr.msra.gmra.mrb[12].mxu0 %v4379_v18  ;;  %5006 = vmatprep.subr.bf16.mxu1 %v5513_v26  ;;  %v5567_v18 = vld [vmem:[%s7103_s1 + $0x568] sm:$0xff]   ;;  %v5575_v26 = vld [vmem:[%s7103_s1 + $0x578] sm:$0xff]  }
  0x83   :  { %4985 = vmatpush3.bf16.msra.mxu0 %v5512_v25  ;;  %3707 = vmatprep.mubr.bf16.mxu0 %v4384_v57  ;;  %v5574_v25 = vld [vmem:[%s7103_s1 + $0x5b0] sm:$0xff]   ;;  %v5604_v57 = vld [vmem:[%s7103_s1 + $0x628] sm:$0xff]  }
  0x84   :  { %3668 = vmatmul.mubr.bf16.vlgmr.msra.gmra.mrb[12].mxu1 %v4381_v23  ;;  %4986 = vmatprep.subr.bf16.mxu0 %v5515_v28  ;;  %v5572_v23 = vld [vmem:[%s7103_s1 + $0x530] sm:$0xff]   ;;  %v5577_v28 = vld [vmem:[%s7103_s1 + $0x5f8] sm:$0xff]  }
  0x85   :  { %5007 = vmatpush3.bf16.msra.mxu1 %v5514_v27  ;;  %3747 = vmatprep.mubr.bf16.mxu1 %v4386_v62  ;;  %v5576_v27 = vld [vmem:[%s7103_s1 + $0x538] sm:$0xff]   ;;  %v5609_v62 = vld [vmem:[%s7103_s1 + $0x6f0] sm:$0xff]  }
  0x86   :  { %5008 = vmatprep.subr.bf16.mxu1 %v5517_v30 }
  0x87   :  { %4987 = vmatpush3.bf16.msra.mxu0 %v5516_v29  ;;  %v25_v29 = vld [vmem:[%s7104_s0 + $0x50] sm:$0xff] }
  0x88   :  { %4988 = vmatprep.subr.bf16.mxu0 %v5519_v32  ;;  %v4387_v30 = vcombine.low %v25_v29, %v25_v29  ;;  %v5580_v32 = vld [vmem:[%s7103_s1 + $0x5b8] sm:$0xff]  }
  0x89   :  { %5009 = vmatpush3.bf16.msra.mxu1 %v5518_v31  ;;  %v4388_v31 = vcombine.high %v25_v29, %v25_v29  ;;  %v5637_v29 = vld [vmem:[%s7103_s1 + $0x7e0] sm:$0xff]  }
  0x8a   :  { %5010 = vmatprep.subr.bf16.mxu1 %v5521_v34  ;;  %v26_v34 = vld [vmem:[%s7104_s0 + $0x58] sm:$0xff] }
  0x8b   :  { %4989 = vmatpush3.bf16.msra.mxu0 %v5520_v33  ;;  %v5581_v33 = vld [vmem:[%s7103_s1 + $0x640] sm:$0xff]  }
  0x8c   :  { %4990 = vmatprep.subr.bf16.mxu0 %v5523_v36  ;;  %v4390_v36 = vcombine.high %v26_v34, %v26_v34 }
  0x8d   :  { %5011 = vmatpush3.bf16.msra.mxu1 %v5522_v35  ;;  %v4389_v35 = vcombine.low %v26_v34, %v26_v34 }
  0x8e   :  { %5012 = vmatprep.subr.bf16.mxu1 %v5525_v38  ;;  %v5585_v38 = vld [vmem:[%s7103_s1 + $0x6c0] sm:$0xff]  }
  0x8f   :  { %4991 = vmatpush3.bf16.msra.mxu0 %v5524_v37  ;;  %v5584_v37 = vld [vmem:[%s7103_s1 + $0x600] sm:$0xff]  }
  0x90   :  { %4992 = vmatprep.subr.bf16.mxu0 %v5527_v40  ;;  %v5587_v40 = vld [vmem:[%s7103_s1 + $0x648] sm:$0xff]  }
  0x91   :  { %5013 = vmatpush3.bf16.msra.mxu1 %v5526_v39  ;;  %v5586_v39 = vld [vmem:[%s7103_s1 + $0x680] sm:$0xff]  }
  0x92   :  { %5014 = vmatprep.subr.bf16.mxu1 %v5529_v42  ;;  %v5589_v42 = vld [vmem:[%s7103_s1 + $0x6c8] sm:$0xff]  }
  0x93   :  { %4993 = vmatpush3.bf16.msra.mxu0 %v5528_v41  ;;  %v5588_v41 = vld [vmem:[%s7103_s1 + $0x608] sm:$0xff]  }
  0x94   :  { %4994 = vmatprep.subr.bf16.mxu0 %v5531_v44  ;;  %v5591_v44 = vld [vmem:[%s7103_s1 + $0x650] sm:$0xff]  }
  0x95   :  { %5015 = vmatpush3.bf16.msra.mxu1 %v5530_v43  ;;  %v5590_v43 = vld [vmem:[%s7103_s1 + $0x688] sm:$0xff]  }
  0x96   :  { %5016 = vmatprep.subr.bf16.mxu1 %v5533_v46  ;;  %v5593_v46 = vld [vmem:[%s7103_s1 + $0x6d0] sm:$0xff]  }
  0x97   :  { %4995 = vmatpush3.bf16.msra.mxu0 %v5532_v45  ;;  %v5592_v45 = vld [vmem:[%s7103_s1 + $0x610] sm:$0xff]  }
  0x98   :  { %4996 = vmatprep.subr.bf16.mxu0 %v5535_v48  ;;  %v5595_v48 = vld [vmem:[%s7103_s1 + $0x658] sm:$0xff]  }
  0x99   :  { %5017 = vmatpush3.bf16.msra.mxu1 %v5534_v47  ;;  %v5594_v47 = vld [vmem:[%s7103_s1 + $0x690] sm:$0xff]  }
  0x9a   :  { %5018 = vmatprep.subr.bf16.mxu1 %v5537_v50  ;;  %v5597_v50 = vld [vmem:[%s7103_s1 + $0x6d8] sm:$0xff]  }
  0x9b   :  { %4997 = vmatpush3.bf16.msra.mxu0 %v5536_v49  ;;  %v5596_v49 = vld [vmem:[%s7103_s1 + $0x618] sm:$0xff]  }
  0x9c   :  { %4998 = vmatprep.subr.bf16.mxu0 %v5539_v52  ;;  %v5599_v52 = vld [vmem:[%s7103_s1 + $0x660] sm:$0xff]  }
  0x9d   :  { %5019 = vmatpush3.bf16.msra.mxu1 %v5538_v51  ;;  %v5598_v51 = vld [vmem:[%s7103_s1 + $0x698] sm:$0xff]  }
  0x9e   :  { %5020 = vmatprep.subr.bf16.mxu1 %v5541_v54  ;;  %v5601_v54 = vld [vmem:[%s7103_s1 + $0x6e0] sm:$0xff]  }
  0x9f   :  { %4999 = vmatpush3.bf16.msra.mxu0 %v5540_v53  ;;  %v5600_v53 = vld [vmem:[%s7103_s1 + $0x620] sm:$0xff]  }
  0xa0   :  { %5028 = vmatprep.subr.bf16.mxu0 %v5545_v59  ;;  %v5606_v59 = vld [vmem:[%s7103_s1 + $0x6a8] sm:$0xff]  }
  0xa1   :  { %5021 = vmatpush3.bf16.msra.mxu1 %v5544_v58  ;;  %v5605_v58 = vld [vmem:[%s7103_s1 + $0x6e8] sm:$0xff]  }
  0xa2   :  { %3708 = vmatmul.mubr.bf16.vlgmr.msra.gmra.mrb[16].mxu0 %v4383_v56  ;;  %5050 = vmatprep.subr.bf16.mxu1 %v5549_v0  ;;  %v5603_v56 = vld [vmem:[%s7103_s1 + $0x668] sm:$0xff]   ;;  %v5611_v0 = vld [vmem:[%s7103_s1 + $0x678] sm:$0xff]  }
  0xa3   :  { %5029 = vmatpush3.bf16.msra.mxu0 %v5548_v63  ;;  %3787 = vmatprep.mubr.bf16.mxu0 %v4388_v31  ;;  %v5610_v63 = vld [vmem:[%s7103_s1 + $0x6b0] sm:$0xff]   ;;  %v5638_v31 = vld [vmem:[%s7103_s1 + $0x7a0] sm:$0xff]  }
  0xa4   :  { %3748 = vmatmul.mubr.bf16.vlgmr.msra.gmra.mrb[16].mxu1 %v4385_v61  ;;  %5030 = vmatprep.subr.bf16.mxu0 %v5551_v2  ;;  %v5608_v61 = vld [vmem:[%s7103_s1 + $0x630] sm:$0xff]   ;;  %v5613_v2 = vld [vmem:[%s7103_s1 + $0x6f8] sm:$0xff]  }
  0xa5   :  { %5051 = vmatpush3.bf16.msra.mxu1 %v5550_v1  ;;  %3827 = vmatprep.mubr.bf16.mxu1 %v4390_v36  ;;  %v5612_v1 = vld [vmem:[%s7103_s1 + $0x638] sm:$0xff]  }
  0xa6   :  { %5052 = vmatprep.subr.bf16.mxu1 %v5553_v4 }
  0xa7   :  { %5031 = vmatpush3.bf16.msra.mxu0 %v5552_v3  ;;  %v27_v3 = vld [vmem:[%s7104_s0 + $0x60] sm:$0xff] }
  0xa8   :  { %5032 = vmatprep.subr.bf16.mxu0 %v5555_v6  ;;  %v4391_v4 = vcombine.low %v27_v3, %v27_v3  ;;  %v5616_v6 = vld [vmem:[%s7103_s1 + $0x6b8] sm:$0xff]  }
  0xa9   :  { %5053 = vmatpush3.bf16.msra.mxu1 %v5554_v5  ;;  %v4392_v5 = vcombine.high %v27_v3, %v27_v3  ;;  %v5661_v3 = vld [vmem:[%s7103_s1 + $0x8c8] sm:$0xff]  }
  0xaa   :  { %5054 = vmatprep.subr.bf16.mxu1 %v5557_v8  ;;  %v28_v8 = vld [vmem:[%s7104_s0 + $0x68] sm:$0xff] }
  0xab   :  { %5033 = vmatpush3.bf16.msra.mxu0 %v5556_v7  ;;  %v5617_v7 = vld [vmem:[%s7103_s1 + $0x740] sm:$0xff]  }
  0xac   :  { %5034 = vmatprep.subr.bf16.mxu0 %v5559_v10  ;;  %v4394_v10 = vcombine.high %v28_v8, %v28_v8 }
  0xad   :  { %5055 = vmatpush3.bf16.msra.mxu1 %v5558_v9  ;;  %v4393_v9 = vcombine.low %v28_v8, %v28_v8  ;;  %v5666_v8 = vld [vmem:[%s7103_s1 + $0x890] sm:$0xff]  }
  0xae   :  { %5056 = vmatprep.subr.bf16.mxu1 %v5561_v12  ;;  %v5621_v12 = vld [vmem:[%s7103_s1 + $0x7c0] sm:$0xff]  }
  0xaf   :  { %5035 = vmatpush3.bf16.msra.mxu0 %v5560_v11  ;;  %v5620_v11 = vld [vmem:[%s7103_s1 + $0x700] sm:$0xff]  }
  0xb0   :  { %5036 = vmatprep.subr.bf16.mxu0 %v5563_v14  ;;  %v5623_v14 = vld [vmem:[%s7103_s1 + $0x748] sm:$0xff]  }
  0xb1   :  { %5057 = vmatpush3.bf16.msra.mxu1 %v5562_v13  ;;  %v5622_v13 = vld [vmem:[%s7103_s1 + $0x780] sm:$0xff]  }
  0xb2   :  { %5058 = vmatprep.subr.bf16.mxu1 %v5565_v16  ;;  %v5625_v16 = vld [vmem:[%s7103_s1 + $0x7c8] sm:$0xff]  }
  0xb3   :  { %5037 = vmatpush3.bf16.msra.mxu0 %v5564_v15  ;;  %v5624_v15 = vld [vmem:[%s7103_s1 + $0x708] sm:$0xff]  }
  0xb4   :  { %5038 = vmatprep.subr.bf16.mxu0 %v5567_v18  ;;  %v5627_v18 = vld [vmem:[%s7103_s1 + $0x750] sm:$0xff]  }
  0xb5   :  { %5059 = vmatpush3.bf16.msra.mxu1 %v5566_v17  ;;  %v5626_v17 = vld [vmem:[%s7103_s1 + $0x788] sm:$0xff]  }
  0xb6   :  { %5060 = vmatprep.subr.bf16.mxu1 %v5569_v20  ;;  %v5629_v20 = vld [vmem:[%s7103_s1 + $0x7d0] sm:$0xff]  }
  0xb7   :  { %5039 = vmatpush3.bf16.msra.mxu0 %v5568_v19  ;;  %v5628_v19 = vld [vmem:[%s7103_s1 + $0x710] sm:$0xff]  }
  0xb8   :  { %5040 = vmatprep.subr.bf16.mxu0 %v5571_v22  ;;  %v5631_v22 = vld [vmem:[%s7103_s1 + $0x758] sm:$0xff]  }
  0xb9   :  { %5061 = vmatpush3.bf16.msra.mxu1 %v5570_v21  ;;  %v5630_v21 = vld [vmem:[%s7103_s1 + $0x790] sm:$0xff]  }
  0xba   :  { %5062 = vmatprep.subr.bf16.mxu1 %v5573_v24  ;;  %v5633_v24 = vld [vmem:[%s7103_s1 + $0x7d8] sm:$0xff]  }
  0xbb   :  { %5041 = vmatpush3.bf16.msra.mxu0 %v5572_v23  ;;  %v5632_v23 = vld [vmem:[%s7103_s1 + $0x718] sm:$0xff]  }
  0xbc   :  { %5042 = vmatprep.subr.bf16.mxu0 %v5575_v26  ;;  %v5635_v26 = vld [vmem:[%s7103_s1 + $0x760] sm:$0xff]  }
  0xbd   :  { %5063 = vmatpush3.bf16.msra.mxu1 %v5574_v25  ;;  %v5634_v25 = vld [vmem:[%s7103_s1 + $0x798] sm:$0xff]  }
  0xbe   :  { %5064 = vmatprep.subr.bf16.mxu1 %v5577_v28 }
  0xbf   :  { %5043 = vmatpush3.bf16.msra.mxu0 %v5576_v27  ;;  %v5636_v27 = vld [vmem:[%s7103_s1 + $0x720] sm:$0xff]  }
  0xc0   :  { %5072 = vmatprep.subr.bf16.mxu0 %v5581_v33 }
  0xc1   :  { %5065 = vmatpush3.bf16.msra.mxu1 %v5580_v32  ;;  %v4366_v32 = vld [vmem:[%s7105_s2] ss:$0 sm:$0xff] }
  0xc2   :  { %3788 = vmatmul.mubr.bf16.vlgmr.msra.gmra.mrb[20].mxu0 %v4387_v30  ;;  %5094 = vmatprep.subr.bf16.mxu1 %v5585_v38  ;;  %v5640_v38 = vld [vmem:[%s7103_s1 + $0x728] sm:$0xff]  }
  0xc3   :  { %5073 = vmatpush3.bf16.msra.mxu0 %v5584_v37  ;;  %3867 = vmatprep.mubr.bf16.mxu0 %v4392_v5  ;;  %v5663_v5 = vld [vmem:[%s7103_s1 + $0x850] sm:$0xff]  }
  0xc4   :  { %3828 = vmatmul.mubr.bf16.vlgmr.msra.gmra.mrb[20].mxu1 %v4389_v35  ;;  %5074 = vmatprep.subr.bf16.mxu0 %v5587_v40  ;;  %v5639_v35 = vld [vmem:[%s7103_s1 + $0x768] sm:$0xff]  }
  0xc5   :  { %5095 = vmatpush3.bf16.msra.mxu1 %v5586_v39  ;;  %3907 = vmatprep.mubr.bf16.mxu1 %v4394_v10  ;;  %v5668_v10 = vld [vmem:[%s7103_s1 + $0x818] sm:$0xff]  }
  0xc6   :  { %5096 = vmatprep.subr.bf16.mxu1 %v5589_v42 }
  0xc7   :  { %5075 = vmatpush3.bf16.msra.mxu0 %v5588_v41  ;;  %v5641_v41 = vld [vmem:[%s7103_s1 + $0x7e8] sm:$0xff]  }
  0xc8   :  { %5076 = vmatprep.subr.bf16.mxu0 %v5591_v44 }
  0xc9   :  { %5097 = vmatpush3.bf16.msra.mxu1 %v5590_v43  ;;  %v5642_v43 = vld [vmem:[%s7103_s1 + $0x7a8] sm:$0xff]  }
  0xca   :  { %5098 = vmatprep.subr.bf16.mxu1 %v5593_v46 }
  0xcb   :  { %5077 = vmatpush3.bf16.msra.mxu0 %v5592_v45  ;;  %v5643_v45 = vld [vmem:[%s7103_s1 + $0x770] sm:$0xff]  }
  0xcc   :  { %5078 = vmatprep.subr.bf16.mxu0 %v5595_v48  ;;  %v5644_v48 = vld [vmem:[%s7103_s1 + $0x730] sm:$0xff]  }
  0xcd   :  { %5099 = vmatpush3.bf16.msra.mxu1 %v5594_v47 }
  0xce   :  { %5100 = vmatprep.subr.bf16.mxu1 %v5597_v50  ;;  %v5646_v50 = vld [vmem:[%s7103_s1 + $0x7b0] sm:$0xff]  }
  0xcf   :  { %5079 = vmatpush3.bf16.msra.mxu0 %v5596_v49  ;;  %v5645_v49 = vld [vmem:[%s7103_s1 + $0x7f0] sm:$0xff]  }
  0xd0   :  { %5080 = vmatprep.subr.bf16.mxu0 %v5599_v52  ;;  %v5648_v52 = vld [vmem:[%s7103_s1 + $0x738] sm:$0xff]  }
  0xd1   :  { %5101 = vmatpush3.bf16.msra.mxu1 %v5598_v51  ;;  %v5647_v51 = vld [vmem:[%s7103_s1 + $0x778] sm:$0xff]  }
  0xd2   :  { %5102 = vmatprep.subr.bf16.mxu1 %v5601_v54  ;;  %v29_v54 = vld [vmem:[%s7104_s0 + $0x70] sm:$0xff] }
  0xd3   :  { %5081 = vmatpush3.bf16.msra.mxu0 %v5600_v53  ;;  %v5649_v53 = vld [vmem:[%s7103_s1 + $0x7f8] sm:$0xff]  }
  0xd4   :  { %5082 = vmatprep.subr.bf16.mxu0 %v5603_v56  ;;  %v4396_v56 = vcombine.high %v29_v54, %v29_v54 }
  0xd5   :  { %5103 = vmatpush3.bf16.msra.mxu1 %v5602_v55  ;;  %v4395_v55 = vcombine.low %v29_v54, %v29_v54  ;;  %v5698_v54 = vld [vmem:[%s7103_s1 + $0x988] sm:$0xff]  }
  0xd6   :  { %5104 = vmatprep.subr.bf16.mxu1 %v5605_v58  ;;  %v5653_v58 = vld [vmem:[%s7103_s1 + $0x840] sm:$0xff]  }
  0xd7   :  { %5083 = vmatpush3.bf16.msra.mxu0 %v5604_v57  ;;  %v5652_v57 = vld [vmem:[%s7103_s1 + $0x7b8] sm:$0xff]  }
  0xd8   :  { %5084 = vmatprep.subr.bf16.mxu0 %v5607_v60 }
  0xd9   :  { %5105 = vmatpush3.bf16.msra.mxu1 %v5606_v59  ;;  %v30_v59 = vld [vmem:[%s7104_s0 + $0x78] sm:$0xff] }
  0xda   :  { %5106 = vmatprep.subr.bf16.mxu1 %v5609_v62  ;;  %v4397_v60 = vcombine.low %v30_v59, %v30_v59  ;;  %v5656_v62 = vld [vmem:[%s7103_s1 + $0x800] sm:$0xff]  }
  0xdb   :  { %5085 = vmatpush3.bf16.msra.mxu0 %v5608_v61  ;;  %v4398_v61 = vcombine.high %v30_v59, %v30_v59  ;;  %v5703_v59 = vld [vmem:[%s7103_s1 + $0x958] sm:$0xff]  }
  0xdc   :  { %5086 = vmatprep.subr.bf16.mxu0 %v5611_v0  ;;  %v5658_v0 = vld [vmem:[%s7103_s1 + $0x880] sm:$0xff]  }
  0xdd   :  { %5107 = vmatpush3.bf16.msra.mxu1 %v5610_v63  ;;  %v5657_v63 = vld [vmem:[%s7103_s1 + $0x8c0] sm:$0xff]  }
  0xde   :  { %5108 = vmatprep.subr.bf16.mxu1 %v5613_v2  ;;  %v5660_v2 = vld [vmem:[%s7103_s1 + $0x808] sm:$0xff]  }
  0xdf   :  { %5087 = vmatpush3.bf16.msra.mxu0 %v5612_v1  ;;  %v5659_v1 = vld [vmem:[%s7103_s1 + $0x848] sm:$0xff]  }
  0xe0   :  { %5116 = vmatprep.subr.bf16.mxu0 %v5617_v7  ;;  %v5665_v7 = vld [vmem:[%s7103_s1 + $0x8d0] sm:$0xff]  }
  0xe1   :  { %5109 = vmatpush3.bf16.msra.mxu1 %v5616_v6  ;;  %v5664_v6 = vld [vmem:[%s7103_s1 + $0x810] sm:$0xff]  }
  0xe2   :  { %3868 = vmatmul.mubr.bf16.vlgmr.msra.gmra.mrb[24].mxu0 %v4391_v4  ;;  %5138 = vmatprep.subr.bf16.mxu1 %v5621_v12  ;;  %v5662_v4 = vld [vmem:[%s7103_s1 + $0x888] sm:$0xff]   ;;  %v5670_v12 = vld [vmem:[%s7103_s1 + $0x898] sm:$0xff]  }
  0xe3   :  { %5117 = vmatpush3.bf16.msra.mxu0 %v5620_v11  ;;  %3947 = vmatprep.mubr.bf16.mxu0 %v4396_v56  ;;  %v5669_v11 = vld [vmem:[%s7103_s1 + $0x8d8] sm:$0xff]   ;;  %v5700_v56 = vld [vmem:[%s7103_s1 + $0x910] sm:$0xff]  }
  0xe4   :  { %3908 = vmatmul.mubr.bf16.vlgmr.msra.gmra.mrb[24].mxu1 %v4393_v9  ;;  %5118 = vmatprep.subr.bf16.mxu0 %v5623_v14  ;;  %v5667_v9 = vld [vmem:[%s7103_s1 + $0x858] sm:$0xff]  }
  0xe5   :  { %5139 = vmatpush3.bf16.msra.mxu1 %v5622_v13  ;;  %3987 = vmatprep.mubr.bf16.mxu1 %v4398_v61  ;;  %v5671_v13 = vld [vmem:[%s7103_s1 + $0x860] sm:$0xff]   ;;  %v5705_v61 = vld [vmem:[%s7103_s1 + $0x9d8] sm:$0xff]  }
  0xe6   :  { %5140 = vmatprep.subr.bf16.mxu1 %v5625_v16 }
  0xe7   :  { %5119 = vmatpush3.bf16.msra.mxu0 %v5624_v15  ;;  %v5672_v15 = vld [vmem:[%s7103_s1 + $0x820] sm:$0xff]  }
  0xe8   :  { %5120 = vmatprep.subr.bf16.mxu0 %v5627_v18 }
  0xe9   :  { %5141 = vmatpush3.bf16.msra.mxu1 %v5626_v17  ;;  %v5673_v17 = vld [vmem:[%s7103_s1 + $0x8e0] sm:$0xff]  }
  0xea   :  { %5142 = vmatprep.subr.bf16.mxu1 %v5629_v20  ;;  %v5674_v20 = vld [vmem:[%s7103_s1 + $0x8a0] sm:$0xff]  }
  0xeb   :  { %5121 = vmatpush3.bf16.msra.mxu0 %v5628_v19 }
  0xec   :  { %5122 = vmatprep.subr.bf16.mxu0 %v5631_v22 }
  0xed   :  { %5143 = vmatpush3.bf16.msra.mxu1 %v5630_v21 }
  0xee   :  { %5144 = vmatprep.subr.bf16.mxu1 %v5633_v24 }
  0xef   :  { %5123 = vmatpush3.bf16.msra.mxu0 %v5632_v23  ;;  %v5675_v23 = vld [vmem:[%s7103_s1 + $0x868] sm:$0xff]  }
  0xf0   :  { %5124 = vmatprep.subr.bf16.mxu0 %v5635_v26 }
  0xf1   :  { %5145 = vmatpush3.bf16.msra.mxu1 %v5634_v25  ;;  %v5676_v25 = vld [vmem:[%s7103_s1 + $0x828] sm:$0xff]  }
  0xf2   :  { %5146 = vmatprep.subr.bf16.mxu1 %v5637_v29 }
  0xf3   :  { %5125 = vmatpush3.bf16.msra.mxu0 %v5636_v27 }
  0xf4   :  { %5126 = vmatprep.subr.bf16.mxu0 %v5639_v35  ;;  %v5681_v35 = vld [vmem:[%s7103_s1 + $0x8f0] sm:$0xff]  }
  0xf5   :  { %v4824_v28 = vpop.f32.mrb[0].mxu0  ;;  %5147 = vmatpush3.bf16.msra.mxu1 %v5638_v31 }
  0xf6   :  { %v4825_v30 = vpop.f32.mrb[1].mxu0  ;;  %5148 = vmatprep.subr.bf16.mxu1 %v5641_v41 }
  0xf7   :  { %v4826_v33 = vadd.f32 %v4825_v30, %v4824_v28  ;;  %v4827_v34 = vpop.f32.mrb[2].mxu0  ;;  %v4846_v36 = vpop.f32.mrb[0].mxu1  ;;  %5127 = vmatpush3.bf16.msra.mxu0 %v5640_v38  ;;  %v5677_v28 = vld [vmem:[%s7103_s1 + $0x8e8] sm:$0xff]   ;;  %v5684_v38 = vld [vmem:[%s7103_s1 + $0x838] sm:$0xff]  }
  0xf8   :  { %v4828_v39 = vpop.f32.mrb[3].mxu0  ;;  %v4847_v40 = vpop.f32.mrb[1].mxu1  ;;  %5128 = vmatprep.subr.bf16.mxu0 %v5643_v45  ;;  %v5678_v30 = vld [vmem:[%s7103_s1 + $0x8a8] sm:$0xff]   ;;  %v5680_v34 = vld [vmem:[%s7103_s1 + $0x830] sm:$0xff]  }
  0xf9   :  { %v3390_v37 = vadd.f32 %v4826_v33, %v4366_v32  ;;  %v4848_v42 = vadd.f32 %v4847_v40, %v4846_v36  ;;  %v4849_v44 = vpop.f32.mrb[2].mxu1  ;;  %5149 = vmatpush3.bf16.msra.mxu1 %v5642_v43  ;;  %v5679_v33 = vld [vmem:[%s7103_s1 + $0x870] sm:$0xff]   ;;  %v5685_v39 = vld [vmem:[%s7103_s1 + $0x8f8] sm:$0xff]   ;;  %v31_v40 = vld [vmem:[%s7104_s0 + $0x80] sm:$0xff] }
  0xfa   :  { %v4850_v46 = vpop.f32.mrb[3].mxu1  ;;  %5150 = vmatprep.subr.bf16.mxu1 %v5645_v49  ;;  %v5682_v36 = vld [vmem:[%s7103_s1 + $0x8b0] sm:$0xff]   ;;  %v4399_v41 = vcombine.low %v31_v40, %v31_v40  ;;  %v5688_v43 = vld [vmem:[%s7103_s1 + $0x8b8] sm:$0xff]   ;;  %v5689_v44 = vld [vmem:[%s7103_s1 + $0x940] sm:$0xff]  }
  0xfb   :  { %v6626_v47 = vadd.f32 %v4848_v42, %v3390_v37  ;;  %5129 = vmatpush3.bf16.msra.mxu0 %v5644_v48  ;;  %v5683_v37 = vld [vmem:[%s7103_s1 + $0x878] sm:$0xff]   ;;  %v4400_v42 = vcombine.high %v31_v40, %v31_v40  ;;  %v32_v45 = vld [vmem:[%s7104_s0 + $0x88] sm:$0xff]  ;;  %v5692_v48 = vld [vmem:[%s7103_s1 + $0x900] sm:$0xff]  }
  0xfc   :  { %5130 = vmatprep.subr.bf16.mxu0 %v5647_v51  ;;  %v4401_v46 = vcombine.low %v32_v45, %v32_v45  ;;  %v5693_v49 = vld [vmem:[%s7103_s1 + $0x9c0] sm:$0xff]   ;;  %v5695_v51 = vld [vmem:[%s7103_s1 + $0x948] sm:$0xff]  }
  0xfd   :  { %5151 = vmatpush3.bf16.msra.mxu1 %v5646_v50  ;;  %v5694_v50 = vld [vmem:[%s7103_s1 + $0x980] sm:$0xff]   ;;  %v5734_v40 = vld [vmem:[%s7103_s1 + $0xa88] sm:$0xff]  }
  0xfe   :  { %5152 = vmatprep.subr.bf16.mxu1 %v5649_v53  ;;  %v5697_v53 = vld [vmem:[%s7103_s1 + $0x9c8] sm:$0xff]  }
  0xff   :  { %5131 = vmatpush3.bf16.msra.mxu0 %v5648_v52  ;;  %v5696_v52 = vld [vmem:[%s7103_s1 + $0x908] sm:$0xff]  }
 0x100   :  { %5160 = vmatprep.subr.bf16.mxu0 %v5653_v58  ;;  %v5702_v58 = vld [vmem:[%s7103_s1 + $0x990] sm:$0xff]  }
 0x101   :  { %5153 = vmatpush3.bf16.msra.mxu1 %v5652_v57  ;;  %v5701_v57 = vld [vmem:[%s7103_s1 + $0x9d0] sm:$0xff]  }
 0x102   :  { %3948 = vmatmul.mubr.bf16.vlgmr.msra.gmra.mrb[28].mxu0 %v4395_v55  ;;  %5182 = vmatprep.subr.bf16.mxu1 %v5657_v63  ;;  %v5699_v55 = vld [vmem:[%s7103_s1 + $0x950] sm:$0xff]   ;;  %v5707_v63 = vld [vmem:[%s7103_s1 + $0x960] sm:$0xff]  }
 0x103   :  { %5161 = vmatpush3.bf16.msra.mxu0 %v5656_v62  ;;  %4027 = vmatprep.mubr.bf16.mxu0 %v4400_v42  ;;  %v5706_v62 = vld [vmem:[%s7103_s1 + $0x998] sm:$0xff]   ;;  %v5736_v42 = vld [vmem:[%s7103_s1 + $0xa10] sm:$0xff]  }
 0x104   :  { %3988 = vmatmul.mubr.bf16.vlgmr.msra.gmra.mrb[28].mxu1 %v4397_v60  ;;  %5162 = vmatprep.subr.bf16.mxu0 %v5659_v1  ;;  %v5704_v60 = vld [vmem:[%s7103_s1 + $0x918] sm:$0xff]   ;;  %v5708_v1 = vld [vmem:[%s7103_s1 + $0x920] sm:$0xff]  }
 0x105   :  { %5183 = vmatpush3.bf16.msra.mxu1 %v5658_v0 }
 0x106   :  { %5184 = vmatprep.subr.bf16.mxu1 %v5661_v3  ;;  %v5709_v3 = vld [vmem:[%s7103_s1 + $0x9e0] sm:$0xff]  }
 0x107   :  { %5163 = vmatpush3.bf16.msra.mxu0 %v5660_v2 }
 0x108   :  { %5164 = vmatprep.subr.bf16.mxu0 %v5663_v5 }
 0x109   :  { %5185 = vmatpush3.bf16.msra.mxu1 %v5662_v4 }
 0x10a   :  { %5186 = vmatprep.subr.bf16.mxu1 %v5665_v7 }
 0x10b   :  { %5165 = vmatpush3.bf16.msra.mxu0 %v5664_v6  ;;  %v5710_v6 = vld [vmem:[%s7103_s1 + $0x9a0] sm:$0xff]  }
 0x10c   :  { %5166 = vmatprep.subr.bf16.mxu0 %v5667_v9  ;;  %v5711_v9 = vld [vmem:[%s7103_s1 + $0x968] sm:$0xff]  }
 0x10d   :  { %5187 = vmatpush3.bf16.msra.mxu1 %v5666_v8 }
 0x10e   :  { %5188 = vmatprep.subr.bf16.mxu1 %v5669_v11  ;;  %v5712_v11 = vld [vmem:[%s7103_s1 + $0x928] sm:$0xff]  }
 0x10f   :  { %5167 = vmatpush3.bf16.msra.mxu0 %v5668_v10 }
 0x110   :  { %5168 = vmatprep.subr.bf16.mxu0 %v5671_v13 }
 0x111   :  { %5189 = vmatpush3.bf16.msra.mxu1 %v5670_v12 }
 0x112   :  { %5190 = vmatprep.subr.bf16.mxu1 %v5673_v17 }
 0x113   :  { %5169 = vmatpush3.bf16.msra.mxu0 %v5672_v15 }
 0x114   :  { %5170 = vmatprep.subr.bf16.mxu0 %v5675_v23  ;;  %v5719_v23 = vld [vmem:[%s7103_s1 + $0x978] sm:$0xff]  }
 0x115   :  { %v4868_v14 = vpop.f32.mrb[4].mxu0  ;;  %5191 = vmatpush3.bf16.msra.mxu1 %v5674_v20  ;;  %v5716_v20 = vld [vmem:[%s7103_s1 + $0x930] sm:$0xff]  }
 0x116   :  { %v4869_v16 = vpop.f32.mrb[5].mxu0  ;;  %5192 = vmatprep.subr.bf16.mxu1 %v5677_v28 }
 0x117   :  { %v4870_v18 = vadd.f32 %v4869_v16, %v4868_v14  ;;  %v4871_v19 = vpop.f32.mrb[6].mxu0  ;;  %v4890_v21 = vpop.f32.mrb[4].mxu1  ;;  %5171 = vmatpush3.bf16.msra.mxu0 %v5676_v25  ;;  %v5713_v14 = vld [vmem:[%s7103_s1 + $0x9e8] sm:$0xff]   ;;  %v5721_v25 = vld [vmem:[%s7103_s1 + $0x9f8] sm:$0xff]  }
 0x118   :  { %v4872_v24 = vpop.f32.mrb[7].mxu0  ;;  %v4891_v26 = vpop.f32.mrb[5].mxu1  ;;  %5172 = vmatprep.subr.bf16.mxu0 %v5679_v33  ;;  %v5714_v16 = vld [vmem:[%s7103_s1 + $0x9a8] sm:$0xff]   ;;  %v5715_v19 = vld [vmem:[%s7103_s1 + $0x970] sm:$0xff]  }
 0x119   :  { %v3470_v22 = vadd.f32 %v4870_v18, %v6626_v47  ;;  %v4892_v27 = vadd.f32 %v4891_v26, %v4890_v21  ;;  %v4893_v29 = vpop.f32.mrb[6].mxu1  ;;  %5193 = vmatpush3.bf16.msra.mxu1 %v5678_v30  ;;  %v4402_v47 = vcombine.high %v32_v45, %v32_v45  ;;  %v5717_v21 = vld [vmem:[%s7103_s1 + $0x9f0] sm:$0xff]   ;;  %v5720_v24 = vld [vmem:[%s7103_s1 + $0x938] sm:$0xff]   ;;  %v5725_v30 = vld [vmem:[%s7103_s1 + $0xa40] sm:$0xff]  }
 0x11a   :  { %v4894_v31 = vpop.f32.mrb[7].mxu1  ;;  %5194 = vmatprep.subr.bf16.mxu1 %v5681_v35  ;;  %v33_v26 = vld [vmem:[%s7104_s0 + $0x90] sm:$0xff]  ;;  %v5724_v29 = vld [vmem:[%s7103_s1 + $0x9b8] sm:$0xff]   ;;  %v5729_v35 = vld [vmem:[%s7103_s1 + $0xac0] sm:$0xff]  }
 0x11b   :  { %v6728_v32 = vadd.f32 %v4892_v27, %v3470_v22  ;;  %5173 = vmatpush3.bf16.msra.mxu0 %v5680_v34  ;;  %4067 = vmatprep.mubr.bf16.mxu1 %v4402_v47  ;;  %v5718_v22 = vld [vmem:[%s7103_s1 + $0x9b0] sm:$0xff]   ;;  %v4403_v27 = vcombine.low %v33_v26, %v33_v26  ;;  %v4404_v28 = vcombine.high %v33_v26, %v33_v26  ;;  %v34_v31 = vld [vmem:[%s7104_s0 + $0x98] sm:$0xff]  ;;  %v5728_v34 = vld [vmem:[%s7103_s1 + $0xa00] sm:$0xff]  }
 0x11c   :  { %5174 = vmatprep.subr.bf16.mxu0 %v5683_v37  ;;  %v4406_v33 = vcombine.high %v34_v31, %v34_v31  ;;  %v5731_v37 = vld [vmem:[%s7103_s1 + $0xa48] sm:$0xff]   ;;  %v5739_v45 = vld [vmem:[%s7103_s1 + $0xa58] sm:$0xff]  }
 0x11d   :  { %5195 = vmatpush3.bf16.msra.mxu1 %v5682_v36  ;;  %v5730_v36 = vld [vmem:[%s7103_s1 + $0xa80] sm:$0xff]   ;;  %v5741_v47 = vld [vmem:[%s7103_s1 + $0xad8] sm:$0xff]   ;;  %v5770_v26 = vld [vmem:[%s7103_s1 + $0xb88] sm:$0xff]  }
 0x11e   :  { %5196 = vmatprep.subr.bf16.mxu1 %v5685_v39  ;;  %v5733_v39 = vld [vmem:[%s7103_s1 + $0xac8] sm:$0xff]  }
 0x11f   :  { %5175 = vmatpush3.bf16.msra.mxu0 %v5684_v38  ;;  %v5732_v38 = vld [vmem:[%s7103_s1 + $0xa08] sm:$0xff]  }
 0x120   :  { %5204 = vmatprep.subr.bf16.mxu0 %v5689_v44  ;;  %v5738_v44 = vld [vmem:[%s7103_s1 + $0xa90] sm:$0xff]  }
 0x121   :  { %5197 = vmatpush3.bf16.msra.mxu1 %v5688_v43  ;;  %v5737_v43 = vld [vmem:[%s7103_s1 + $0xad0] sm:$0xff]  }
 0x122   :  { %4028 = vmatmul.mubr.bf16.vlgmr.msra.gmra.mrb[32].mxu0 %v4399_v41  ;;  %5226 = vmatprep.subr.bf16.mxu1 %v5693_v49  ;;  %v5735_v41 = vld [vmem:[%s7103_s1 + $0xa50] sm:$0xff]   ;;  %v5743_v49 = vld [vmem:[%s7103_s1 + $0xa60] sm:$0xff]  }
 0x123   :  { %5205 = vmatpush3.bf16.msra.mxu0 %v5692_v48  ;;  %4107 = vmatprep.mubr.bf16.mxu0 %v4404_v28  ;;  %v5742_v48 = vld [vmem:[%s7103_s1 + $0xa98] sm:$0xff]   ;;  %v5772_v28 = vld [vmem:[%s7103_s1 + $0xb10] sm:$0xff]  }
 0x124   :  { %4068 = vmatmul.mubr.bf16.vlgmr.msra.gmra.mrb[32].mxu1 %v4401_v46  ;;  %5206 = vmatprep.subr.bf16.mxu0 %v5695_v51  ;;  %v5740_v46 = vld [vmem:[%s7103_s1 + $0xa18] sm:$0xff]  }
 0x125   :  { %5227 = vmatpush3.bf16.msra.mxu1 %v5694_v50  ;;  %4147 = vmatprep.mubr.bf16.mxu1 %v4406_v33  ;;  %v5744_v50 = vld [vmem:[%s7103_s1 + $0xa20] sm:$0xff]   ;;  %v5777_v33 = vld [vmem:[%s7103_s1 + $0xbd8] sm:$0xff]  }
 0x126   :  { %5228 = vmatprep.subr.bf16.mxu1 %v5697_v53 }
 0x127   :  { %5207 = vmatpush3.bf16.msra.mxu0 %v5696_v52  ;;  %v5745_v52 = vld [vmem:[%s7103_s1 + $0xae0] sm:$0xff]  }
 0x128   :  { %5208 = vmatprep.subr.bf16.mxu0 %v5699_v55 }
 0x129   :  { %5229 = vmatpush3.bf16.msra.mxu1 %v5698_v54  ;;  %v5746_v54 = vld [vmem:[%s7103_s1 + $0xaa0] sm:$0xff]  }
 0x12a   :  { %5230 = vmatprep.subr.bf16.mxu1 %v5701_v57  ;;  %v5747_v57 = vld [vmem:[%s7103_s1 + $0xa68] sm:$0xff]  }
 0x12b   :  { %5209 = vmatpush3.bf16.msra.mxu0 %v5700_v56 }
 0x12c   :  { %5210 = vmatprep.subr.bf16.mxu0 %v5703_v59 }
 0x12d   :  { %5231 = vmatpush3.bf16.msra.mxu1 %v5702_v58 }
 0x12e   :  { %5232 = vmatprep.subr.bf16.mxu1 %v5705_v61 }
 0x12f   :  { %5211 = vmatpush3.bf16.msra.mxu0 %v5704_v60  ;;  %v5748_v60 = vld [vmem:[%s7103_s1 + $0xa28] sm:$0xff]  }
 0x130   :  { %5212 = vmatprep.subr.bf16.mxu0 %v5707_v63  ;;  %v5749_v63 = vld [vmem:[%s7103_s1 + $0xae8] sm:$0xff]  }
 0x131   :  { %5233 = vmatpush3.bf16.msra.mxu1 %v5706_v62 }
 0x132   :  { %5234 = vmatprep.subr.bf16.mxu1 %v5709_v3  ;;  %v5751_v3 = vld [vmem:[%s7103_s1 + $0xa70] sm:$0xff]  }
 0x133   :  { %5213 = vmatpush3.bf16.msra.mxu0 %v5708_v1  ;;  %v5750_v1 = vld [vmem:[%s7103_s1 + $0xaa8] sm:$0xff]  }
 0x134   :  { %5214 = vmatprep.subr.bf16.mxu0 %v5711_v9  ;;  %v5755_v9 = vld [vmem:[%s7103_s1 + $0xa78] sm:$0xff]  }
 0x135   :  { %v4912_v0 = vpop.f32.mrb[8].mxu0  ;;  %5235 = vmatpush3.bf16.msra.mxu1 %v5710_v6  ;;  %v5752_v6 = vld [vmem:[%s7103_s1 + $0xa30] sm:$0xff]  }
 0x136   :  { %v4913_v2 = vpop.f32.mrb[9].mxu0  ;;  %5236 = vmatprep.subr.bf16.mxu1 %v5713_v14 }
 0x137   :  { %v4914_v4 = vadd.f32 %v4913_v2, %v4912_v0  ;;  %v4915_v5 = vpop.f32.mrb[10].mxu0  ;;  %v4934_v7 = vpop.f32.mrb[8].mxu1  ;;  %5215 = vmatpush3.bf16.msra.mxu0 %v5712_v11  ;;  %v5757_v11 = vld [vmem:[%s7103_s1 + $0xaf8] sm:$0xff]  }
 0x138   :  { %v4916_v10 = vpop.f32.mrb[11].mxu0  ;;  %v4935_v12 = vpop.f32.mrb[9].mxu1  ;;  %5216 = vmatprep.subr.bf16.mxu0 %v5715_v19 }
 0x139   :  { %v3550_v8 = vadd.f32 %v4914_v4, %v6728_v32  ;;  %v4936_v13 = vadd.f32 %v4935_v12, %v4934_v7  ;;  %v4937_v15 = vpop.f32.mrb[10].mxu1  ;;  %5237 = vmatpush3.bf16.msra.mxu1 %v5714_v16  ;;  %v4405_v32 = vcombine.low %v34_v31, %v34_v31  ;;  %v5753_v7 = vld [vmem:[%s7103_s1 + $0xaf0] sm:$0xff]   ;;  %v5756_v10 = vld [vmem:[%s7103_s1 + $0xa38] sm:$0xff]   ;;  %v35_v12 = vld [vmem:[%s7104_s0 + $0xa0] sm:$0xff] }
 0x13a   :  { %v4938_v17 = vpop.f32.mrb[11].mxu1  ;;  %5238 = vmatprep.subr.bf16.mxu1 %v5717_v21  ;;  %v4408_v14 = vcombine.high %v35_v12, %v35_v12  ;;  %v5760_v15 = vld [vmem:[%s7103_s1 + $0xab8] sm:$0xff]   ;;  %v5761_v16 = vld [vmem:[%s7103_s1 + $0xb40] sm:$0xff]  }
 0x13b   :  { %v6833_v18 = vadd.f32 %v4936_v13, %v3550_v8  ;;  %5217 = vmatpush3.bf16.msra.mxu0 %v5716_v20  ;;  %v5754_v8 = vld [vmem:[%s7103_s1 + $0xab0] sm:$0xff]   ;;  %v4407_v13 = vcombine.low %v35_v12, %v35_v12  ;;  %v36_v17 = vld [vmem:[%s7104_s0 + $0xa8] sm:$0xff]  ;;  %v5764_v20 = vld [vmem:[%s7103_s1 + $0xb00] sm:$0xff]  }
 0x13c   :  { %5218 = vmatprep.subr.bf16.mxu0 %v5719_v23  ;;  %v4410_v19 = vcombine.high %v36_v17, %v36_v17  ;;  %v5765_v21 = vld [vmem:[%s7103_s1 + $0xbc0] sm:$0xff]   ;;  %v5767_v23 = vld [vmem:[%s7103_s1 + $0xb48] sm:$0xff]   ;;  %v5775_v31 = vld [vmem:[%s7103_s1 + $0xb58] sm:$0xff]  }
 0x13d   :  { %5239 = vmatpush3.bf16.msra.mxu1 %v5718_v22  ;;  %v5766_v22 = vld [vmem:[%s7103_s1 + $0xb80] sm:$0xff]  }
 0x13e   :  { %5240 = vmatprep.subr.bf16.mxu1 %v5721_v25  ;;  %v5769_v25 = vld [vmem:[%s7103_s1 + $0xbc8] sm:$0xff]  }
 0x13f   :  { %5219 = vmatpush3.bf16.msra.mxu0 %v5720_v24  ;;  %v5768_v24 = vld [vmem:[%s7103_s1 + $0xb08] sm:$0xff]  }
 0x140   :  { %5248 = vmatprep.subr.bf16.mxu0 %v5725_v30  ;;  %v5774_v30 = vld [vmem:[%s7103_s1 + $0xb90] sm:$0xff]  }
 0x141   :  { %5241 = vmatpush3.bf16.msra.mxu1 %v5724_v29  ;;  %v5773_v29 = vld [vmem:[%s7103_s1 + $0xbd0] sm:$0xff]  }
 0x142   :  { %4108 = vmatmul.mubr.bf16.vlgmr.msra.gmra.mrb[36].mxu0 %v4403_v27  ;;  %5270 = vmatprep.subr.bf16.mxu1 %v5729_v35  ;;  %v5771_v27 = vld [vmem:[%s7103_s1 + $0xb50] sm:$0xff]   ;;  %v5779_v35 = vld [vmem:[%s7103_s1 + $0xb60] sm:$0xff]  }
 0x143   :  { %5249 = vmatpush3.bf16.msra.mxu0 %v5728_v34  ;;  %4187 = vmatprep.mubr.bf16.mxu0 %v4408_v14  ;;  %v5778_v34 = vld [vmem:[%s7103_s1 + $0xb98] sm:$0xff]  }
 0x144   :  { %4148 = vmatmul.mubr.bf16.vlgmr.msra.gmra.mrb[36].mxu1 %v4405_v32  ;;  %5250 = vmatprep.subr.bf16.mxu0 %v5731_v37  ;;  %v5776_v32 = vld [vmem:[%s7103_s1 + $0xb18] sm:$0xff]   ;;  %v5780_v37 = vld [vmem:[%s7103_s1 + $0xb20] sm:$0xff]  }
 0x145   :  { %5271 = vmatpush3.bf16.msra.mxu1 %v5730_v36  ;;  %4227 = vmatprep.mubr.bf16.mxu1 %v4410_v19 }
 0x146   :  { %5272 = vmatprep.subr.bf16.mxu1 %v5733_v39  ;;  %v5781_v39 = vld [vmem:[%s7103_s1 + $0xbe0] sm:$0xff]  }
 0x147   :  { %5251 = vmatpush3.bf16.msra.mxu0 %v5732_v38 }
 0x148   :  { %5252 = vmatprep.subr.bf16.mxu0 %v5735_v41 }
 0x149   :  { %5273 = vmatpush3.bf16.msra.mxu1 %v5734_v40 }
 0x14a   :  { %5274 = vmatprep.subr.bf16.mxu1 %v5737_v43 }
 0x14b   :  { %5253 = vmatpush3.bf16.msra.mxu0 %v5736_v42  ;;  %v5782_v42 = vld [vmem:[%s7103_s1 + $0xba0] sm:$0xff]  }
 0x14c   :  { %5254 = vmatprep.subr.bf16.mxu0 %v5739_v45  ;;  %v5783_v45 = vld [vmem:[%s7103_s1 + $0xb68] sm:$0xff]  }
 0x14d   :  { %5275 = vmatpush3.bf16.msra.mxu1 %v5738_v44 }
 0x14e   :  { %5276 = vmatprep.subr.bf16.mxu1 %v5741_v47  ;;  %v5784_v47 = vld [vmem:[%s7103_s1 + $0xb28] sm:$0xff]  }
 0x14f   :  { %5255 = vmatpush3.bf16.msra.mxu0 %v5740_v46 }
 0x150   :  { %5256 = vmatprep.subr.bf16.mxu0 %v5743_v49 }
 0x151   :  { %5277 = vmatpush3.bf16.msra.mxu1 %v5742_v48 }
 0x152   :  { %5278 = vmatprep.subr.bf16.mxu1 %v5745_v52  ;;  %v5786_v52 = vld [vmem:[%s7103_s1 + $0xba8] sm:$0xff]  }
 0x153   :  { %5257 = vmatpush3.bf16.msra.mxu0 %v5744_v50  ;;  %v5785_v50 = vld [vmem:[%s7103_s1 + $0xbe8] sm:$0xff]  }
 0x154   :  { %5258 = vmatprep.subr.bf16.mxu0 %v5747_v57  ;;  %v5789_v57 = vld [vmem:[%s7103_s1 + $0xbf0] sm:$0xff]  }
 0x155   :  { %v4956_v51 = vpop.f32.mrb[12].mxu0  ;;  %5279 = vmatpush3.bf16.msra.mxu1 %v5746_v54 }
 0x156   :  { %v4957_v53 = vpop.f32.mrb[13].mxu0  ;;  %5280 = vmatprep.subr.bf16.mxu1 %v5749_v63 }
 0x157   :  { %v4958_v55 = vadd.f32 %v4957_v53, %v4956_v51  ;;  %v4959_v56 = vpop.f32.mrb[14].mxu0  ;;  %v4978_v58 = vpop.f32.mrb[12].mxu1  ;;  %5259 = vmatpush3.bf16.msra.mxu0 %v5748_v60  ;;  %v5792_v60 = vld [vmem:[%s7103_s1 + $0xb38] sm:$0xff]  }
 0x158   :  { %v4960_v61 = vpop.f32.mrb[15].mxu0  ;;  %v4979_v62 = vpop.f32.mrb[13].mxu1  ;;  %5260 = vmatprep.subr.bf16.mxu0 %v5751_v3  ;;  %v5788_v56 = vld [vmem:[%s7103_s1 + $0xb30] sm:$0xff]   ;;  %v38_v3 = vld [vmem:[%s7104_s0 + $0xb8] sm:$0xff] }
 0x159   :  { %v3630_v59 = vadd.f32 %v4958_v55, %v6833_v18  ;;  %v4980_v0 = vadd.f32 %v4979_v62, %v4978_v58  ;;  %v4981_v2 = vpop.f32.mrb[14].mxu1  ;;  %5281 = vmatpush3.bf16.msra.mxu1 %v5750_v1  ;;  %v4409_v18 = vcombine.low %v36_v17, %v36_v17  ;;  %v5787_v55 = vld [vmem:[%s7103_s1 + $0xb70] sm:$0xff]   ;;  %v5793_v61 = vld [vmem:[%s7103_s1 + $0xbf8] sm:$0xff]  }
 0x15a   :  { %v4982_v4 = vpop.f32.mrb[15].mxu1  ;;  %5282 = vmatprep.subr.bf16.mxu1 %v5753_v7  ;;  %v5790_v58 = vld [vmem:[%s7103_s1 + $0xbb0] sm:$0xff]   ;;  %v5796_v1 = vld [vmem:[%s7103_s1 + $0xbb8] sm:$0xff]   ;;  %v5812_v2 = vmov 0.0   ;;  %v5800_v7 = vld [vmem:[%s7103_s1 + $0xc08] sm:$0xff]  }
 0x15b   :  { %v6941_v5 = vadd.f32 %v4980_v0, %v3630_v59  ;;  %5261 = vmatpush3.bf16.msra.mxu0 %v5752_v6  ;;  %v5791_v59 = vld [vmem:[%s7103_s1 + $0xb78] sm:$0xff]   ;;  %v37_v62 = vld [vmem:[%s7104_s0 + $0xb0] sm:$0xff]  ;;  %v4413_v4 = vcombine.low %v38_v3, %v38_v3  ;;  %v5799_v6 = vld [vmem:[%s7103_s1 + $0xc00] sm:$0xff]  }
 0x15c   :  { %5262 = vmatprep.subr.bf16.mxu0 %v5755_v9  ;;  %v4411_v63 = vcombine.low %v37_v62, %v37_v62  ;;  %v4412_v0 = vcombine.high %v37_v62, %v37_v62  ;;  %v5802_v9 = vld [vmem:[%s7103_s1 + $0xc18] sm:$0xff]  }
 0x15d   :  { %5283 = vmatpush3.bf16.msra.mxu1 %v5754_v8  ;;  %v5801_v8 = vld [vmem:[%s7103_s1 + $0xc10] sm:$0xff]  }
 0x15e   :  { %5284 = vmatprep.subr.bf16.mxu1 %v5757_v11 }
 0x15f   :  { %5263 = vmatpush3.bf16.msra.mxu0 %v5756_v10  ;;  %v5803_v10 = vld [vmem:[%s7103_s1 + $0xc20] sm:$0xff]  }
 0x160   :  { %5292 = vmatprep.subr.bf16.mxu0 %v5761_v16  ;;  %v5804_v16 = vld [vmem:[%s7103_s1 + $0xc28] sm:$0xff]  }
 0x161   :  { %5285 = vmatpush3.bf16.msra.mxu1 %v5760_v15 }
 0x162   :  { %4188 = vmatmul.mubr.bf16.vlgmr.msra.gmra.mrb[40].mxu0 %v4407_v13  ;;  %5314 = vmatprep.subr.bf16.mxu1 %v5765_v21 }
 0x163   :  { %5293 = vmatpush3.bf16.msra.mxu0 %v5764_v20  ;;  %4267 = vmatprep.mubr.bf16.mxu0 %v4412_v0 }
 0x164   :  { %4228 = vmatmul.mubr.bf16.vlgmr.msra.gmra.mrb[40].mxu1 %v4409_v18  ;;  %5294 = vmatprep.subr.bf16.mxu0 %v5767_v23 }
 0x165   :  { %5315 = vmatpush3.bf16.msra.mxu1 %v5766_v22 }
 0x166   :  { %5316 = vmatprep.subr.bf16.mxu1 %v5769_v25  ;;  %v5806_v25 = vld [vmem:[%s7103_s1 + $0xc38] sm:$0xff]  }
 0x167   :  { %5295 = vmatpush3.bf16.msra.mxu0 %v5768_v24  ;;  %v5805_v24 = vld [vmem:[%s7103_s1 + $0xc30] sm:$0xff]  }
 0x168   :  { %5296 = vmatprep.subr.bf16.mxu0 %v5771_v27 }
 0x169   :  { %5317 = vmatpush3.bf16.msra.mxu1 %v5770_v26  ;;  %v5807_v26 = vld [vmem:[%s7104_s0 + $0xc0] ss:$0 sps:$4 sm:$0xff]  }
 0x16a   :  { %5318 = vmatprep.subr.bf16.mxu1 %v5773_v29 }
 0x16b   :  { %5297 = vmatpush3.bf16.msra.mxu0 %v5772_v28 }
 0x16c   :  { %5298 = vmatprep.subr.bf16.mxu0 %v5775_v31 }
 0x16d   :  { %5319 = vmatpush3.bf16.msra.mxu1 %v5774_v30 }
 0x16e   :  { %5320 = vmatprep.subr.bf16.mxu1 %v5777_v33 }
 0x16f   :  { %5299 = vmatpush3.bf16.msra.mxu0 %v5776_v32 }
 0x170   :  { %5300 = vmatprep.subr.bf16.mxu0 %v5779_v35 }
 0x171   :  { %5321 = vmatpush3.bf16.msra.mxu1 %v5778_v34 }
 0x172   :  { %5322 = vmatprep.subr.bf16.mxu1 %v5781_v39 }
 0x173   :  { %5301 = vmatpush3.bf16.msra.mxu0 %v5780_v37 }
 0x174   :  { %5302 = vmatprep.subr.bf16.mxu0 %v5783_v45 }
 0x175   :  { %v5000_v36 = vpop.f32.mrb[16].mxu0  ;;  %5323 = vmatpush3.bf16.msra.mxu1 %v5782_v42 }
 0x176   :  { %v5001_v38 = vpop.f32.mrb[17].mxu0  ;;  %5324 = vmatprep.subr.bf16.mxu1 %v5785_v50 }
 0x177   :  { %v5002_v40 = vadd.f32 %v5001_v38, %v5000_v36  ;;  %v5003_v41 = vpop.f32.mrb[18].mxu0  ;;  %v5022_v43 = vpop.f32.mrb[16].mxu1  ;;  %5303 = vmatpush3.bf16.msra.mxu0 %v5784_v47 }
 0x178   :  { %v5004_v46 = vpop.f32.mrb[19].mxu0  ;;  %v5023_v48 = vpop.f32.mrb[17].mxu1  ;;  %5304 = vmatprep.subr.bf16.mxu0 %v5787_v55 }
 0x179   :  { %v3710_v44 = vadd.f32 %v5002_v40, %v6941_v5  ;;  %v5024_v49 = vadd.f32 %v5023_v48, %v5022_v43  ;;  %v5025_v51 = vpop.f32.mrb[18].mxu1  ;;  %5325 = vmatpush3.bf16.msra.mxu1 %v5786_v52  ;;  %v4414_v5 = vcombine.high %v38_v3, %v38_v3 }
 0x17a   :  { %v5026_v53 = vpop.f32.mrb[19].mxu1  ;;  %5326 = vmatprep.subr.bf16.mxu1 %v5789_v57 }
 0x17b   :  { %v3750_v54 = vadd.f32 %v5024_v49, %v3710_v44  ;;  %5305 = vmatpush3.bf16.msra.mxu0 %v5788_v56  ;;  %4307 = vmatprep.mubr.bf16.mxu1 %v4414_v5 }
 0x17c   :  { %5306 = vmatprep.subr.bf16.mxu0 %v5791_v59 }
 0x17d   :  { %5327 = vmatpush3.bf16.msra.mxu1 %v5790_v58 }
 0x17e   :  { %5328 = vmatprep.subr.bf16.mxu1 %v5793_v61 }
 0x17f   :  { %5307 = vmatpush3.bf16.msra.mxu0 %v5792_v60 }
 0x180   :  { %5345 = vmatprep.subr.bf16.mxu0 %v5812_v2 }
 0x181   :  { %5329 = vmatpush3.bf16.msra.mxu1 %v5796_v1 }
 0x182   :  { %4268 = vmatmul.mubr.bf16.vlgmr.msra.gmra.mrb[44].mxu0 %v4411_v63 }
 0x183   :  { %5346 = vmatpush3.bf16.msra.mxu0 %v5799_v6  ;;  %5361 = vmatprep.mubr.msk.bf16.mxu0 %vm5813_vm0, %v5812_v2 }
 0x184   :  { %4308 = vmatmul.mubr.bf16.vlgmr.msra.gmra.mrb[44].mxu1 %v4413_v4  ;;  %5347 = vmatprep.subr.bf16.mxu0 %v5812_v2 }
 0x187   :  { %5348 = vmatpush3.bf16.msra.mxu0 %v5800_v7 }
 0x188   :  { %5349 = vmatprep.subr.bf16.mxu0 %v5812_v2 }
 0x18b   :  { %5350 = vmatpush3.bf16.msra.mxu0 %v5801_v8 }
 0x18c   :  { %5351 = vmatprep.subr.bf16.mxu0 %v5812_v2 }
 0x18f   :  { %5352 = vmatpush3.bf16.msra.mxu0 %v5802_v9 }
 0x190   :  { %5353 = vmatprep.subr.bf16.mxu0 %v5812_v2 }
 0x193   :  { %5354 = vmatpush3.bf16.msra.mxu0 %v5803_v10 }
 0x194   :  { %5355 = vmatprep.subr.bf16.mxu0 %v5812_v2 }
 0x195   :  { %v5044_v11 = vpop.f32.mrb[20].mxu0 }
 0x196   :  { %v5045_v12 = vpop.f32.mrb[21].mxu0 }
 0x197   :  { %v5046_v13 = vadd.f32 %v5045_v12, %v5044_v11  ;;  %v5047_v14 = vpop.f32.mrb[22].mxu0  ;;  %v5066_v15 = vpop.f32.mrb[20].mxu1  ;;  %5356 = vmatpush3.bf16.msra.mxu0 %v5804_v16 }
 0x198   :  { %v5048_v17 = vpop.f32.mrb[23].mxu0  ;;  %v5067_v18 = vpop.f32.mrb[21].mxu1  ;;  %5357 = vmatprep.subr.bf16.mxu0 %v5812_v2 }
 0x199   :  { %v3790_v19 = vadd.f32 %v5046_v13, %v3750_v54  ;;  %v5068_v20 = vadd.f32 %v5067_v18, %v5066_v15  ;;  %v5069_v21 = vpop.f32.mrb[22].mxu1 }
 0x19a   :  { %v5070_v22 = vpop.f32.mrb[23].mxu1 }
 0x19b   :  { %v3830_v23 = vadd.f32 %v5068_v20, %v3790_v19  ;;  %5358 = vmatpush3.bf16.msra.mxu0 %v5805_v24 }
 0x19c   :  { %5359 = vmatprep.subr.bf16.mxu0 %v5812_v2 }
 0x19f   :  { %5360 = vmatpush3.bf16.msra.mxu0 %v5806_v25 }
 0x1a2   :  { %5362 = vmatmul.mubr.bf16.vlgmr.msra.gmra.mrb[48].mxu0 %v5807_v26 }
 0x1b5   :  { %v5088_v27 = vpop.f32.mrb[24].mxu0 }
 0x1b6   :  { %v5089_v28 = vpop.f32.mrb[25].mxu0 }
 0x1b7   :  { %v5090_v29 = vadd.f32 %v5089_v28, %v5088_v27  ;;  %v5091_v30 = vpop.f32.mrb[26].mxu0  ;;  %v5110_v31 = vpop.f32.mrb[24].mxu1 }
 0x1b8   :  { %v5092_v32 = vpop.f32.mrb[27].mxu0  ;;  %v5111_v33 = vpop.f32.mrb[25].mxu1 }
 0x1b9   :  { %v3870_v34 = vadd.f32 %v5090_v29, %v3830_v23  ;;  %v5112_v35 = vadd.f32 %v5111_v33, %v5110_v31  ;;  %v5113_v36 = vpop.f32.mrb[26].mxu1 }
 0x1ba   :  { %v5114_v37 = vpop.f32.mrb[27].mxu1 }
 0x1bb   :  { %v3910_v38 = vadd.f32 %v5112_v35, %v3870_v34 }
 0x1d5   :  { %v5132_v39 = vpop.f32.mrb[28].mxu0 }
 0x1d6   :  { %v5133_v40 = vpop.f32.mrb[29].mxu0 }
 0x1d7   :  { %v5134_v41 = vadd.f32 %v5133_v40, %v5132_v39  ;;  %v5135_v42 = vpop.f32.mrb[30].mxu0  ;;  %v5154_v43 = vpop.f32.mrb[28].mxu1 }
 0x1d8   :  { %v5136_v44 = vpop.f32.mrb[31].mxu0  ;;  %v5155_v45 = vpop.f32.mrb[29].mxu1 }
 0x1d9   :  { %v3950_v46 = vadd.f32 %v5134_v41, %v3910_v38  ;;  %v5156_v47 = vadd.f32 %v5155_v45, %v5154_v43  ;;  %v5157_v48 = vpop.f32.mrb[30].mxu1 }
 0x1da   :  { %v5158_v49 = vpop.f32.mrb[31].mxu1 }
 0x1db   :  { %v3990_v50 = vadd.f32 %v5156_v47, %v3950_v46 }
 0x1f5   :  { %v5176_v51 = vpop.f32.mrb[32].mxu0 }
 0x1f6   :  { %v5177_v52 = vpop.f32.mrb[33].mxu0 }
 0x1f7   :  { %v5178_v53 = vadd.f32 %v5177_v52, %v5176_v51  ;;  %v5179_v54 = vpop.f32.mrb[34].mxu0  ;;  %v5198_v55 = vpop.f32.mrb[32].mxu1 }
 0x1f8   :  { %v5180_v56 = vpop.f32.mrb[35].mxu0  ;;  %v5199_v58 = vpop.f32.mrb[33].mxu1 }
 0x1f9   :  { %v4030_v57 = vadd.f32 %v5178_v53, %v3990_v50  ;;  %v5200_v59 = vadd.f32 %v5199_v58, %v5198_v55  ;;  %v5201_v60 = vpop.f32.mrb[34].mxu1 }
 0x1fa   :  { %v5202_v61 = vpop.f32.mrb[35].mxu1 }
 0x1fb   :  { %v4070_v62 = vadd.f32 %v5200_v59, %v4030_v57 }
 0x215   :  { %v5220_v63 = vpop.f32.mrb[36].mxu0 }
 0x216   :  { %v5221_v0 = vpop.f32.mrb[37].mxu0 }
 0x217   :  { %v5222_v1 = vadd.f32 %v5221_v0, %v5220_v63  ;;  %v5223_v2 = vpop.f32.mrb[38].mxu0  ;;  %v5242_v3 = vpop.f32.mrb[36].mxu1 }
 0x218   :  { %v5224_v4 = vpop.f32.mrb[39].mxu0  ;;  %v5243_v5 = vpop.f32.mrb[37].mxu1 }
 0x219   :  { %v4110_v6 = vadd.f32 %v5222_v1, %v4070_v62  ;;  %v5244_v7 = vadd.f32 %v5243_v5, %v5242_v3  ;;  %v5245_v8 = vpop.f32.mrb[38].mxu1 }
 0x21a   :  { %v5246_v9 = vpop.f32.mrb[39].mxu1 }
 0x21b   :  { %v4150_v10 = vadd.f32 %v5244_v7, %v4110_v6 }
 0x235   :  { %v5264_v11 = vpop.f32.mrb[40].mxu0 }
 0x236   :  { %v5265_v12 = vpop.f32.mrb[41].mxu0 }
 0x237   :  { %v5266_v13 = vadd.f32 %v5265_v12, %v5264_v11  ;;  %v5267_v14 = vpop.f32.mrb[42].mxu0  ;;  %v5286_v15 = vpop.f32.mrb[40].mxu1 }
 0x238   :  { %v5268_v16 = vpop.f32.mrb[43].mxu0  ;;  %v5287_v17 = vpop.f32.mrb[41].mxu1 }
 0x239   :  { %v4190_v18 = vadd.f32 %v5266_v13, %v4150_v10  ;;  %v5288_v19 = vadd.f32 %v5287_v17, %v5286_v15  ;;  %v5289_v20 = vpop.f32.mrb[42].mxu1 }
 0x23a   :  { %v5290_v21 = vpop.f32.mrb[43].mxu1 }
 0x23b   :  { %v4230_v22 = vadd.f32 %v5288_v19, %v4190_v18 }
 0x255   :  { %v5308_v23 = vpop.f32.mrb[44].mxu0 }
 0x256   :  { %v5309_v24 = vpop.f32.mrb[45].mxu0 }
 0x257   :  { %v5310_v25 = vadd.f32 %v5309_v24, %v5308_v23  ;;  %v5311_v26 = vpop.f32.mrb[46].mxu0  ;;  %v5330_v27 = vpop.f32.mrb[44].mxu1 }
 0x258   :  { %v5312_v28 = vpop.f32.mrb[47].mxu0  ;;  %v5331_v29 = vpop.f32.mrb[45].mxu1 }
 0x259   :  { %v4270_v30 = vadd.f32 %v5310_v25, %v4230_v22  ;;  %v5332_v31 = vadd.f32 %v5331_v29, %v5330_v27  ;;  %v5333_v32 = vpop.f32.mrb[46].mxu1 }
 0x25a   :  { %v5334_v33 = vpop.f32.mrb[47].mxu1 }
 0x25b   :  { %v4310_v34 = vadd.f32 %v5332_v31, %v4270_v30 }
 0x275   :  { %v4349_v35 = vpop.f32.mrb[48].mxu0 }
 0x276   :  { %v4350_v36 = vadd.f32 %v4349_v35, %v4310_v34  ;;  %v5363_v37 = vpop.f32.mrb[49].mxu0 }
 0x277   :  { %v4352_v38 = vpop.f32.mrb[50].mxu0 }
 0x278   :  { %v4355_v39 = vsub.f32 0.0, %v4350_v36  ;;  %v5364_v40 = vpop.f32.mrb[51].mxu0 }
 0x27a   :  { %v4356_v41 = vmul.f32 1.442695, %v4355_v39 }
 0x27c   :  { %5808 = vpow2.f32 %v4356_v41 }
 0x286   :  { %v5809_v42 = vpop.eup %5808 }
 0x287   :  { %v4358_v43 = vadd.f32 1.0, %v5809_v42 }
 0x289   :  { %5810 = vrcp.f32 %v4358_v43 }
 0x293   :  { %v5811_v44 = vpop.eup %5810 }
 0x294   :  { %4361 = vst [vmem:[%s7106_s3] sm:$0xff] %v5811_v44 }

</bundles_post_ra>
